<compile_context>
chip_gen: v5e
topology: v5e:2x2
jax: 0.10.0
libtpu: 0.0.40
codegen_flags: <defaults>
</compile_context>

<pallas_src>
import functools

import jax
import jax.numpy as jnp
from jax.experimental import pallas as pl
from jax.experimental.pallas import tpu as pltpu


MM_DT = jnp.bfloat16          # matmul-input dtype; accumulation is always f32


# --------------------------------------------------------------------- helpers
def _gelu(x):
    # tanh-form GELU (EUP tanh instead of a multi-op VALU erf polynomial).
    # TODO(synk): ~1e-3 max abs deviation vs torch.nn.GELU's exact erf form.
    c = 0.7978845608028654  # sqrt(2/pi)
    return 0.5 * x * (1.0 + jnp.tanh(c * (x + 0.044715 * x * x * x)))


def _layernorm(x, w, b, eps=1e-5):
    mu = jnp.mean(x, axis=-1, keepdims=True)
    xc = x - mu
    var = jnp.mean(xc * xc, axis=-1, keepdims=True)
    return xc * jax.lax.rsqrt(var + eps) * w + b


def _mm(a, b):
    # a @ b, bf16 inputs, f32 accumulate
    return jnp.dot(a.astype(MM_DT), b.astype(MM_DT),
                   preferred_element_type=jnp.float32)


def _mm_t(a, b):
    # a @ b^T, bf16 inputs, f32 accumulate
    return jax.lax.dot_general(a.astype(MM_DT), b.astype(MM_DT),
                               (((1,), (1,)), ((), ())),
                               preferred_element_type=jnp.float32)


def _linear(x, w, b=None):
    # x: (M, in); w: (out, in) torch nn.Linear layout; b: (1, out)
    y = _mm_t(x, w)
    return y if b is None else y + b


# --------------------------------------------------------- fused forward kernel
def _fused_kernel(kv_ref, negb_ref, qe_ref, vec_ref, mats_ref,
                  gvec_ref, gmat_ref, gw1_ref, gb1_ref, red_ref,
                  hw1_ref, hb1_ref, w2b_ref, b2b_ref, out_ref, *, num_heads):
    H = num_heads
    _, SB, L = negb_ref.shape
    D = kv_ref.shape[2]
    Q, dq = qe_ref.shape
    dh = dq // H
    NL = gvec_ref.shape[0]

    kv = kv_ref[0]                                   # (SB*L, D)
    negb = negb_ref[0]                               # (SB, L)  -1e30 on padded keys
    q = qe_ref[...]                                  # (Q, dq)
    vec = vec_ref[...]                               # (14, D) packed vector slab
    vrow = lambda i: vec[i:i + 1, :]                 # static (1, D) slice

    wq, wk, wv, wo, a_w1, a_w2 = (mats_ref[i] for i in range(6))

    # ----------------- cross attention (samples flattened for all projections)
    norm_kv = _layernorm(kv, vrow(0), vrow(1))       # (SB*L, D)
    norm_q = _layernorm(q, vrow(2), vrow(3))         # (Q, dq)
    qp = _linear(norm_q, wq, vrow(4))                # (Q, dq)
    kp = _linear(norm_kv, wk, vrow(5))               # (SB*L, dq)
    vp = _linear(norm_kv, wv, vrow(6))               # (SB*L, dq)

    # per-head lane masks, hoisted out of all loops
    lane = jax.lax.broadcasted_iota(jnp.int32, (1, dq), 1)
    hmask = [((lane >= h * dh) & (lane < (h + 1) * dh)).astype(jnp.float32)
             for h in range(H)]
    # head-blocked queries: row block h carries only head h's lanes of qp
    QB = jnp.concatenate([qp * hmask[h] for h in range(H)], axis=0)   # (H*Q, dq)
    scale = jnp.float32(1.0 / (dh ** 0.5))

    ctx_rows = []
    for s in range(SB):                              # only QK^T / attn@V per sample
        kp_s = kp[s * L:(s + 1) * L]
        vp_s = vp[s * L:(s + 1) * L]
        sc = _mm_t(QB, kp_s) * scale + negb[s:s + 1]                  # (H*Q, L)
        sc = sc - jnp.max(sc, axis=-1, keepdims=True)
        e = jnp.exp(sc)
        # eps keeps a fully-masked row finite (torch would NaN); harmless otherwise
        inv = pl.reciprocal(jnp.sum(e, axis=-1, keepdims=True) + 1e-30, approx=True)
        ctxh = _mm(e * inv, vp_s)                                     # (H*Q, dq)
        ctx = ctxh[0:Q] * hmask[0]
        for h in range(1, H):
            ctx = ctx + ctxh[h * Q:(h + 1) * Q] * hmask[h]
        ctx_rows.append(ctx)
    ctx_all = jnp.concatenate(ctx_rows, axis=0)      # (SB*Q, dq)

    q_rep = jnp.tile(q, (SB, 1))                     # residual uses un-normed query
    latent = _linear(ctx_all, wo, vrow(7)) + q_rep   # output proj + residual

    hmid = _layernorm(latent, vrow(8), vrow(9))
    hmid = _gelu(_linear(hmid, a_w1, vrow(10)))
    hmid = _linear(hmid, a_w2, vrow(11))
    x = hmid + latent                                # (SB*Q, D)

    # ----------------- gMLP stack (all samples flattened; block-diag gating)
    gvec = gvec_ref[...]                             # (NL, 7, D)
    for l in range(NL):
        ln0_w, ln0_b, b0u, b0v, ln1_w, ln1_b, b2 = (gvec[l, i:i + 1, :]
                                                    for i in range(7))
        gl = gmat_ref[l]                             # (3, D, D): w0u, w0v, w2
        xn = _layernorm(x, ln0_w, ln0_b)
        u = _gelu(_linear(xn, gl[0], b0u))           # (SB*Q, D)
        v = _gelu(_linear(xn, gl[1], b0v))           # (SB*Q, D)
        v = _layernorm(v, ln1_w, ln1_b)
        # spatial gating over each sample's Q rows as ONE block-diagonal matmul
        v = _mm(gw1_ref[l], v) + gb1_ref[l]
        x = _linear(u * v, gl[2], b2) + x            # residual

    # ----------------- Reduce: block matrix over each sample's Q rows, then LN
    # (Linear(Q,1) bias adds the same scalar to every channel -> cancelled by LN)
    hred = _mm(red_ref[...], x)                      # (SB, D)
    hred = _layernorm(hred, vrow(12), vrow(13))

    # ----------------- contrastive head + all cell heads: one stacked matmul pair
    # (torch detaches h before the cell heads -- a no-op for the forward pass)
    hid = jnp.maximum(_linear(hred, hw1_ref[...], hb1_ref[...]), 0.0)   # (SB, NH*D)
    out_ref[0] = _linear(hid, w2b_ref[...], b2b_ref[...])               # (SB, OUT_PAD)


# ------------------------------------------------------------- pallas_call glue
def _choose_sb(G, Q, target_rows=256):
    """Samples per grid step: fill the MXU M dim but keep >= 2 grid steps
    (so a dual-TensorCore chip gets work on both cores) when possible."""
    divisors = [d for d in range(1, G + 1) if G % d == 0]
    cands = [d for d in divisors if d * Q <= max(target_rows, Q)] or [1]
    sb = max(cands)
    if G // sb < 2:
        smaller = [d for d in cands if G // d >= 2]
        if smaller:
            sb = max(smaller)
    return sb


def _fused_forward_call(params, key_vals, mask):
    G, L, D = key_vals.shape
    Q, Dq = params["query_emb"].shape
    assert Dq == D, "query_dim must equal seq_dim (gMLP / Reduce operate on seq_dim)"
    ca = params["cross_attn"]
    H = ca["num_heads"]
    gm = params["gmlp_stacked"]
    NL = gm["ln0_w"].shape[0]
    rp = params["reduce"]
    m = params["mlp"]
    head_names = list(params["cell_heads"].keys())
    heads = [params["cell_heads"][k] for k in head_names]
    NH = 1 + len(heads)                              # contrastive head + cell heads

    SB = _choose_sb(G, Q)
    SBQ = SB * Q
    n_steps = G // SB
    f32 = jnp.float32

    # ------------- packed weight slabs (few big operands instead of ~45 tiny ones)
    vecD = jnp.concatenate(
        [ca["ln_kv_w"], ca["ln_kv_b"], ca["ln_q_w"], ca["ln_q_b"],
         ca["bq"], ca["bk"], ca["bv"], ca["bo"],
         ca["mlp_ln_w"], ca["mlp_ln_b"], ca["mlp_b1"], ca["mlp_b2"],
         rp["ln_w"], rp["ln_b"]], axis=0)                                   # (14, D)
    mats = jnp.stack([ca["wq"], ca["wk"], ca["wv"], ca["wo"],
                      ca["mlp_w1"], ca["mlp_w2"]], axis=0).astype(MM_DT)    # (6, D, D)
    gvec = jnp.concatenate([gm["ln0_w"], gm["ln0_b"], gm["b0u"], gm["b0v"],
                            gm["ln1_w"], gm["ln1_b"], gm["b2"]], axis=1)    # (NL, 7, D)
    gmat = jnp.stack([gm["w0u"], gm["w0v"], gm["w2"]], axis=1).astype(MM_DT)  # (NL,3,D,D)

    eye = jnp.eye(SB, dtype=f32)
    # block-diagonal spatial-gating weights (one dense (SBQ, SBQ) matmul per layer)
    gw1b = (eye[None, :, None, :, None] * gm["w1"][:, None, :, None, :]
            ).reshape(NL, SBQ, SBQ).astype(MM_DT)
    gb1b = jnp.tile(gm["b1"], (1, SB, 1))                                   # (NL, SBQ, 1)
    # block Reduce matrix: row s holds r_w over that sample's Q rows
    redw = jnp.kron(eye, rp["w"]).astype(MM_DT)                             # (SB, SBQ)
    # rp["b"] is intentionally unused (cancelled exactly by the following LayerNorm)

    # fused heads: stacked first layers, block second-layer matrix, padded to 128 lanes
    hw1 = jnp.concatenate([m["w1"]] + [hp["w1"] for hp in heads], axis=0).astype(MM_DT)
    hb1 = jnp.concatenate([m["b1"]] + [hp["b1"] for hp in heads], axis=1)   # (1, NH*D)
    second = [(m["w2"], m["b2"])] + [(hp["w2"], hp["b2"]) for hp in heads]
    out_sizes = [w.shape[0] for w, _ in second]
    total_out = sum(out_sizes)
    OUT_PAD = max(128, ((total_out + 127) // 128) * 128)
    w2b = jnp.zeros((OUT_PAD, NH * D), f32)
    b2b = jnp.zeros((1, OUT_PAD), f32)
    row = 0
    for k, (w2, b2) in enumerate(second):
        n = w2.shape[0]
        w2b = w2b.at[row:row + n, k * D:(k + 1) * D].set(w2)
        b2b = b2b.at[:, row:row + n].set(b2)
        row += n
    w2b = w2b.astype(MM_DT)

    # ------------- per-step activation inputs
    kv_in = key_vals.reshape(n_steps, SB * L, D)
    negb_in = (mask * jnp.float32(-1e30)).reshape(n_steps, SB, L)

    weights = [params["query_emb"], vecD, mats, gvec, gmat, gw1b, gb1b, redw,
               hw1, hb1, w2b, b2b]
    w_specs = [pl.BlockSpec(w.shape, lambda g, nd=w.ndim: (0,) * nd) for w in weights]

    kernel = functools.partial(_fused_kernel, num_heads=H)

    out = pl.pallas_call(
        kernel,
        out_shape=jax.ShapeDtypeStruct((n_steps, SB, OUT_PAD), jnp.float32),
        grid=(n_steps,),
        in_specs=[pl.BlockSpec((1, SB * L, D), lambda g: (g, 0, 0)),
                  pl.BlockSpec((1, SB, L), lambda g: (g, 0, 0))] + w_specs,
        out_specs=pl.BlockSpec((1, SB, OUT_PAD), lambda g: (g, 0, 0)),
        compiler_params=pltpu.CompilerParams(
            dimension_semantics=("parallel",),
            # TODO(synk): at production shapes, re-derive SB and set
            # vmem_limit_bytes against v7x's 64 MiB VMEM (weight slabs +
            # double-buffered activation blocks are the binding constraint).
        ),
    )(kv_in, negb_in, *weights)

    out = out.reshape(G, OUT_PAD)
    z_all = out[:, :out_sizes[0]]
    head_outs, off = [], out_sizes[0]
    for n in out_sizes[1:]:
        head_outs.append(out[:, off:off + n])
        off += n
    return z_all, head_outs, head_names


# --------------------------------------------------------------- parameter setup
def _xavier_normal(key, shape, gain=1.0):
    fan_out, fan_in = shape
    std = gain * (2.0 / (fan_in + fan_out)) ** 0.5
    return std * jax.random.normal(key, shape, jnp.float32)


def init_params(key, *, seq_len, seq_dim, query_len, query_dim, n_heads, n_layers,
                cell_properties):
    D, Dq, Q, H = seq_dim, query_dim, query_len, n_heads
    keys = iter(jax.random.split(key, 128))
    nk = lambda: next(keys)
    ln = lambda dim: (jnp.ones((1, dim), jnp.float32), jnp.zeros((1, dim), jnp.float32))

    params = {}
    params["query_emb"] = jax.random.normal(nk(), (Q, Dq), jnp.float32)

    # gene embeddings (padding_idx = seq_len): padding row zero, val_w ones, val_b zeros
    gene_emb = jax.random.normal(nk(), (seq_len + 1, D), jnp.float32)
    params["gene_emb"] = gene_emb.at[seq_len].set(0.0)
    params["gene_val_w"] = jnp.ones((seq_len + 1, 1), jnp.float32)
    params["gene_val_b"] = jnp.zeros((seq_len + 1, 1), jnp.float32)

    # ---- CrossAttn (LN_kv, LN_q, MultiheadAttention(Dq, H, kdim=vdim=D), MLP) ----
    ca = {"num_heads": H}
    ca["ln_kv_w"], ca["ln_kv_b"] = ln(D)
    ca["ln_q_w"], ca["ln_q_b"] = ln(Dq)
    ca["wq"] = _xavier_normal(nk(), (Dq, Dq))
    ca["wk"] = _xavier_normal(nk(), (Dq, D))
    ca["wv"] = _xavier_normal(nk(), (Dq, D))
    ca["wo"] = _xavier_normal(nk(), (Dq, Dq))
    ca["bq"] = jnp.zeros((1, Dq), jnp.float32)
    ca["bk"] = jnp.zeros((1, Dq), jnp.float32)
    ca["bv"] = jnp.zeros((1, Dq), jnp.float32)
    ca["bo"] = jnp.zeros((1, Dq), jnp.float32)
    ca["mlp_ln_w"], ca["mlp_ln_b"] = ln(Dq)
    ca["mlp_w1"] = _xavier_normal(nk(), (Dq, Dq))
    ca["mlp_b1"] = jnp.zeros((1, Dq), jnp.float32)
    ca["mlp_w2"] = _xavier_normal(nk(), (Dq, Dq))
    ca["mlp_b2"] = jnp.zeros((1, Dq), jnp.float32)
    params["cross_attn"] = ca

    # ---- gMLP stack (hidden_dim = 2 * seq_dim), weights stacked over layers ----
    hidden = 2 * D
    layer_list = []
    for _ in range(n_layers):
        lp = {}
        lp["ln0_w"], lp["ln0_b"] = ln(D)
        w0 = _xavier_normal(nk(), (hidden, D))
        b0 = jnp.zeros((hidden,), jnp.float32)
        # torch.chunk(linear0(x), 2, dim=-1) == splitting linear0's output rows
        lp["w0u"], lp["w0v"] = w0[: hidden // 2], w0[hidden // 2:]
        lp["b0u"] = b0[: hidden // 2].reshape(1, -1)
        lp["b0v"] = b0[hidden // 2:].reshape(1, -1)
        lp["ln1_w"], lp["ln1_b"] = ln(hidden // 2)
        lp["w1"] = _xavier_normal(nk(), (Q, Q), gain=0.05)   # xavier_normal_(gain=0.05)
        lp["b1"] = jnp.ones((Q, 1), jnp.float32)             # torch: ones_
        lp["w2"] = _xavier_normal(nk(), (D, hidden // 2))
        lp["b2"] = jnp.zeros((1, D), jnp.float32)
        layer_list.append(lp)
    params["gmlp_stacked"] = {k: jnp.stack([lp[k] for lp in layer_list])
                              for k in layer_list[0]}

    # ---- Reduce (Linear(Q,1) on the query axis, then LayerNorm(D)) ----
    rp = {}
    rp["w"] = (jax.random.normal(nk(), (Q,), jnp.float32) / (Q ** 0.5)).reshape(1, Q)
    rp["b"] = jnp.zeros((1, 1), jnp.float32)     # kept for fidelity; cancelled by LN
    rp["ln_w"], rp["ln_b"] = ln(D)
    params["reduce"] = rp

    # ---- contrastive head: Linear(D,D) -> ReLU -> Linear(D,128) ----
    params["mlp"] = {"w1": _xavier_normal(nk(), (D, D)),
                     "b1": jnp.zeros((1, D), jnp.float32),
                     "w2": _xavier_normal(nk(), (128, D)),
                     "b2": jnp.zeros((1, 128), jnp.float32)}

    # ---- SimpleDecoder heads ----
    heads = {}
    for name, prop in cell_properties.items():
        n_targets = len(prop["values"]) if prop["discrete"] else 1
        heads[name] = {"w1": _xavier_normal(nk(), (D, D)),
                       "b1": jnp.zeros((1, D), jnp.float32),
                       "w2": _xavier_normal(nk(), (n_targets, D)),
                       "b2": jnp.zeros((1, n_targets), jnp.float32)}
    params["cell_heads"] = heads
    return params


# ------------------------------------------------------------------------ forward
def contrastive_gated_mlp_forward(params, gene_ids, gene_vals, key_padding_mask, n_views):
    """Mirrors ContrastiveGatedMLP.forward: returns (z, cell_pred), lists of length n_views."""
    B, L = gene_ids[0].shape
    G = n_views * B

    # views share weights/shapes -> stack them so the whole forward is ONE pallas_call
    ids = jnp.stack(gene_ids).reshape(G, L)
    vals = jnp.stack(gene_vals).astype(jnp.float32).reshape(G, L)
    mask_f = jnp.stack(key_padding_mask).astype(jnp.float32).reshape(G, L)  # 1.0 == ignore

    # _gene_embedding: gathers + trivially-fusable elementwise stay in plain JAX.
    # TODO(synk): on v5e, fold this elementwise (and the gather via scalar-prefetch
    # DMA) into the kernel to remove one (G, L, D) HBM round-trip.
    emb = jnp.take(params["gene_emb"], ids, axis=0)        # (G, L, D)
    w_g = jnp.take(params["gene_val_w"], ids, axis=0)      # (G, L, 1)
    b_g = jnp.take(params["gene_val_b"], ids, axis=0)      # (G, L, 1)
    key_vals = (vals[..., None] * w_g + b_g) * emb         # (G, L, D)

    z_all, head_outs, head_names = _fused_forward_call(params, key_vals, mask_f)

    z_all = z_all.reshape(n_views, B, -1)                  # (n_views, B, 128)
    head_outs = [o.reshape(n_views, B, -1) for o in head_outs]

    z_list, cell_pred_list = [], []
    for v in range(n_views):
        z_list.append(z_all[v])
        preds = {}
        for name, out in zip(head_names, head_outs):
            preds[name] = jnp.squeeze(out[v])              # mirrors torch.squeeze
        cell_pred_list.append(preds)
    return z_list, cell_pred_list


# ---------------------------------------------------------------------------- main
if __name__ == "__main__":
    B = 2
    n_views = 2
    seq_len = 16            # gene vocabulary size == #genes per cell here
    seq_dim = 32
    query_len = 8
    query_dim = 32          # must equal seq_dim (gMLP / Reduce operate on seq_dim)
    n_heads = 4
    n_layers = 2
    cell_properties = {
        "cell_class": {"discrete": True, "values": ["a", "b", "c"]},
        "cell_size": {"discrete": False, "values": None},
    }

    root = jax.random.PRNGKey(0)
    pkey, dkey = jax.random.split(root)
    params = init_params(pkey, seq_len=seq_len, seq_dim=seq_dim, query_len=query_len,
                         query_dim=query_dim, n_heads=n_heads, n_layers=n_layers,
                         cell_properties=cell_properties)

    gene_ids, gene_vals, masks = [], [], []
    for n in range(n_views):
        dkey, k_id, k_val = jax.random.split(dkey, 3)
        ids = jax.random.randint(k_id, (B, seq_len), 0, seq_len)
        vals = jax.random.uniform(k_val, (B, seq_len), jnp.float32)
        n_pad = 3 + n                                            # pad the tail positions
        pad = jnp.broadcast_to(jnp.arange(seq_len)[None, :] >= seq_len - n_pad, (B, seq_len))
        ids = jnp.where(pad, seq_len, ids)                       # padding_idx = seq_len
        vals = jnp.where(pad, 0.0, vals)
        gene_ids.append(ids)
        gene_vals.append(vals)
        masks.append(pad)                                        # bool, True = ignore key

    z, cell_pred = contrastive_gated_mlp_forward(params, gene_ids, gene_vals, masks, n_views)
    jax.block_until_ready((z, cell_pred))

    assert len(z) == n_views and z[0].shape == (B, 128)
    assert cell_pred[0]["cell_class"].shape == (B, 3)
    assert cell_pred[0]["cell_size"].shape == (B,)
    for zi in z:
        assert bool(jnp.all(jnp.isfinite(zi)))
    for cp in cell_pred:
        for v in cp.values():
            assert bool(jnp.all(jnp.isfinite(v)))
    print("KERNEL_OK")
</pallas_src>

<mosaic_0001>
module attributes {stable_mosaic.version = 11 : i64} {
  func.func @_fused_kernel(%arg0: i32, %arg1: memref<1x32x32xf32, #tpu.memory_space<vmem>>, %arg2: memref<1x2x16xf32, #tpu.memory_space<vmem>>, %arg3: memref<8x32xf32, #tpu.memory_space<vmem>>, %arg4: memref<14x32xf32, #tpu.memory_space<vmem>>, %arg5: memref<6x32x32xbf16, #tpu.memory_space<vmem>>, %arg6: memref<2x7x32xf32, #tpu.memory_space<vmem>>, %arg7: memref<2x3x32x32xbf16, #tpu.memory_space<vmem>>, %arg8: memref<2x16x16xbf16, #tpu.memory_space<vmem>>, %arg9: memref<2x16x1xf32, #tpu.memory_space<vmem>>, %arg10: memref<2x16xbf16, #tpu.memory_space<vmem>>, %arg11: memref<96x32xbf16, #tpu.memory_space<vmem>>, %arg12: memref<1x96xf32, #tpu.memory_space<vmem>>, %arg13: memref<256x96xbf16, #tpu.memory_space<vmem>>, %arg14: memref<1x256xf32, #tpu.memory_space<vmem>>, %arg15: memref<1x2x256xf32, #tpu.memory_space<vmem>>) attributes {dimension_semantics = [#tpu.dimension_semantics<parallel>], iteration_bounds = array<i64: 2>, scalar_prefetch = 0 : i64, scratch_operands = 0 : i64, tpu.core_type = #tpu.core_type<tc>, window_params = [{transform_indices = @transform_0, window_bounds = array<i64: 1, 32, 32>}, {transform_indices = @transform_1, window_bounds = array<i64: 1, 2, 16>}, {pipeline_mode = #tpu.pipeline_mode<synchronous>, transform_indices = @transform_2, window_bounds = array<i64: 8, 32>}, {pipeline_mode = #tpu.pipeline_mode<synchronous>, transform_indices = @transform_3, window_bounds = array<i64: 14, 32>}, {pipeline_mode = #tpu.pipeline_mode<synchronous>, transform_indices = @transform_4, window_bounds = array<i64: 6, 32, 32>}, {pipeline_mode = #tpu.pipeline_mode<synchronous>, transform_indices = @transform_5, window_bounds = array<i64: 2, 7, 32>}, {pipeline_mode = #tpu.pipeline_mode<synchronous>, transform_indices = @transform_6, window_bounds = array<i64: 2, 3, 32, 32>}, {pipeline_mode = #tpu.pipeline_mode<synchronous>, transform_indices = @transform_7, window_bounds = array<i64: 2, 16, 16>}, {pipeline_mode = #tpu.pipeline_mode<synchronous>, transform_indices = @transform_8, window_bounds = array<i64: 2, 16, 1>}, {pipeline_mode = #tpu.pipeline_mode<synchronous>, transform_indices = @transform_9, window_bounds = array<i64: 2, 16>}, {pipeline_mode = #tpu.pipeline_mode<synchronous>, transform_indices = @transform_10, window_bounds = array<i64: 96, 32>}, {pipeline_mode = #tpu.pipeline_mode<synchronous>, transform_indices = @transform_11, window_bounds = array<i64: 1, 96>}, {pipeline_mode = #tpu.pipeline_mode<synchronous>, transform_indices = @transform_12, window_bounds = array<i64: 256, 96>}, {pipeline_mode = #tpu.pipeline_mode<synchronous>, transform_indices = @transform_13, window_bounds = array<i64: 1, 256>}, {transform_indices = @transform_14, window_bounds = array<i64: 1, 2, 256>}]} {
    %c0 = arith.constant 0 : index
    %c0_0 = arith.constant 0 : index
    %c0_1 = arith.constant 0 : index
    %0 = vector.load %arg1[%c0, %c0_0, %c0_1] : memref<1x32x32xf32, #tpu.memory_space<vmem>>, vector<1x32x32xf32>
    %1 = vector.shape_cast %0 : vector<1x32x32xf32> to vector<32x32xf32>
    %c0_2 = arith.constant 0 : index
    %c0_3 = arith.constant 0 : index
    %c0_4 = arith.constant 0 : index
    %2 = vector.load %arg2[%c0_2, %c0_3, %c0_4] : memref<1x2x16xf32, #tpu.memory_space<vmem>>, vector<1x2x16xf32>
    %3 = vector.shape_cast %2 : vector<1x2x16xf32> to vector<2x16xf32>
    %c0_5 = arith.constant 0 : index
    %c0_6 = arith.constant 0 : index
    %4 = vector.load %arg3[%c0_5, %c0_6] : memref<8x32xf32, #tpu.memory_space<vmem>>, vector<8x32xf32>
    %c0_7 = arith.constant 0 : index
    %c0_8 = arith.constant 0 : index
    %5 = vector.load %arg4[%c0_7, %c0_8] : memref<14x32xf32, #tpu.memory_space<vmem>>, vector<14x32xf32>
    %c0_9 = arith.constant 0 : index
    %c0_10 = arith.constant 0 : index
    %c0_11 = arith.constant 0 : index
    %6 = vector.load %arg5[%c0_9, %c0_10, %c0_11] : memref<6x32x32xbf16, #tpu.memory_space<vmem>>, vector<1x32x32xbf16>
    %7 = vector.shape_cast %6 : vector<1x32x32xbf16> to vector<32x32xbf16>
    %c1 = arith.constant 1 : index
    %c0_12 = arith.constant 0 : index
    %c0_13 = arith.constant 0 : index
    %8 = vector.load %arg5[%c1, %c0_12, %c0_13] : memref<6x32x32xbf16, #tpu.memory_space<vmem>>, vector<1x32x32xbf16>
    %9 = vector.shape_cast %8 : vector<1x32x32xbf16> to vector<32x32xbf16>
    %c2 = arith.constant 2 : index
    %c0_14 = arith.constant 0 : index
    %c0_15 = arith.constant 0 : index
    %10 = vector.load %arg5[%c2, %c0_14, %c0_15] : memref<6x32x32xbf16, #tpu.memory_space<vmem>>, vector<1x32x32xbf16>
    %11 = vector.shape_cast %10 : vector<1x32x32xbf16> to vector<32x32xbf16>
    %c3 = arith.constant 3 : index
    %c0_16 = arith.constant 0 : index
    %c0_17 = arith.constant 0 : index
    %12 = vector.load %arg5[%c3, %c0_16, %c0_17] : memref<6x32x32xbf16, #tpu.memory_space<vmem>>, vector<1x32x32xbf16>
    %13 = vector.shape_cast %12 : vector<1x32x32xbf16> to vector<32x32xbf16>
    %c4 = arith.constant 4 : index
    %c0_18 = arith.constant 0 : index
    %c0_19 = arith.constant 0 : index
    %14 = vector.load %arg5[%c4, %c0_18, %c0_19] : memref<6x32x32xbf16, #tpu.memory_space<vmem>>, vector<1x32x32xbf16>
    %15 = vector.shape_cast %14 : vector<1x32x32xbf16> to vector<32x32xbf16>
    %c5 = arith.constant 5 : index
    %c0_20 = arith.constant 0 : index
    %c0_21 = arith.constant 0 : index
    %16 = vector.load %arg5[%c5, %c0_20, %c0_21] : memref<6x32x32xbf16, #tpu.memory_space<vmem>>, vector<1x32x32xbf16>
    %17 = vector.shape_cast %16 : vector<1x32x32xbf16> to vector<32x32xbf16>
    %18 = vector.extract_strided_slice %5 {offsets = [0, 0], sizes = [1, 32], strides = [1, 1]} : vector<14x32xf32> to vector<1x32xf32>
    %19 = vector.extract_strided_slice %5 {offsets = [1, 0], sizes = [1, 32], strides = [1, 1]} : vector<14x32xf32> to vector<1x32xf32>
    %cst = arith.constant dense<0.000000e+00> : vector<32xf32>
    %20 = vector.multi_reduction <add>, %1, %cst [1] : vector<32x32xf32> to vector<32xf32>
    %21 = vector.shape_cast %20 : vector<32xf32> to vector<32x1xf32>
    %cst_22 = arith.constant 3.200000e+01 : f32
    %22 = vector.broadcast %cst_22 : f32 to vector<32x1xf32>
    %23 = arith.divf %21, %22 : vector<32x1xf32>
    %24 = vector.broadcast %23 : vector<32x1xf32> to vector<32x32xf32>
    %25 = arith.subf %1, %24 : vector<32x32xf32>
    %26 = arith.mulf %25, %25 : vector<32x32xf32>
    %cst_23 = arith.constant dense<0.000000e+00> : vector<32xf32>
    %27 = vector.multi_reduction <add>, %26, %cst_23 [1] : vector<32x32xf32> to vector<32xf32>
    %28 = vector.shape_cast %27 : vector<32xf32> to vector<32x1xf32>
    %cst_24 = arith.constant 3.200000e+01 : f32
    %29 = vector.broadcast %cst_24 : f32 to vector<32x1xf32>
    %30 = arith.divf %28, %29 : vector<32x1xf32>
    %cst_25 = arith.constant 9.99999974E-6 : f32
    %31 = vector.broadcast %cst_25 : f32 to vector<32x1xf32>
    %32 = arith.addf %30, %31 : vector<32x1xf32>
    %33 = math.rsqrt %32 : vector<32x1xf32>
    %34 = vector.broadcast %33 : vector<32x1xf32> to vector<32x32xf32>
    %35 = arith.mulf %25, %34 : vector<32x32xf32>
    %36 = vector.broadcast %18 : vector<1x32xf32> to vector<32x32xf32>
    %37 = arith.mulf %35, %36 : vector<32x32xf32>
    %38 = vector.broadcast %19 : vector<1x32xf32> to vector<32x32xf32>
    %39 = arith.addf %37, %38 : vector<32x32xf32>
    %40 = vector.extract_strided_slice %5 {offsets = [2, 0], sizes = [1, 32], strides = [1, 1]} : vector<14x32xf32> to vector<1x32xf32>
    %41 = vector.extract_strided_slice %5 {offsets = [3, 0], sizes = [1, 32], strides = [1, 1]} : vector<14x32xf32> to vector<1x32xf32>
    %cst_26 = arith.constant dense<0.000000e+00> : vector<8xf32>
    %42 = vector.multi_reduction <add>, %4, %cst_26 [1] : vector<8x32xf32> to vector<8xf32>
    %43 = vector.shape_cast %42 : vector<8xf32> to vector<8x1xf32>
    %cst_27 = arith.constant 3.200000e+01 : f32
    %44 = vector.broadcast %cst_27 : f32 to vector<8x1xf32>
    %45 = arith.divf %43, %44 : vector<8x1xf32>
    %46 = vector.broadcast %45 : vector<8x1xf32> to vector<8x32xf32>
    %47 = arith.subf %4, %46 : vector<8x32xf32>
    %48 = arith.mulf %47, %47 : vector<8x32xf32>
    %cst_28 = arith.constant dense<0.000000e+00> : vector<8xf32>
    %49 = vector.multi_reduction <add>, %48, %cst_28 [1] : vector<8x32xf32> to vector<8xf32>
    %50 = vector.shape_cast %49 : vector<8xf32> to vector<8x1xf32>
    %cst_29 = arith.constant 3.200000e+01 : f32
    %51 = vector.broadcast %cst_29 : f32 to vector<8x1xf32>
    %52 = arith.divf %50, %51 : vector<8x1xf32>
    %cst_30 = arith.constant 9.99999974E-6 : f32
    %53 = vector.broadcast %cst_30 : f32 to vector<8x1xf32>
    %54 = arith.addf %52, %53 : vector<8x1xf32>
    %55 = math.rsqrt %54 : vector<8x1xf32>
    %56 = vector.broadcast %55 : vector<8x1xf32> to vector<8x32xf32>
    %57 = arith.mulf %47, %56 : vector<8x32xf32>
    %58 = vector.broadcast %40 : vector<1x32xf32> to vector<8x32xf32>
    %59 = arith.mulf %57, %58 : vector<8x32xf32>
    %60 = vector.broadcast %41 : vector<1x32xf32> to vector<8x32xf32>
    %61 = arith.addf %59, %60 : vector<8x32xf32>
    %62 = vector.extract_strided_slice %5 {offsets = [4, 0], sizes = [1, 32], strides = [1, 1]} : vector<14x32xf32> to vector<1x32xf32>
    %63 = arith.truncf %61 : vector<8x32xf32> to vector<8x32xbf16>
    %cst_31 = arith.constant dense<0.000000e+00> : vector<8x32xf32>
    %64 = tpu.matmul %63, %7, %cst_31 {dimension_numbers = #tpu.dot_dimension_numbers<[1], [1], [0], [0], [0, 0, 1, 0], [], []>} : vector<8x32xbf16>, vector<32x32xbf16>, vector<8x32xf32> -> vector<8x32xf32>
    %65 = vector.broadcast %62 : vector<1x32xf32> to vector<8x32xf32>
    %66 = arith.addf %64, %65 : vector<8x32xf32>
    %67 = vector.extract_strided_slice %5 {offsets = [5, 0], sizes = [1, 32], strides = [1, 1]} : vector<14x32xf32> to vector<1x32xf32>
    %68 = arith.truncf %39 : vector<32x32xf32> to vector<32x32xbf16>
    %cst_32 = arith.constant dense<0.000000e+00> : vector<32x32xf32>
    %69 = tpu.matmul %68, %9, %cst_32 {dimension_numbers = #tpu.dot_dimension_numbers<[1], [1], [0], [0], [0, 0, 1, 0], [], []>} : vector<32x32xbf16>, vector<32x32xbf16>, vector<32x32xf32> -> vector<32x32xf32>
    %70 = vector.broadcast %67 : vector<1x32xf32> to vector<32x32xf32>
    %71 = arith.addf %69, %70 : vector<32x32xf32>
    %72 = vector.extract_strided_slice %5 {offsets = [6, 0], sizes = [1, 32], strides = [1, 1]} : vector<14x32xf32> to vector<1x32xf32>
    %73 = arith.truncf %39 : vector<32x32xf32> to vector<32x32xbf16>
    %cst_33 = arith.constant dense<0.000000e+00> : vector<32x32xf32>
    %74 = tpu.matmul %73, %11, %cst_33 {dimension_numbers = #tpu.dot_dimension_numbers<[1], [1], [0], [0], [0, 0, 1, 0], [], []>} : vector<32x32xbf16>, vector<32x32xbf16>, vector<32x32xf32> -> vector<32x32xf32>
    %75 = vector.broadcast %72 : vector<1x32xf32> to vector<32x32xf32>
    %76 = arith.addf %74, %75 : vector<32x32xf32>
    %77 = tpu.iota {dimensions = array<i32: 1>} : vector<1x32xi32>
    %c0_i32 = arith.constant 0 : i32
    %78 = vector.broadcast %c0_i32 : i32 to vector<1x32xi32>
    %79 = arith.cmpi sge, %77, %78 : vector<1x32xi32>
    %c8_i32 = arith.constant 8 : i32
    %80 = vector.broadcast %c8_i32 : i32 to vector<1x32xi32>
    %81 = arith.cmpi slt, %77, %80 : vector<1x32xi32>
    %82 = arith.andi %79, %81 : vector<1x32xi1>
    %83 = arith.extui %82 : vector<1x32xi1> to vector<1x32xi32>
    %84 = arith.sitofp %83 : vector<1x32xi32> to vector<1x32xf32>
    %c8_i32_34 = arith.constant 8 : i32
    %85 = vector.broadcast %c8_i32_34 : i32 to vector<1x32xi32>
    %86 = arith.cmpi sge, %77, %85 : vector<1x32xi32>
    %c16_i32 = arith.constant 16 : i32
    %87 = vector.broadcast %c16_i32 : i32 to vector<1x32xi32>
    %88 = arith.cmpi slt, %77, %87 : vector<1x32xi32>
    %89 = arith.andi %86, %88 : vector<1x32xi1>
    %90 = arith.extui %89 : vector<1x32xi1> to vector<1x32xi32>
    %91 = arith.sitofp %90 : vector<1x32xi32> to vector<1x32xf32>
    %c16_i32_35 = arith.constant 16 : i32
    %92 = vector.broadcast %c16_i32_35 : i32 to vector<1x32xi32>
    %93 = arith.cmpi sge, %77, %92 : vector<1x32xi32>
    %c24_i32 = arith.constant 24 : i32
    %94 = vector.broadcast %c24_i32 : i32 to vector<1x32xi32>
    %95 = arith.cmpi slt, %77, %94 : vector<1x32xi32>
    %96 = arith.andi %93, %95 : vector<1x32xi1>
    %97 = arith.extui %96 : vector<1x32xi1> to vector<1x32xi32>
    %98 = arith.sitofp %97 : vector<1x32xi32> to vector<1x32xf32>
    %c24_i32_36 = arith.constant 24 : i32
    %99 = vector.broadcast %c24_i32_36 : i32 to vector<1x32xi32>
    %100 = arith.cmpi sge, %77, %99 : vector<1x32xi32>
    %c32_i32 = arith.constant 32 : i32
    %101 = vector.broadcast %c32_i32 : i32 to vector<1x32xi32>
    %102 = arith.cmpi slt, %77, %101 : vector<1x32xi32>
    %103 = arith.andi %100, %102 : vector<1x32xi1>
    %104 = arith.extui %103 : vector<1x32xi1> to vector<1x32xi32>
    %105 = arith.sitofp %104 : vector<1x32xi32> to vector<1x32xf32>
    %106 = vector.broadcast %84 : vector<1x32xf32> to vector<8x32xf32>
    %107 = arith.mulf %66, %106 : vector<8x32xf32>
    %108 = vector.broadcast %91 : vector<1x32xf32> to vector<8x32xf32>
    %109 = arith.mulf %66, %108 : vector<8x32xf32>
    %110 = vector.broadcast %98 : vector<1x32xf32> to vector<8x32xf32>
    %111 = arith.mulf %66, %110 : vector<8x32xf32>
    %112 = vector.broadcast %105 : vector<1x32xf32> to vector<8x32xf32>
    %113 = arith.mulf %66, %112 : vector<8x32xf32>
    %114 = tpu.concatenate %107, %109, %111, %113 in 0 : vector<8x32xf32>, vector<8x32xf32>, vector<8x32xf32>, vector<8x32xf32> -> vector<32x32xf32>
    %115 = vector.extract_strided_slice %71 {offsets = [0, 0], sizes = [16, 32], strides = [1, 1]} : vector<32x32xf32> to vector<16x32xf32>
    %116 = vector.extract_strided_slice %76 {offsets = [0, 0], sizes = [16, 32], strides = [1, 1]} : vector<32x32xf32> to vector<16x32xf32>
    %117 = arith.truncf %114 : vector<32x32xf32> to vector<32x32xbf16>
    %118 = arith.truncf %115 : vector<16x32xf32> to vector<16x32xbf16>
    %cst_37 = arith.constant dense<0.000000e+00> : vector<32x16xf32>
    %119 = tpu.matmul %117, %118, %cst_37 {dimension_numbers = #tpu.dot_dimension_numbers<[1], [1], [0], [0], [0, 0, 1, 0], [], []>} : vector<32x32xbf16>, vector<16x32xbf16>, vector<32x16xf32> -> vector<32x16xf32>
    %cst_38 = arith.constant 0.353553385 : f32
    %120 = vector.broadcast %cst_38 : f32 to vector<32x16xf32>
    %121 = arith.mulf %119, %120 : vector<32x16xf32>
    %122 = vector.extract_strided_slice %3 {offsets = [0, 0], sizes = [1, 16], strides = [1, 1]} : vector<2x16xf32> to vector<1x16xf32>
    %123 = vector.broadcast %122 : vector<1x16xf32> to vector<32x16xf32>
    %124 = arith.addf %121, %123 : vector<32x16xf32>
    %cst_39 = arith.constant dense<0xFF800000> : vector<32xf32>
    %125 = vector.multi_reduction <maximumf>, %124, %cst_39 [1] : vector<32x16xf32> to vector<32xf32>
    %126 = vector.shape_cast %125 : vector<32xf32> to vector<32x1xf32>
    %127 = vector.broadcast %126 : vector<32x1xf32> to vector<32x16xf32>
    %128 = arith.subf %124, %127 : vector<32x16xf32>
    %129 = math.exp %128 : vector<32x16xf32>
    %cst_40 = arith.constant dense<0.000000e+00> : vector<32xf32>
    %130 = vector.multi_reduction <add>, %129, %cst_40 [1] : vector<32x16xf32> to vector<32xf32>
    %131 = vector.shape_cast %130 : vector<32xf32> to vector<32x1xf32>
    %cst_41 = arith.constant 1.000000e-30 : f32
    %132 = vector.broadcast %cst_41 : f32 to vector<32x1xf32>
    %133 = arith.addf %131, %132 : vector<32x1xf32>
    %134 = tpu.reciprocal %133 {approx = true} : vector<32x1xf32> -> vector<32x1xf32>
    %135 = vector.broadcast %134 : vector<32x1xf32> to vector<32x16xf32>
    %136 = arith.mulf %129, %135 : vector<32x16xf32>
    %137 = arith.truncf %136 : vector<32x16xf32> to vector<32x16xbf16>
    %138 = arith.truncf %116 : vector<16x32xf32> to vector<16x32xbf16>
    %cst_42 = arith.constant dense<0.000000e+00> : vector<32x32xf32>
    %139 = tpu.matmul %137, %138, %cst_42 {dimension_numbers = #tpu.dot_dimension_numbers<[1], [0], [0], [1], [0, 0, 1, 1], [], []>} : vector<32x16xbf16>, vector<16x32xbf16>, vector<32x32xf32> -> vector<32x32xf32>
    %140 = vector.extract_strided_slice %139 {offsets = [0, 0], sizes = [8, 32], strides = [1, 1]} : vector<32x32xf32> to vector<8x32xf32>
    %141 = vector.broadcast %84 : vector<1x32xf32> to vector<8x32xf32>
    %142 = arith.mulf %140, %141 : vector<8x32xf32>
    %143 = vector.extract_strided_slice %139 {offsets = [8, 0], sizes = [8, 32], strides = [1, 1]} : vector<32x32xf32> to vector<8x32xf32>
    %144 = vector.broadcast %91 : vector<1x32xf32> to vector<8x32xf32>
    %145 = arith.mulf %143, %144 : vector<8x32xf32>
    %146 = arith.addf %142, %145 : vector<8x32xf32>
    %147 = vector.extract_strided_slice %139 {offsets = [16, 0], sizes = [8, 32], strides = [1, 1]} : vector<32x32xf32> to vector<8x32xf32>
    %148 = vector.broadcast %98 : vector<1x32xf32> to vector<8x32xf32>
    %149 = arith.mulf %147, %148 : vector<8x32xf32>
    %150 = arith.addf %146, %149 : vector<8x32xf32>
    %151 = vector.extract_strided_slice %139 {offsets = [24, 0], sizes = [8, 32], strides = [1, 1]} : vector<32x32xf32> to vector<8x32xf32>
    %152 = vector.broadcast %105 : vector<1x32xf32> to vector<8x32xf32>
    %153 = arith.mulf %151, %152 : vector<8x32xf32>
    %154 = arith.addf %150, %153 : vector<8x32xf32>
    %155 = vector.extract_strided_slice %71 {offsets = [16, 0], sizes = [16, 32], strides = [1, 1]} : vector<32x32xf32> to vector<16x32xf32>
    %156 = vector.extract_strided_slice %76 {offsets = [16, 0], sizes = [16, 32], strides = [1, 1]} : vector<32x32xf32> to vector<16x32xf32>
    %157 = arith.truncf %114 : vector<32x32xf32> to vector<32x32xbf16>
    %158 = arith.truncf %155 : vector<16x32xf32> to vector<16x32xbf16>
    %cst_43 = arith.constant dense<0.000000e+00> : vector<32x16xf32>
    %159 = tpu.matmul %157, %158, %cst_43 {dimension_numbers = #tpu.dot_dimension_numbers<[1], [1], [0], [0], [0, 0, 1, 0], [], []>} : vector<32x32xbf16>, vector<16x32xbf16>, vector<32x16xf32> -> vector<32x16xf32>
    %cst_44 = arith.constant 0.353553385 : f32
    %160 = vector.broadcast %cst_44 : f32 to vector<32x16xf32>
    %161 = arith.mulf %159, %160 : vector<32x16xf32>
    %162 = vector.extract_strided_slice %3 {offsets = [1, 0], sizes = [1, 16], strides = [1, 1]} : vector<2x16xf32> to vector<1x16xf32>
    %163 = vector.broadcast %162 : vector<1x16xf32> to vector<32x16xf32>
    %164 = arith.addf %161, %163 : vector<32x16xf32>
    %cst_45 = arith.constant dense<0xFF800000> : vector<32xf32>
    %165 = vector.multi_reduction <maximumf>, %164, %cst_45 [1] : vector<32x16xf32> to vector<32xf32>
    %166 = vector.shape_cast %165 : vector<32xf32> to vector<32x1xf32>
    %167 = vector.broadcast %166 : vector<32x1xf32> to vector<32x16xf32>
    %168 = arith.subf %164, %167 : vector<32x16xf32>
    %169 = math.exp %168 : vector<32x16xf32>
    %cst_46 = arith.constant dense<0.000000e+00> : vector<32xf32>
    %170 = vector.multi_reduction <add>, %169, %cst_46 [1] : vector<32x16xf32> to vector<32xf32>
    %171 = vector.shape_cast %170 : vector<32xf32> to vector<32x1xf32>
    %cst_47 = arith.constant 1.000000e-30 : f32
    %172 = vector.broadcast %cst_47 : f32 to vector<32x1xf32>
    %173 = arith.addf %171, %172 : vector<32x1xf32>
    %174 = tpu.reciprocal %173 {approx = true} : vector<32x1xf32> -> vector<32x1xf32>
    %175 = vector.broadcast %174 : vector<32x1xf32> to vector<32x16xf32>
    %176 = arith.mulf %169, %175 : vector<32x16xf32>
    %177 = arith.truncf %176 : vector<32x16xf32> to vector<32x16xbf16>
    %178 = arith.truncf %156 : vector<16x32xf32> to vector<16x32xbf16>
    %cst_48 = arith.constant dense<0.000000e+00> : vector<32x32xf32>
    %179 = tpu.matmul %177, %178, %cst_48 {dimension_numbers = #tpu.dot_dimension_numbers<[1], [0], [0], [1], [0, 0, 1, 1], [], []>} : vector<32x16xbf16>, vector<16x32xbf16>, vector<32x32xf32> -> vector<32x32xf32>
    %180 = vector.extract_strided_slice %179 {offsets = [0, 0], sizes = [8, 32], strides = [1, 1]} : vector<32x32xf32> to vector<8x32xf32>
    %181 = vector.broadcast %84 : vector<1x32xf32> to vector<8x32xf32>
    %182 = arith.mulf %180, %181 : vector<8x32xf32>
    %183 = vector.extract_strided_slice %179 {offsets = [8, 0], sizes = [8, 32], strides = [1, 1]} : vector<32x32xf32> to vector<8x32xf32>
    %184 = vector.broadcast %91 : vector<1x32xf32> to vector<8x32xf32>
    %185 = arith.mulf %183, %184 : vector<8x32xf32>
    %186 = arith.addf %182, %185 : vector<8x32xf32>
    %187 = vector.extract_strided_slice %179 {offsets = [16, 0], sizes = [8, 32], strides = [1, 1]} : vector<32x32xf32> to vector<8x32xf32>
    %188 = vector.broadcast %98 : vector<1x32xf32> to vector<8x32xf32>
    %189 = arith.mulf %187, %188 : vector<8x32xf32>
    %190 = arith.addf %186, %189 : vector<8x32xf32>
    %191 = vector.extract_strided_slice %179 {offsets = [24, 0], sizes = [8, 32], strides = [1, 1]} : vector<32x32xf32> to vector<8x32xf32>
    %192 = vector.broadcast %105 : vector<1x32xf32> to vector<8x32xf32>
    %193 = arith.mulf %191, %192 : vector<8x32xf32>
    %194 = arith.addf %190, %193 : vector<8x32xf32>
    %195 = tpu.concatenate %154, %194 in 0 : vector<8x32xf32>, vector<8x32xf32> -> vector<16x32xf32>
    %196 = tpu.concatenate %4, %4 in 0 : vector<8x32xf32>, vector<8x32xf32> -> vector<16x32xf32>
    %197 = vector.extract_strided_slice %5 {offsets = [7, 0], sizes = [1, 32], strides = [1, 1]} : vector<14x32xf32> to vector<1x32xf32>
    %198 = arith.truncf %195 : vector<16x32xf32> to vector<16x32xbf16>
    %cst_49 = arith.constant dense<0.000000e+00> : vector<16x32xf32>
    %199 = tpu.matmul %198, %13, %cst_49 {dimension_numbers = #tpu.dot_dimension_numbers<[1], [1], [0], [0], [0, 0, 1, 0], [], []>} : vector<16x32xbf16>, vector<32x32xbf16>, vector<16x32xf32> -> vector<16x32xf32>
    %200 = vector.broadcast %197 : vector<1x32xf32> to vector<16x32xf32>
    %201 = arith.addf %199, %200 : vector<16x32xf32>
    %202 = arith.addf %201, %196 : vector<16x32xf32>
    %203 = vector.extract_strided_slice %5 {offsets = [8, 0], sizes = [1, 32], strides = [1, 1]} : vector<14x32xf32> to vector<1x32xf32>
    %204 = vector.extract_strided_slice %5 {offsets = [9, 0], sizes = [1, 32], strides = [1, 1]} : vector<14x32xf32> to vector<1x32xf32>
    %cst_50 = arith.constant dense<0.000000e+00> : vector<16xf32>
    %205 = vector.multi_reduction <add>, %202, %cst_50 [1] : vector<16x32xf32> to vector<16xf32>
    %206 = vector.shape_cast %205 : vector<16xf32> to vector<16x1xf32>
    %cst_51 = arith.constant 3.200000e+01 : f32
    %207 = vector.broadcast %cst_51 : f32 to vector<16x1xf32>
    %208 = arith.divf %206, %207 : vector<16x1xf32>
    %209 = vector.broadcast %208 : vector<16x1xf32> to vector<16x32xf32>
    %210 = arith.subf %202, %209 : vector<16x32xf32>
    %211 = arith.mulf %210, %210 : vector<16x32xf32>
    %cst_52 = arith.constant dense<0.000000e+00> : vector<16xf32>
    %212 = vector.multi_reduction <add>, %211, %cst_52 [1] : vector<16x32xf32> to vector<16xf32>
    %213 = vector.shape_cast %212 : vector<16xf32> to vector<16x1xf32>
    %cst_53 = arith.constant 3.200000e+01 : f32
    %214 = vector.broadcast %cst_53 : f32 to vector<16x1xf32>
    %215 = arith.divf %213, %214 : vector<16x1xf32>
    %cst_54 = arith.constant 9.99999974E-6 : f32
    %216 = vector.broadcast %cst_54 : f32 to vector<16x1xf32>
    %217 = arith.addf %215, %216 : vector<16x1xf32>
    %218 = math.rsqrt %217 : vector<16x1xf32>
    %219 = vector.broadcast %218 : vector<16x1xf32> to vector<16x32xf32>
    %220 = arith.mulf %210, %219 : vector<16x32xf32>
    %221 = vector.broadcast %203 : vector<1x32xf32> to vector<16x32xf32>
    %222 = arith.mulf %220, %221 : vector<16x32xf32>
    %223 = vector.broadcast %204 : vector<1x32xf32> to vector<16x32xf32>
    %224 = arith.addf %222, %223 : vector<16x32xf32>
    %225 = vector.extract_strided_slice %5 {offsets = [10, 0], sizes = [1, 32], strides = [1, 1]} : vector<14x32xf32> to vector<1x32xf32>
    %226 = arith.truncf %224 : vector<16x32xf32> to vector<16x32xbf16>
    %cst_55 = arith.constant dense<0.000000e+00> : vector<16x32xf32>
    %227 = tpu.matmul %226, %15, %cst_55 {dimension_numbers = #tpu.dot_dimension_numbers<[1], [1], [0], [0], [0, 0, 1, 0], [], []>} : vector<16x32xbf16>, vector<32x32xbf16>, vector<16x32xf32> -> vector<16x32xf32>
    %228 = vector.broadcast %225 : vector<1x32xf32> to vector<16x32xf32>
    %229 = arith.addf %227, %228 : vector<16x32xf32>
    %cst_56 = arith.constant 5.000000e-01 : f32
    %230 = vector.broadcast %cst_56 : f32 to vector<16x32xf32>
    %231 = arith.mulf %230, %229 : vector<16x32xf32>
    %cst_57 = arith.constant 4.471500e-02 : f32
    %232 = vector.broadcast %cst_57 : f32 to vector<16x32xf32>
    %233 = arith.mulf %232, %229 : vector<16x32xf32>
    %234 = arith.mulf %233, %229 : vector<16x32xf32>
    %235 = arith.mulf %234, %229 : vector<16x32xf32>
    %236 = arith.addf %229, %235 : vector<16x32xf32>
    %cst_58 = arith.constant 0.797884583 : f32
    %237 = vector.broadcast %cst_58 : f32 to vector<16x32xf32>
    %238 = arith.mulf %237, %236 : vector<16x32xf32>
    %239 = math.tanh %238 : vector<16x32xf32>
    %cst_59 = arith.constant 1.000000e+00 : f32
    %240 = vector.broadcast %cst_59 : f32 to vector<16x32xf32>
    %241 = arith.addf %240, %239 : vector<16x32xf32>
    %242 = arith.mulf %231, %241 : vector<16x32xf32>
    %243 = vector.extract_strided_slice %5 {offsets = [11, 0], sizes = [1, 32], strides = [1, 1]} : vector<14x32xf32> to vector<1x32xf32>
    %244 = arith.truncf %242 : vector<16x32xf32> to vector<16x32xbf16>
    %cst_60 = arith.constant dense<0.000000e+00> : vector<16x32xf32>
    %245 = tpu.matmul %244, %17, %cst_60 {dimension_numbers = #tpu.dot_dimension_numbers<[1], [1], [0], [0], [0, 0, 1, 0], [], []>} : vector<16x32xbf16>, vector<32x32xbf16>, vector<16x32xf32> -> vector<16x32xf32>
    %246 = vector.broadcast %243 : vector<1x32xf32> to vector<16x32xf32>
    %247 = arith.addf %245, %246 : vector<16x32xf32>
    %248 = arith.addf %247, %202 : vector<16x32xf32>
    %c0_61 = arith.constant 0 : index
    %c0_62 = arith.constant 0 : index
    %c0_63 = arith.constant 0 : index
    %249 = vector.load %arg6[%c0_61, %c0_62, %c0_63] : memref<2x7x32xf32, #tpu.memory_space<vmem>>, vector<2x7x32xf32>
    %250 = vector.extract_strided_slice %249 {offsets = [0, 0, 0], sizes = [1, 1, 32], strides = [1, 1, 1]} : vector<2x7x32xf32> to vector<1x1x32xf32>
    %251 = vector.shape_cast %250 : vector<1x1x32xf32> to vector<1x32xf32>
    %252 = vector.extract_strided_slice %249 {offsets = [0, 1, 0], sizes = [1, 1, 32], strides = [1, 1, 1]} : vector<2x7x32xf32> to vector<1x1x32xf32>
    %253 = vector.shape_cast %252 : vector<1x1x32xf32> to vector<1x32xf32>
    %254 = vector.extract_strided_slice %249 {offsets = [0, 2, 0], sizes = [1, 1, 32], strides = [1, 1, 1]} : vector<2x7x32xf32> to vector<1x1x32xf32>
    %255 = vector.shape_cast %254 : vector<1x1x32xf32> to vector<1x32xf32>
    %256 = vector.extract_strided_slice %249 {offsets = [0, 3, 0], sizes = [1, 1, 32], strides = [1, 1, 1]} : vector<2x7x32xf32> to vector<1x1x32xf32>
    %257 = vector.shape_cast %256 : vector<1x1x32xf32> to vector<1x32xf32>
    %258 = vector.extract_strided_slice %249 {offsets = [0, 4, 0], sizes = [1, 1, 32], strides = [1, 1, 1]} : vector<2x7x32xf32> to vector<1x1x32xf32>
    %259 = vector.shape_cast %258 : vector<1x1x32xf32> to vector<1x32xf32>
    %260 = vector.extract_strided_slice %249 {offsets = [0, 5, 0], sizes = [1, 1, 32], strides = [1, 1, 1]} : vector<2x7x32xf32> to vector<1x1x32xf32>
    %261 = vector.shape_cast %260 : vector<1x1x32xf32> to vector<1x32xf32>
    %262 = vector.extract_strided_slice %249 {offsets = [0, 6, 0], sizes = [1, 1, 32], strides = [1, 1, 1]} : vector<2x7x32xf32> to vector<1x1x32xf32>
    %263 = vector.shape_cast %262 : vector<1x1x32xf32> to vector<1x32xf32>
    %c0_64 = arith.constant 0 : index
    %c0_65 = arith.constant 0 : index
    %c0_66 = arith.constant 0 : index
    %c0_67 = arith.constant 0 : index
    %264 = vector.load %arg7[%c0_64, %c0_65, %c0_66, %c0_67] : memref<2x3x32x32xbf16, #tpu.memory_space<vmem>>, vector<1x3x32x32xbf16>
    %265 = vector.shape_cast %264 : vector<1x3x32x32xbf16> to vector<3x32x32xbf16>
    %cst_68 = arith.constant dense<0.000000e+00> : vector<16xf32>
    %266 = vector.multi_reduction <add>, %248, %cst_68 [1] : vector<16x32xf32> to vector<16xf32>
    %267 = vector.shape_cast %266 : vector<16xf32> to vector<16x1xf32>
    %cst_69 = arith.constant 3.200000e+01 : f32
    %268 = vector.broadcast %cst_69 : f32 to vector<16x1xf32>
    %269 = arith.divf %267, %268 : vector<16x1xf32>
    %270 = vector.broadcast %269 : vector<16x1xf32> to vector<16x32xf32>
    %271 = arith.subf %248, %270 : vector<16x32xf32>
    %272 = arith.mulf %271, %271 : vector<16x32xf32>
    %cst_70 = arith.constant dense<0.000000e+00> : vector<16xf32>
    %273 = vector.multi_reduction <add>, %272, %cst_70 [1] : vector<16x32xf32> to vector<16xf32>
    %274 = vector.shape_cast %273 : vector<16xf32> to vector<16x1xf32>
    %cst_71 = arith.constant 3.200000e+01 : f32
    %275 = vector.broadcast %cst_71 : f32 to vector<16x1xf32>
    %276 = arith.divf %274, %275 : vector<16x1xf32>
    %cst_72 = arith.constant 9.99999974E-6 : f32
    %277 = vector.broadcast %cst_72 : f32 to vector<16x1xf32>
    %278 = arith.addf %276, %277 : vector<16x1xf32>
    %279 = math.rsqrt %278 : vector<16x1xf32>
    %280 = vector.broadcast %279 : vector<16x1xf32> to vector<16x32xf32>
    %281 = arith.mulf %271, %280 : vector<16x32xf32>
    %282 = vector.broadcast %251 : vector<1x32xf32> to vector<16x32xf32>
    %283 = arith.mulf %281, %282 : vector<16x32xf32>
    %284 = vector.broadcast %253 : vector<1x32xf32> to vector<16x32xf32>
    %285 = arith.addf %283, %284 : vector<16x32xf32>
    %286 = vector.extract_strided_slice %265 {offsets = [0, 0, 0], sizes = [1, 32, 32], strides = [1, 1, 1]} : vector<3x32x32xbf16> to vector<1x32x32xbf16>
    %287 = vector.shape_cast %286 : vector<1x32x32xbf16> to vector<32x32xbf16>
    %288 = arith.truncf %285 : vector<16x32xf32> to vector<16x32xbf16>
    %cst_73 = arith.constant dense<0.000000e+00> : vector<16x32xf32>
    %289 = tpu.matmul %288, %287, %cst_73 {dimension_numbers = #tpu.dot_dimension_numbers<[1], [1], [0], [0], [0, 0, 1, 0], [], []>} : vector<16x32xbf16>, vector<32x32xbf16>, vector<16x32xf32> -> vector<16x32xf32>
    %290 = vector.broadcast %255 : vector<1x32xf32> to vector<16x32xf32>
    %291 = arith.addf %289, %290 : vector<16x32xf32>
    %cst_74 = arith.constant 5.000000e-01 : f32
    %292 = vector.broadcast %cst_74 : f32 to vector<16x32xf32>
    %293 = arith.mulf %292, %291 : vector<16x32xf32>
    %cst_75 = arith.constant 4.471500e-02 : f32
    %294 = vector.broadcast %cst_75 : f32 to vector<16x32xf32>
    %295 = arith.mulf %294, %291 : vector<16x32xf32>
    %296 = arith.mulf %295, %291 : vector<16x32xf32>
    %297 = arith.mulf %296, %291 : vector<16x32xf32>
    %298 = arith.addf %291, %297 : vector<16x32xf32>
    %cst_76 = arith.constant 0.797884583 : f32
    %299 = vector.broadcast %cst_76 : f32 to vector<16x32xf32>
    %300 = arith.mulf %299, %298 : vector<16x32xf32>
    %301 = math.tanh %300 : vector<16x32xf32>
    %cst_77 = arith.constant 1.000000e+00 : f32
    %302 = vector.broadcast %cst_77 : f32 to vector<16x32xf32>
    %303 = arith.addf %302, %301 : vector<16x32xf32>
    %304 = arith.mulf %293, %303 : vector<16x32xf32>
    %305 = vector.extract_strided_slice %265 {offsets = [1, 0, 0], sizes = [1, 32, 32], strides = [1, 1, 1]} : vector<3x32x32xbf16> to vector<1x32x32xbf16>
    %306 = vector.shape_cast %305 : vector<1x32x32xbf16> to vector<32x32xbf16>
    %307 = arith.truncf %285 : vector<16x32xf32> to vector<16x32xbf16>
    %cst_78 = arith.constant dense<0.000000e+00> : vector<16x32xf32>
    %308 = tpu.matmul %307, %306, %cst_78 {dimension_numbers = #tpu.dot_dimension_numbers<[1], [1], [0], [0], [0, 0, 1, 0], [], []>} : vector<16x32xbf16>, vector<32x32xbf16>, vector<16x32xf32> -> vector<16x32xf32>
    %309 = vector.broadcast %257 : vector<1x32xf32> to vector<16x32xf32>
    %310 = arith.addf %308, %309 : vector<16x32xf32>
    %cst_79 = arith.constant 5.000000e-01 : f32
    %311 = vector.broadcast %cst_79 : f32 to vector<16x32xf32>
    %312 = arith.mulf %311, %310 : vector<16x32xf32>
    %cst_80 = arith.constant 4.471500e-02 : f32
    %313 = vector.broadcast %cst_80 : f32 to vector<16x32xf32>
    %314 = arith.mulf %313, %310 : vector<16x32xf32>
    %315 = arith.mulf %314, %310 : vector<16x32xf32>
    %316 = arith.mulf %315, %310 : vector<16x32xf32>
    %317 = arith.addf %310, %316 : vector<16x32xf32>
    %cst_81 = arith.constant 0.797884583 : f32
    %318 = vector.broadcast %cst_81 : f32 to vector<16x32xf32>
    %319 = arith.mulf %318, %317 : vector<16x32xf32>
    %320 = math.tanh %319 : vector<16x32xf32>
    %cst_82 = arith.constant 1.000000e+00 : f32
    %321 = vector.broadcast %cst_82 : f32 to vector<16x32xf32>
    %322 = arith.addf %321, %320 : vector<16x32xf32>
    %323 = arith.mulf %312, %322 : vector<16x32xf32>
    %cst_83 = arith.constant dense<0.000000e+00> : vector<16xf32>
    %324 = vector.multi_reduction <add>, %323, %cst_83 [1] : vector<16x32xf32> to vector<16xf32>
    %325 = vector.shape_cast %324 : vector<16xf32> to vector<16x1xf32>
    %cst_84 = arith.constant 3.200000e+01 : f32
    %326 = vector.broadcast %cst_84 : f32 to vector<16x1xf32>
    %327 = arith.divf %325, %326 : vector<16x1xf32>
    %328 = vector.broadcast %327 : vector<16x1xf32> to vector<16x32xf32>
    %329 = arith.subf %323, %328 : vector<16x32xf32>
    %330 = arith.mulf %329, %329 : vector<16x32xf32>
    %cst_85 = arith.constant dense<0.000000e+00> : vector<16xf32>
    %331 = vector.multi_reduction <add>, %330, %cst_85 [1] : vector<16x32xf32> to vector<16xf32>
    %332 = vector.shape_cast %331 : vector<16xf32> to vector<16x1xf32>
    %cst_86 = arith.constant 3.200000e+01 : f32
    %333 = vector.broadcast %cst_86 : f32 to vector<16x1xf32>
    %334 = arith.divf %332, %333 : vector<16x1xf32>
    %cst_87 = arith.constant 9.99999974E-6 : f32
    %335 = vector.broadcast %cst_87 : f32 to vector<16x1xf32>
    %336 = arith.addf %334, %335 : vector<16x1xf32>
    %337 = math.rsqrt %336 : vector<16x1xf32>
    %338 = vector.broadcast %337 : vector<16x1xf32> to vector<16x32xf32>
    %339 = arith.mulf %329, %338 : vector<16x32xf32>
    %340 = vector.broadcast %259 : vector<1x32xf32> to vector<16x32xf32>
    %341 = arith.mulf %339, %340 : vector<16x32xf32>
    %342 = vector.broadcast %261 : vector<1x32xf32> to vector<16x32xf32>
    %343 = arith.addf %341, %342 : vector<16x32xf32>
    %c0_88 = arith.constant 0 : index
    %c0_89 = arith.constant 0 : index
    %c0_90 = arith.constant 0 : index
    %344 = vector.load %arg8[%c0_88, %c0_89, %c0_90] : memref<2x16x16xbf16, #tpu.memory_space<vmem>>, vector<1x16x16xbf16>
    %345 = vector.shape_cast %344 : vector<1x16x16xbf16> to vector<16x16xbf16>
    %346 = arith.truncf %343 : vector<16x32xf32> to vector<16x32xbf16>
    %cst_91 = arith.constant dense<0.000000e+00> : vector<16x32xf32>
    %347 = tpu.matmul %345, %346, %cst_91 {dimension_numbers = #tpu.dot_dimension_numbers<[1], [0], [0], [1], [0, 0, 1, 1], [], []>} : vector<16x16xbf16>, vector<16x32xbf16>, vector<16x32xf32> -> vector<16x32xf32>
    %c0_92 = arith.constant 0 : index
    %c0_93 = arith.constant 0 : index
    %c0_94 = arith.constant 0 : index
    %348 = vector.load %arg9[%c0_92, %c0_93, %c0_94] : memref<2x16x1xf32, #tpu.memory_space<vmem>>, vector<1x16x1xf32>
    %349 = vector.shape_cast %348 : vector<1x16x1xf32> to vector<16x1xf32>
    %350 = vector.broadcast %349 : vector<16x1xf32> to vector<16x32xf32>
    %351 = arith.addf %347, %350 : vector<16x32xf32>
    %352 = arith.mulf %304, %351 : vector<16x32xf32>
    %353 = vector.extract_strided_slice %265 {offsets = [2, 0, 0], sizes = [1, 32, 32], strides = [1, 1, 1]} : vector<3x32x32xbf16> to vector<1x32x32xbf16>
    %354 = vector.shape_cast %353 : vector<1x32x32xbf16> to vector<32x32xbf16>
    %355 = arith.truncf %352 : vector<16x32xf32> to vector<16x32xbf16>
    %cst_95 = arith.constant dense<0.000000e+00> : vector<16x32xf32>
    %356 = tpu.matmul %355, %354, %cst_95 {dimension_numbers = #tpu.dot_dimension_numbers<[1], [1], [0], [0], [0, 0, 1, 0], [], []>} : vector<16x32xbf16>, vector<32x32xbf16>, vector<16x32xf32> -> vector<16x32xf32>
    %357 = vector.broadcast %263 : vector<1x32xf32> to vector<16x32xf32>
    %358 = arith.addf %356, %357 : vector<16x32xf32>
    %359 = arith.addf %358, %248 : vector<16x32xf32>
    %360 = vector.extract_strided_slice %249 {offsets = [1, 0, 0], sizes = [1, 1, 32], strides = [1, 1, 1]} : vector<2x7x32xf32> to vector<1x1x32xf32>
    %361 = vector.shape_cast %360 : vector<1x1x32xf32> to vector<1x32xf32>
    %362 = vector.extract_strided_slice %249 {offsets = [1, 1, 0], sizes = [1, 1, 32], strides = [1, 1, 1]} : vector<2x7x32xf32> to vector<1x1x32xf32>
    %363 = vector.shape_cast %362 : vector<1x1x32xf32> to vector<1x32xf32>
    %364 = vector.extract_strided_slice %249 {offsets = [1, 2, 0], sizes = [1, 1, 32], strides = [1, 1, 1]} : vector<2x7x32xf32> to vector<1x1x32xf32>
    %365 = vector.shape_cast %364 : vector<1x1x32xf32> to vector<1x32xf32>
    %366 = vector.extract_strided_slice %249 {offsets = [1, 3, 0], sizes = [1, 1, 32], strides = [1, 1, 1]} : vector<2x7x32xf32> to vector<1x1x32xf32>
    %367 = vector.shape_cast %366 : vector<1x1x32xf32> to vector<1x32xf32>
    %368 = vector.extract_strided_slice %249 {offsets = [1, 4, 0], sizes = [1, 1, 32], strides = [1, 1, 1]} : vector<2x7x32xf32> to vector<1x1x32xf32>
    %369 = vector.shape_cast %368 : vector<1x1x32xf32> to vector<1x32xf32>
    %370 = vector.extract_strided_slice %249 {offsets = [1, 5, 0], sizes = [1, 1, 32], strides = [1, 1, 1]} : vector<2x7x32xf32> to vector<1x1x32xf32>
    %371 = vector.shape_cast %370 : vector<1x1x32xf32> to vector<1x32xf32>
    %372 = vector.extract_strided_slice %249 {offsets = [1, 6, 0], sizes = [1, 1, 32], strides = [1, 1, 1]} : vector<2x7x32xf32> to vector<1x1x32xf32>
    %373 = vector.shape_cast %372 : vector<1x1x32xf32> to vector<1x32xf32>
    %c1_96 = arith.constant 1 : index
    %c0_97 = arith.constant 0 : index
    %c0_98 = arith.constant 0 : index
    %c0_99 = arith.constant 0 : index
    %374 = vector.load %arg7[%c1_96, %c0_97, %c0_98, %c0_99] : memref<2x3x32x32xbf16, #tpu.memory_space<vmem>>, vector<1x3x32x32xbf16>
    %375 = vector.shape_cast %374 : vector<1x3x32x32xbf16> to vector<3x32x32xbf16>
    %cst_100 = arith.constant dense<0.000000e+00> : vector<16xf32>
    %376 = vector.multi_reduction <add>, %359, %cst_100 [1] : vector<16x32xf32> to vector<16xf32>
    %377 = vector.shape_cast %376 : vector<16xf32> to vector<16x1xf32>
    %cst_101 = arith.constant 3.200000e+01 : f32
    %378 = vector.broadcast %cst_101 : f32 to vector<16x1xf32>
    %379 = arith.divf %377, %378 : vector<16x1xf32>
    %380 = vector.broadcast %379 : vector<16x1xf32> to vector<16x32xf32>
    %381 = arith.subf %359, %380 : vector<16x32xf32>
    %382 = arith.mulf %381, %381 : vector<16x32xf32>
    %cst_102 = arith.constant dense<0.000000e+00> : vector<16xf32>
    %383 = vector.multi_reduction <add>, %382, %cst_102 [1] : vector<16x32xf32> to vector<16xf32>
    %384 = vector.shape_cast %383 : vector<16xf32> to vector<16x1xf32>
    %cst_103 = arith.constant 3.200000e+01 : f32
    %385 = vector.broadcast %cst_103 : f32 to vector<16x1xf32>
    %386 = arith.divf %384, %385 : vector<16x1xf32>
    %cst_104 = arith.constant 9.99999974E-6 : f32
    %387 = vector.broadcast %cst_104 : f32 to vector<16x1xf32>
    %388 = arith.addf %386, %387 : vector<16x1xf32>
    %389 = math.rsqrt %388 : vector<16x1xf32>
    %390 = vector.broadcast %389 : vector<16x1xf32> to vector<16x32xf32>
    %391 = arith.mulf %381, %390 : vector<16x32xf32>
    %392 = vector.broadcast %361 : vector<1x32xf32> to vector<16x32xf32>
    %393 = arith.mulf %391, %392 : vector<16x32xf32>
    %394 = vector.broadcast %363 : vector<1x32xf32> to vector<16x32xf32>
    %395 = arith.addf %393, %394 : vector<16x32xf32>
    %396 = vector.extract_strided_slice %375 {offsets = [0, 0, 0], sizes = [1, 32, 32], strides = [1, 1, 1]} : vector<3x32x32xbf16> to vector<1x32x32xbf16>
    %397 = vector.shape_cast %396 : vector<1x32x32xbf16> to vector<32x32xbf16>
    %398 = arith.truncf %395 : vector<16x32xf32> to vector<16x32xbf16>
    %cst_105 = arith.constant dense<0.000000e+00> : vector<16x32xf32>
    %399 = tpu.matmul %398, %397, %cst_105 {dimension_numbers = #tpu.dot_dimension_numbers<[1], [1], [0], [0], [0, 0, 1, 0], [], []>} : vector<16x32xbf16>, vector<32x32xbf16>, vector<16x32xf32> -> vector<16x32xf32>
    %400 = vector.broadcast %365 : vector<1x32xf32> to vector<16x32xf32>
    %401 = arith.addf %399, %400 : vector<16x32xf32>
    %cst_106 = arith.constant 5.000000e-01 : f32
    %402 = vector.broadcast %cst_106 : f32 to vector<16x32xf32>
    %403 = arith.mulf %402, %401 : vector<16x32xf32>
    %cst_107 = arith.constant 4.471500e-02 : f32
    %404 = vector.broadcast %cst_107 : f32 to vector<16x32xf32>
    %405 = arith.mulf %404, %401 : vector<16x32xf32>
    %406 = arith.mulf %405, %401 : vector<16x32xf32>
    %407 = arith.mulf %406, %401 : vector<16x32xf32>
    %408 = arith.addf %401, %407 : vector<16x32xf32>
    %cst_108 = arith.constant 0.797884583 : f32
    %409 = vector.broadcast %cst_108 : f32 to vector<16x32xf32>
    %410 = arith.mulf %409, %408 : vector<16x32xf32>
    %411 = math.tanh %410 : vector<16x32xf32>
    %cst_109 = arith.constant 1.000000e+00 : f32
    %412 = vector.broadcast %cst_109 : f32 to vector<16x32xf32>
    %413 = arith.addf %412, %411 : vector<16x32xf32>
    %414 = arith.mulf %403, %413 : vector<16x32xf32>
    %415 = vector.extract_strided_slice %375 {offsets = [1, 0, 0], sizes = [1, 32, 32], strides = [1, 1, 1]} : vector<3x32x32xbf16> to vector<1x32x32xbf16>
    %416 = vector.shape_cast %415 : vector<1x32x32xbf16> to vector<32x32xbf16>
    %417 = arith.truncf %395 : vector<16x32xf32> to vector<16x32xbf16>
    %cst_110 = arith.constant dense<0.000000e+00> : vector<16x32xf32>
    %418 = tpu.matmul %417, %416, %cst_110 {dimension_numbers = #tpu.dot_dimension_numbers<[1], [1], [0], [0], [0, 0, 1, 0], [], []>} : vector<16x32xbf16>, vector<32x32xbf16>, vector<16x32xf32> -> vector<16x32xf32>
    %419 = vector.broadcast %367 : vector<1x32xf32> to vector<16x32xf32>
    %420 = arith.addf %418, %419 : vector<16x32xf32>
    %cst_111 = arith.constant 5.000000e-01 : f32
    %421 = vector.broadcast %cst_111 : f32 to vector<16x32xf32>
    %422 = arith.mulf %421, %420 : vector<16x32xf32>
    %cst_112 = arith.constant 4.471500e-02 : f32
    %423 = vector.broadcast %cst_112 : f32 to vector<16x32xf32>
    %424 = arith.mulf %423, %420 : vector<16x32xf32>
    %425 = arith.mulf %424, %420 : vector<16x32xf32>
    %426 = arith.mulf %425, %420 : vector<16x32xf32>
    %427 = arith.addf %420, %426 : vector<16x32xf32>
    %cst_113 = arith.constant 0.797884583 : f32
    %428 = vector.broadcast %cst_113 : f32 to vector<16x32xf32>
    %429 = arith.mulf %428, %427 : vector<16x32xf32>
    %430 = math.tanh %429 : vector<16x32xf32>
    %cst_114 = arith.constant 1.000000e+00 : f32
    %431 = vector.broadcast %cst_114 : f32 to vector<16x32xf32>
    %432 = arith.addf %431, %430 : vector<16x32xf32>
    %433 = arith.mulf %422, %432 : vector<16x32xf32>
    %cst_115 = arith.constant dense<0.000000e+00> : vector<16xf32>
    %434 = vector.multi_reduction <add>, %433, %cst_115 [1] : vector<16x32xf32> to vector<16xf32>
    %435 = vector.shape_cast %434 : vector<16xf32> to vector<16x1xf32>
    %cst_116 = arith.constant 3.200000e+01 : f32
    %436 = vector.broadcast %cst_116 : f32 to vector<16x1xf32>
    %437 = arith.divf %435, %436 : vector<16x1xf32>
    %438 = vector.broadcast %437 : vector<16x1xf32> to vector<16x32xf32>
    %439 = arith.subf %433, %438 : vector<16x32xf32>
    %440 = arith.mulf %439, %439 : vector<16x32xf32>
    %cst_117 = arith.constant dense<0.000000e+00> : vector<16xf32>
    %441 = vector.multi_reduction <add>, %440, %cst_117 [1] : vector<16x32xf32> to vector<16xf32>
    %442 = vector.shape_cast %441 : vector<16xf32> to vector<16x1xf32>
    %cst_118 = arith.constant 3.200000e+01 : f32
    %443 = vector.broadcast %cst_118 : f32 to vector<16x1xf32>
    %444 = arith.divf %442, %443 : vector<16x1xf32>
    %cst_119 = arith.constant 9.99999974E-6 : f32
    %445 = vector.broadcast %cst_119 : f32 to vector<16x1xf32>
    %446 = arith.addf %444, %445 : vector<16x1xf32>
    %447 = math.rsqrt %446 : vector<16x1xf32>
    %448 = vector.broadcast %447 : vector<16x1xf32> to vector<16x32xf32>
    %449 = arith.mulf %439, %448 : vector<16x32xf32>
    %450 = vector.broadcast %369 : vector<1x32xf32> to vector<16x32xf32>
    %451 = arith.mulf %449, %450 : vector<16x32xf32>
    %452 = vector.broadcast %371 : vector<1x32xf32> to vector<16x32xf32>
    %453 = arith.addf %451, %452 : vector<16x32xf32>
    %c1_120 = arith.constant 1 : index
    %c0_121 = arith.constant 0 : index
    %c0_122 = arith.constant 0 : index
    %454 = vector.load %arg8[%c1_120, %c0_121, %c0_122] : memref<2x16x16xbf16, #tpu.memory_space<vmem>>, vector<1x16x16xbf16>
    %455 = vector.shape_cast %454 : vector<1x16x16xbf16> to vector<16x16xbf16>
    %456 = arith.truncf %453 : vector<16x32xf32> to vector<16x32xbf16>
    %cst_123 = arith.constant dense<0.000000e+00> : vector<16x32xf32>
    %457 = tpu.matmul %455, %456, %cst_123 {dimension_numbers = #tpu.dot_dimension_numbers<[1], [0], [0], [1], [0, 0, 1, 1], [], []>} : vector<16x16xbf16>, vector<16x32xbf16>, vector<16x32xf32> -> vector<16x32xf32>
    %c1_124 = arith.constant 1 : index
    %c0_125 = arith.constant 0 : index
    %c0_126 = arith.constant 0 : index
    %458 = vector.load %arg9[%c1_124, %c0_125, %c0_126] : memref<2x16x1xf32, #tpu.memory_space<vmem>>, vector<1x16x1xf32>
    %459 = vector.shape_cast %458 : vector<1x16x1xf32> to vector<16x1xf32>
    %460 = vector.broadcast %459 : vector<16x1xf32> to vector<16x32xf32>
    %461 = arith.addf %457, %460 : vector<16x32xf32>
    %462 = arith.mulf %414, %461 : vector<16x32xf32>
    %463 = vector.extract_strided_slice %375 {offsets = [2, 0, 0], sizes = [1, 32, 32], strides = [1, 1, 1]} : vector<3x32x32xbf16> to vector<1x32x32xbf16>
    %464 = vector.shape_cast %463 : vector<1x32x32xbf16> to vector<32x32xbf16>
    %465 = arith.truncf %462 : vector<16x32xf32> to vector<16x32xbf16>
    %cst_127 = arith.constant dense<0.000000e+00> : vector<16x32xf32>
    %466 = tpu.matmul %465, %464, %cst_127 {dimension_numbers = #tpu.dot_dimension_numbers<[1], [1], [0], [0], [0, 0, 1, 0], [], []>} : vector<16x32xbf16>, vector<32x32xbf16>, vector<16x32xf32> -> vector<16x32xf32>
    %467 = vector.broadcast %373 : vector<1x32xf32> to vector<16x32xf32>
    %468 = arith.addf %466, %467 : vector<16x32xf32>
    %469 = arith.addf %468, %359 : vector<16x32xf32>
    %c0_128 = arith.constant 0 : index
    %c0_129 = arith.constant 0 : index
    %470 = vector.load %arg10[%c0_128, %c0_129] : memref<2x16xbf16, #tpu.memory_space<vmem>>, vector<2x16xbf16>
    %471 = arith.truncf %469 : vector<16x32xf32> to vector<16x32xbf16>
    %cst_130 = arith.constant dense<0.000000e+00> : vector<2x32xf32>
    %472 = tpu.matmul %470, %471, %cst_130 {dimension_numbers = #tpu.dot_dimension_numbers<[1], [0], [0], [1], [0, 0, 1, 1], [], []>} : vector<2x16xbf16>, vector<16x32xbf16>, vector<2x32xf32> -> vector<2x32xf32>
    %473 = vector.extract_strided_slice %5 {offsets = [12, 0], sizes = [1, 32], strides = [1, 1]} : vector<14x32xf32> to vector<1x32xf32>
    %474 = vector.extract_strided_slice %5 {offsets = [13, 0], sizes = [1, 32], strides = [1, 1]} : vector<14x32xf32> to vector<1x32xf32>
    %cst_131 = arith.constant dense<0.000000e+00> : vector<2xf32>
    %475 = vector.multi_reduction <add>, %472, %cst_131 [1] : vector<2x32xf32> to vector<2xf32>
    %476 = vector.shape_cast %475 : vector<2xf32> to vector<2x1xf32>
    %cst_132 = arith.constant 3.200000e+01 : f32
    %477 = vector.broadcast %cst_132 : f32 to vector<2x1xf32>
    %478 = arith.divf %476, %477 : vector<2x1xf32>
    %479 = vector.broadcast %478 : vector<2x1xf32> to vector<2x32xf32>
    %480 = arith.subf %472, %479 : vector<2x32xf32>
    %481 = arith.mulf %480, %480 : vector<2x32xf32>
    %cst_133 = arith.constant dense<0.000000e+00> : vector<2xf32>
    %482 = vector.multi_reduction <add>, %481, %cst_133 [1] : vector<2x32xf32> to vector<2xf32>
    %483 = vector.shape_cast %482 : vector<2xf32> to vector<2x1xf32>
    %cst_134 = arith.constant 3.200000e+01 : f32
    %484 = vector.broadcast %cst_134 : f32 to vector<2x1xf32>
    %485 = arith.divf %483, %484 : vector<2x1xf32>
    %cst_135 = arith.constant 9.99999974E-6 : f32
    %486 = vector.broadcast %cst_135 : f32 to vector<2x1xf32>
    %487 = arith.addf %485, %486 : vector<2x1xf32>
    %488 = math.rsqrt %487 : vector<2x1xf32>
    %489 = vector.broadcast %488 : vector<2x1xf32> to vector<2x32xf32>
    %490 = arith.mulf %480, %489 : vector<2x32xf32>
    %491 = vector.broadcast %473 : vector<1x32xf32> to vector<2x32xf32>
    %492 = arith.mulf %490, %491 : vector<2x32xf32>
    %493 = vector.broadcast %474 : vector<1x32xf32> to vector<2x32xf32>
    %494 = arith.addf %492, %493 : vector<2x32xf32>
    %c0_136 = arith.constant 0 : index
    %c0_137 = arith.constant 0 : index
    %495 = vector.load %arg11[%c0_136, %c0_137] : memref<96x32xbf16, #tpu.memory_space<vmem>>, vector<96x32xbf16>
    %c0_138 = arith.constant 0 : index
    %c0_139 = arith.constant 0 : index
    %496 = vector.load %arg12[%c0_138, %c0_139] : memref<1x96xf32, #tpu.memory_space<vmem>>, vector<1x96xf32>
    %497 = arith.truncf %494 : vector<2x32xf32> to vector<2x32xbf16>
    %cst_140 = arith.constant dense<0.000000e+00> : vector<2x96xf32>
    %498 = tpu.matmul %497, %495, %cst_140 {dimension_numbers = #tpu.dot_dimension_numbers<[1], [1], [0], [0], [0, 0, 1, 0], [], []>} : vector<2x32xbf16>, vector<96x32xbf16>, vector<2x96xf32> -> vector<2x96xf32>
    %499 = vector.broadcast %496 : vector<1x96xf32> to vector<2x96xf32>
    %500 = arith.addf %498, %499 : vector<2x96xf32>
    %cst_141 = arith.constant 0.000000e+00 : f32
    %501 = vector.broadcast %cst_141 : f32 to vector<2x96xf32>
    %502 = arith.maximumf %500, %501 : vector<2x96xf32>
    %c0_142 = arith.constant 0 : index
    %c0_143 = arith.constant 0 : index
    %503 = vector.load %arg13[%c0_142, %c0_143] : memref<256x96xbf16, #tpu.memory_space<vmem>>, vector<256x96xbf16>
    %c0_144 = arith.constant 0 : index
    %c0_145 = arith.constant 0 : index
    %504 = vector.load %arg14[%c0_144, %c0_145] : memref<1x256xf32, #tpu.memory_space<vmem>>, vector<1x256xf32>
    %505 = arith.truncf %502 : vector<2x96xf32> to vector<2x96xbf16>
    %cst_146 = arith.constant dense<0.000000e+00> : vector<2x256xf32>
    %506 = tpu.matmul %505, %503, %cst_146 {dimension_numbers = #tpu.dot_dimension_numbers<[1], [1], [0], [0], [0, 0, 1, 0], [], []>} : vector<2x96xbf16>, vector<256x96xbf16>, vector<2x256xf32> -> vector<2x256xf32>
    %507 = vector.broadcast %504 : vector<1x256xf32> to vector<2x256xf32>
    %508 = arith.addf %506, %507 : vector<2x256xf32>
    %c0_147 = arith.constant 0 : index
    %c0_148 = arith.constant 0 : index
    %c0_149 = arith.constant 0 : index
    %509 = vector.load %arg15[%c0_147, %c0_148, %c0_149] : memref<1x2x256xf32, #tpu.memory_space<vmem>>, vector<1x2x256xf32>
    %510 = vector.shape_cast %509 : vector<1x2x256xf32> to vector<2x256xf32>
    %511 = vector.shape_cast %508 : vector<2x256xf32> to vector<1x2x256xf32>
    tpu.vector_store %arg15[%c0_147, %c0_148, %c0_149], %511 {strides = array<i32>} : memref<1x2x256xf32, #tpu.memory_space<vmem>>, vector<1x2x256xf32>,
    return
  }
  func.func @transform_0(%arg0: i32) -> (i32, i32, i32) {
    %c0_i32 = arith.constant 0 : i32
    %c0_i32_0 = arith.constant 0 : i32
    %c0_i32_1 = arith.constant 0 : i32
    return %arg0, %c0_i32, %c0_i32_0 : i32, i32, i32
  }
  func.func @transform_1(%arg0: i32) -> (i32, i32, i32) {
    %c0_i32 = arith.constant 0 : i32
    %c0_i32_0 = arith.constant 0 : i32
    %c0_i32_1 = arith.constant 0 : i32
    return %arg0, %c0_i32, %c0_i32_0 : i32, i32, i32
  }
  func.func @transform_2(%arg0: i32) -> (i32, i32) {
    %c0_i32 = arith.constant 0 : i32
    %c0_i32_0 = arith.constant 0 : i32
    %c0_i32_1 = arith.constant 0 : i32
    return %c0_i32, %c0_i32_0 : i32, i32
  }
  func.func @transform_3(%arg0: i32) -> (i32, i32) {
    %c0_i32 = arith.constant 0 : i32
    %c0_i32_0 = arith.constant 0 : i32
    %c0_i32_1 = arith.constant 0 : i32
    return %c0_i32, %c0_i32_0 : i32, i32
  }
  func.func @transform_4(%arg0: i32) -> (i32, i32, i32) {
    %c0_i32 = arith.constant 0 : i32
    %c0_i32_0 = arith.constant 0 : i32
    %c0_i32_1 = arith.constant 0 : i32
    %c0_i32_2 = arith.constant 0 : i32
    return %c0_i32, %c0_i32_0, %c0_i32_1 : i32, i32, i32
  }
  func.func @transform_5(%arg0: i32) -> (i32, i32, i32) {
    %c0_i32 = arith.constant 0 : i32
    %c0_i32_0 = arith.constant 0 : i32
    %c0_i32_1 = arith.constant 0 : i32
    %c0_i32_2 = arith.constant 0 : i32
    return %c0_i32, %c0_i32_0, %c0_i32_1 : i32, i32, i32
  }
  func.func @transform_6(%arg0: i32) -> (i32, i32, i32, i32) {
    %c0_i32 = arith.constant 0 : i32
    %c0_i32_0 = arith.constant 0 : i32
    %c0_i32_1 = arith.constant 0 : i32
    %c0_i32_2 = arith.constant 0 : i32
    %c0_i32_3 = arith.constant 0 : i32
    return %c0_i32, %c0_i32_0, %c0_i32_1, %c0_i32_2 : i32, i32, i32, i32
  }
  func.func @transform_7(%arg0: i32) -> (i32, i32, i32) {
    %c0_i32 = arith.constant 0 : i32
    %c0_i32_0 = arith.constant 0 : i32
    %c0_i32_1 = arith.constant 0 : i32
    %c0_i32_2 = arith.constant 0 : i32
    return %c0_i32, %c0_i32_0, %c0_i32_1 : i32, i32, i32
  }
  func.func @transform_8(%arg0: i32) -> (i32, i32, i32) {
    %c0_i32 = arith.constant 0 : i32
    %c0_i32_0 = arith.constant 0 : i32
    %c0_i32_1 = arith.constant 0 : i32
    %c0_i32_2 = arith.constant 0 : i32
    return %c0_i32, %c0_i32_0, %c0_i32_1 : i32, i32, i32
  }
  func.func @transform_9(%arg0: i32) -> (i32, i32) {
    %c0_i32 = arith.constant 0 : i32
    %c0_i32_0 = arith.constant 0 : i32
    %c0_i32_1 = arith.constant 0 : i32
    return %c0_i32, %c0_i32_0 : i32, i32
  }
  func.func @transform_10(%arg0: i32) -> (i32, i32) {
    %c0_i32 = arith.constant 0 : i32
    %c0_i32_0 = arith.constant 0 : i32
    %c0_i32_1 = arith.constant 0 : i32
    return %c0_i32, %c0_i32_0 : i32, i32
  }
  func.func @transform_11(%arg0: i32) -> (i32, i32) {
    %c0_i32 = arith.constant 0 : i32
    %c0_i32_0 = arith.constant 0 : i32
    %c0_i32_1 = arith.constant 0 : i32
    return %c0_i32, %c0_i32_0 : i32, i32
  }
  func.func @transform_12(%arg0: i32) -> (i32, i32) {
    %c0_i32 = arith.constant 0 : i32
    %c0_i32_0 = arith.constant 0 : i32
    %c0_i32_1 = arith.constant 0 : i32
    return %c0_i32, %c0_i32_0 : i32, i32
  }
  func.func @transform_13(%arg0: i32) -> (i32, i32) {
    %c0_i32 = arith.constant 0 : i32
    %c0_i32_0 = arith.constant 0 : i32
    %c0_i32_1 = arith.constant 0 : i32
    return %c0_i32, %c0_i32_0 : i32, i32
  }
  func.func @transform_14(%arg0: i32) -> (i32, i32, i32) {
    %c0_i32 = arith.constant 0 : i32
    %c0_i32_0 = arith.constant 0 : i32
    %c0_i32_1 = arith.constant 0 : i32
    return %arg0, %c0_i32, %c0_i32_0 : i32, i32, i32
  }
}

</mosaic_0001>

<bundles_post_ra>
// kernel: tpu_custom_call.1
= control target key start
LH: loop header
LB: loop body
LE: loop exit
PB: predicated region body
PF: predicated region fallthrough
CT: control target
= control target key end

     0   :  { %s3723_s0 = inlined_call_operand.vmem [shape: f32[2,32,32], index: 0, kind: input, shape index: {}]   ;;  %s3724_s1 = inlined_call_operand.hbm [shape: f32[2,2,16], index: 1, kind: input, shape index: {}]   ;;  %s3725_s2 = inlined_call_operand.vmem [shape: f32[8,32], index: 2, kind: input, shape index: {}]   ;;  %s3726_s3 = inlined_call_operand.hbm [shape: f32[14,32], index: 3, kind: input, shape index: {}]   ;;  %s3727_s4 = inlined_call_operand.vmem [shape: bf16[6,32,32], index: 4, kind: input, shape index: {}]   ;;  %s3728_s5 = inlined_call_operand.vmem [shape: f32[2,7,32], index: 5, kind: input, shape index: {}]   ;;  %s3729_s6 = inlined_call_operand.vmem [shape: bf16[2,3,32,32], index: 6, kind: input, shape index: {}]   ;;  %s3730_s7 = inlined_call_operand.hbm [shape: bf16[2,16,16], index: 7, kind: input, shape index: {}]   ;;  %s3731_s8 = inlined_call_operand.vmem [shape: f32[2,16,1], index: 8, kind: input, shape index: {}]   ;;  %s3732_s9 = inlined_call_operand.vmem [shape: bf16[2,16], index: 9, kind: input, shape index: {}]   ;;  %s3733_s10 = inlined_call_operand.vmem [shape: bf16[96,32], index: 10, kind: input, shape index: {}]   ;;  %s3734_s11 = inlined_call_operand.hbm [shape: f32[1,96], index: 11, kind: input, shape index: {}]   ;;  %s3735_s12 = inlined_call_operand.vmem [shape: bf16[256,96], index: 12, kind: input, shape index: {}]   ;;  %s3736_s13 = inlined_call_operand.vmem [shape: f32[1,256], index: 13, kind: input, shape index: {}]   ;;  %s3737_s14 = inlined_call_operand.hbm [shape: f32[2,2,256], index: 14, kind: output, shape index: {}]  }
   0x1   :  { %3742 = sst [smem:[#allocation18_spill]] %s3726_s3 }
   0x2   :  { %3743 = sst [smem:[#allocation19_spill]] %s3730_s7 }
   0x3   :  { %3744 = sst [smem:[#allocation20_spill]] %s3734_s11 }
   0x4   :  { %3745 = sst [smem:[#allocation21_spill]] %s3736_s13 }
   0x5   :  { %3746 = sst [smem:[#allocation22_spill]] %s3737_s14 }
   0x6   :  { %19 = vsyncpa [#allocation3], 0 }
   0x7   :  { %21 = vsyncpa [#allocation3 + $0x1], 0 }
   0x8   :  { %22 = vsyncpa [#allocation6], 0 }
   0x9   :  { %23 = vsyncpa [#allocation9], 0 }
   0xa   :  { %24 = vsyncpa [#allocation4], 0 }
   0xb   :  { %26 = vsyncpa [#allocation4 + $0x1], 0  ;;  %s3110_s29 = smov 0   ;;  %s3112_s30 = smov 0  }
   0xc   :  { %s3114_s15 = smov 0   ;;  %s3116_s16 = smov 0  }
   0xd LB: > { %3747 = sst [smem:[#allocation15_spill]] %s3019_s15  ;;  %s3134_s20 = sadd.s32 4294967295, %s3023_s16   ;;  %s3023_s16 = sphi %s3116_s16, %s3766_s16   ;;  %s3019_s15 = sphi %s3114_s15, %s3768_s15   ;;  %s3015_s30 = sphi %s3112_s30, %s3770_s30   ;;  %s3011_s29 = sphi %s3110_s29, %s3769_s29  }
   0xe   : > { %s3748_s3 = sld [smem:[#allocation18_spill]]  ;;  %p2324_p0 = scmp.ge.s32.totalorder %s3023_s16, 1 }
   0xf   : > { %p79_p1 = scmp.eq.s32.totalorder %s3134_s20, 0  ;;  %p367_p2 = scmp.lt.s32.totalorder %s3023_s16, 3 }
  0x10   : > { %s3025_s22 = smov [#allocation5]   ;;  %s3750_s7 = sld [smem:[#allocation19_spill]] }
  0x11   : > { %p3139_p3 = pnand %p2324_p0, %p367_p2  ;;  %s383_s23 = sshll.u32 %s3025_s22, 4  ;;  %s384_s23 = int_to_ptr.vmem [resolvable:$true] %s383_s23 }
  0x12   : > { %s3026_s28 = smov [#allocation7]   ;;  %s3027_s18 = smov 128  }
  0x13   : > { %p2670_p4 = pneg %p3139_p3  ;;  %s406_s17 = sshll.u32 %s3026_s28, 4  ;;  %s407_s17 = int_to_ptr.vmem [resolvable:$true] %s406_s17 }
  0x14   : > { %s381_s19 = sshll.u32 %s3748_s3, 4  ;;  %s3028_s22 = smov 8   ;;  %s382_s19 = int_to_ptr.hbm [resolvable:$true] %s381_s19 }
  0x15   : > { %p3151_p6 = pnand %p2670_p4, %p79_p1  ;;  %s3029_s24 = smov 64  }
  0x16   : > { %s404_s26 = sshll.u32 %s3750_s7, 4  ;;  %s3030_s25 = smov 4   ;;  %s405_s26 = int_to_ptr.hbm [resolvable:$true] %s404_s26 }
  0x17   : > { %2673 = dma.hbm_to_vmem [thread:$0]  (!%p3151_p6), %s382_s19, 256, %s384_s23, [#allocation6], %s3027_s18, %s3027_s18, %s3028_s22  }
  0x18   : > { %2676 = dma.hbm_to_vmem [thread:$0]  (!%p3151_p6), %s405_s26, 256, %s407_s17, [#allocation6], %s3029_s24, %s3029_s24, %s3030_s25  }
  0x19   : > { %s3752_s11 = sld [smem:[#allocation20_spill]]  ;;  %s3031_s14 = smov [#allocation8]  }
  0x1a   : > { %s430_s13 = sshll.u32 %s3031_s14, 4  ;;  %s2323_s19 = sadd.s32 4294967294, %s3023_s16   ;;  %s431_s13 = int_to_ptr.vmem [resolvable:$true] %s430_s13 }
  0x1b   : > { %s3166_s23 = sadd.s32 1, %s3023_s16   ;;  %s65_s18 = sadd.s32 1, %s3019_s15 }
  0x1c   : > { %3753 = sst [smem:[#allocation16_spill]] %s3166_s23  ;;  %s62_s26 = ssub.s32 %s3023_s16, %s3166_s23 }
  0x1d   : > { %p72_p7 = scmp.ne.s32.totalorder %s3019_s15, %s3015_s30  ;;  %p63_p8 = scmp.eq.s32.totalorder %s62_s26, 0 }
  0x1e   : > { %p73_p9 = scmp.eq.s32.totalorder %s3023_s16, 0  ;;  %p78_p10 = scmp.ne.s32.totalorder %s3015_s30, %s3011_s29 }
  0x1f   : > { %s428_s28 = sshll.u32 %s3752_s11, 4  ;;  %p354_p11 = scmp.eq.s32.totalorder %s3134_s20, 1  ;;  %s429_s28 = int_to_ptr.hbm [resolvable:$true] %s428_s28 }
  0x20   : > { %2679 = dma.hbm_to_vmem [thread:$0]  (!%p3151_p6), %s429_s28, 16, %s431_s13, [#allocation9]  }
  0x21   : > { %s3178_s3 = scalar_select %p63_p8, %s3019_s15, %s65_s18  }
  0x22   : > { %p3182_p12 = por %p79_p1, %p78_p10  ;;  %p3186_p13 = por %p354_p11, %p72_p7 }
  0x23   : > { %3754 = sst [smem:[#allocation17_spill]] %s3178_s3  ;;  %p360_p0 = scmp.eq.s32.totalorder %s2323_s19, 1 }
  0x24   : > { %p74_p2 = por %p73_p9, %p72_p7  ;;  %s455_s14 = sand.u32 1, %s3019_s15  }
  0x25   : > { %p3191_p4 = por %p360_p0, %p78_p10  ;;  %p2691_p6 = scmp.lt.s32.totalorder %s3023_s16, 2 }
  0x26   : > { %s2329_s17 = sshll.u32 %s455_s14, 1  ;;  %s2330_s22 = sshll.u32 %s3023_s16, 1 }
  0x27   : > { %s463_s28 = scalar_lea.hbm %s3724_s1, %s2330_s22  ;;  %s459_s26 = scalar_lea.vmem [#allocation2], %s2329_s17 }
  0x28   : > { %s465_s18 = sshll.u32 %s463_s28, 4  ;;  %s467_s11 = sshll.u32 %s459_s26, 4  ;;  %s466_s18 = int_to_ptr.hbm [resolvable:$true] %s465_s18  ;;  %s468_s11 = int_to_ptr.vmem [resolvable:$true] %s467_s11 }
  0x29   : > { %p3200_p8 = pnand %p2691_p6, %p74_p2  ;;  %s456_s3 = scalar_lea.sflag [#allocation3], %s455_s14 }
  0x2a   : > { %s2919_s15 = sshra.s32 %s466_s18, 4  ;;  %s2926_s17 = scalar_lea.hbm %s3724_s1, 4  ;;  %s2920_s15 = int_to_ptr.hbm [resolvable:$true] %s2919_s15 }
  0x2b   : > { %s2921_s23 = scalar_lea.hbm %s2920_s15, 2  ;;  %p2923_p9 = pneg %p3200_p8 }
  0x2c   : > { %p2922_p7 = scmp.ne.s32.totalorder %s2920_s15, %s2921_s23  ;;  %p2927_p0 = scmp.lt.s32.totalorder %s2920_s15, %s3724_s1 }
  0x2d   : > { %p2928_p2 = scmp.lt.s32.totalorder %s2926_s17, %s2921_s23 }
  0x2e   : > { %p2924_p10 = pnand %p2923_p9, %p2922_p7 }
  0x2f   : > { %p2929_p6 = por %p2928_p2, %p2927_p0 }
  0x30   : > { %p2925_p11 = pneg %p2924_p10 }
  0x32   : > { %p2930_p5 = pnand %p2929_p6, %p2925_p11 }
  0x34   : > { %2933 = shalt.err (!%p2930_p5)
}
  0x35   : > { %2683 = dma.hbm_to_vmem [thread:$0]  (!%p3200_p8), %s466_s18, 32, %s468_s11, %s456_s3  }
  0x36   : > { %476 = sbr.rel (%p3139_p3) target bundleno = 4458 (0x116a), region = 76  ;;  %s3217_s14 = sand.u32 (!%p3139_p3), 1, %s3015_s30  }
  0x37   : > { %s2332_s26 = sshll.u32 (!%p3139_p3), %s3217_s14, 1  ;;  %s479_s22 = scalar_lea.sflag (!%p3139_p3), [#allocation3], %s3217_s14 }
  0x38   : > { %s3221_s24 = scalar_lea.vmem (!%p3139_p3), [#allocation2], %s2332_s26 }
  0x3b   : > { %2994 = dma.done.wait (%p3182_p12), %s479_s22, 32  }
  0x3c   : > { %2996 = vsyncadd (%p3182_p12), %s479_s22, 4294967264 }
  0x3d   : > { %2998 = dma.done.wait (%p79_p1), [#allocation6], 512  }
  0x3e   : > { %3000 = vsyncadd (%p79_p1), [#allocation6], 4294966784 }
  0x3f   : > { %3002 = dma.done.wait (%p79_p1), [#allocation9], 16  }
  0x40   : > { %3004 = vsyncadd (%p79_p1), [#allocation9], 4294967280  ;;  %p548_p3 = scmp.lt.s32.totalorder %s3134_s20, 1  ;;  %vm591_vm0 = vcmask 261120   ;;  %v3243_v0 = vld [vmem:[%s3725_s2] sm:$0xff]  ;;  %v3032_v10 = vmov 32.0  }
  0x41   : > { %v697_v2 = vsel %vm591_vm0, %v3243_v0, 0.0  ;;  %2742 = vrcp.f32 %v3032_v10  ;;  %v2604_v42 = vld [vmem:[%s3727_s4 + $0x8] sm:$0xff]  ;;  %v2603_v44 = vld [vmem:[%s3727_s4] sm:$0xff]  ;;  %v2606_v45 = vld [vmem:[%s3727_s4 + $0x18] sm:$0xff]  ;;  %s2336_s21 = sshll.u32 %s3217_s14, 2  ;;  %s2651_s23 = sshll.u32 %s3134_s20, 2 }
  0x42   : > { %s549_s11 = scalar_select %p548_p3, %s3134_s20, 1  ;;  %698 = vadd.xlane.f32.xlu1 %v697_v2  ;;  %v742_v43 = vsel %vm591_vm0, %v2604_v42, 0  ;;  %v739_v46 = vsel %vm591_vm0, %v2603_v44, 0  ;;  %v780_v47 = vsel %vm591_vm0, %v2606_v45, 0  ;;  %v2605_v48 = vld [vmem:[%s3727_s4 + $0x10] sm:$0xff]  ;;  %v2608_v49 = vld [vmem:[%s3727_s4 + $0x28] sm:$0xff] }
  0x43   : > { %750 = vmatpush.bf16.xpose.msra.mxu0 %v742_v43  ;;  %788 = vmatpush.bf16.xpose.msra.mxu1 %v780_v47  ;;  %v777_v52 = vsel %vm591_vm0, %v2605_v48, 0  ;;  %v816_v53 = vsel %vm591_vm0, %v2608_v49, 0  ;;  %v2607_v58 = vld [vmem:[%s3727_s4 + $0x20] sm:$0xff]  ;;  %s3764_s17 = sld [smem:[#allocation22_spill]]  ;;  %s547_s28 = scalar_lea.vmem [#allocation10], %s2336_s21 }
  0x44   : > { %s2602_s15 = sshll.u32 %s549_s11, 5  ;;  %2652 = vmatpush.bf16.xpose.msra.mxu2 %v816_v53  ;;  %v813_v61 = vsel %vm591_vm0, %v2607_v58, 0  ;;  %s2209_s26 = sshll.u32 %s547_s28, 4  ;;  %s2210_s26 = int_to_ptr.vmem [resolvable:$true] %s2209_s26 }
  0x45   : > { %s552_s3 = scalar_lea.vmem %s3723_s0, %s2602_s15  ;;  %s2196_s20 = scalar_lea.sflag [#allocation4], %s3217_s14 }
  0x46   : > { %v554_v1 = vld [vmem:[%s552_s3] sm:$0xff]  ;;  %v557_v4 = vld [vmem:[%s552_s3 + $0x18] sm:$0xff]  ;;  %v556_v6 = vld [vmem:[%s552_s3 + $0x10] sm:$0xff] }
  0x47   : > { %v592_v3 = vsel %vm591_vm0, %v554_v1, 0.0  ;;  %v601_v5 = vsel %vm591_vm0, %v557_v4, 0.0  ;;  %v555_v7 = vld [vmem:[%s552_s3 + $0x8] sm:$0xff]  ;;  %v598_v8 = vsel %vm591_vm0, %v556_v6, 0.0  ;;  %v2743_v11 = vpop.eup %2742 }
  0x48   : > { %593 = vadd.xlane.f32.xlu0 %v592_v3  ;;  %602 = vadd.xlane.f32.xlu2 %v601_v5  ;;  %v595_v9 = vsel %vm591_vm0, %v555_v7, 0.0  ;;  %v605_v12 = vmul.f32 32.0, %v2743_v11  ;;  %vm609_vm1 = vweird.f32 %v2743_v11 }
  0x49   : > { %s2207_s25 = scalar_lea.hbm %s3764_s17, %s2651_s23  ;;  %s2969_s3 = scalar_lea.hbm %s3764_s17, 8 }
  0x4a   : > { %599 = vadd.xlane.f32.xlu1 %v598_v8  ;;  %v606_v13 = vsub.f32 1.0, %v605_v12  ;;  %s2211_s22 = sshll.u32 %s2207_s25, 4  ;;  %s2212_s22 = int_to_ptr.hbm [resolvable:$true] %s2211_s22 }
  0x4b   : > { %751 = vmatpush.bf16.xpose.msra.mxu0 %v739_v46  ;;  %789 = vmatpush.bf16.xpose.msra.mxu1 %v777_v52  ;;  %s2963_s11 = sshra.s32 %s2212_s22, 4  ;;  %s2964_s11 = int_to_ptr.hbm [resolvable:$true] %s2963_s11 }
  0x4c   : > { %v607_v14 = vmul.f32 %v2743_v11, %v606_v13  ;;  %2653 = vmatpush.bf16.xpose.msra.mxu2 %v813_v61  ;;  %s2965_s15 = scalar_lea.hbm %s2964_s11, 4  ;;  %p2970_p8 = scmp.lt.s32.totalorder %s2964_s11, %s3764_s17 }
  0x4d   : > { %p2966_p1 = scmp.ne.s32.totalorder %s2964_s11, %s2965_s15  ;;  %p2971_p7 = scmp.lt.s32.totalorder %s2969_s3, %s2965_s15 }
  0x4e   : > { %v608_v15 = vadd.f32 %v2743_v11, %v607_v14  ;;  %v3313_v14 = vld [vmem:[#allocation5] sm:$0xff] }
  0x4f   : > { %p2967_p5 = pnand %p2966_p1, %p3186_p13  ;;  %p2972_p9 = por %p2971_p7, %p2970_p8 }
  0x50   : > { %596 = vadd.xlane.f32.xlu0 %v595_v9  ;;  %v3251_v16 = vsel %vm609_vm1, %v2743_v11, %v608_v15 }
  0x51   : > { %p2968_p12 = pneg %p2967_p5 }
  0x53   : > { %824 = vmatpush.bf16.xpose.msrb.mxu1 %v816_v53  ;;  %p2973_p10 = pnand %p2972_p9, %p2968_p12 }
  0x5b   : > { %825 = vmatpush.bf16.xpose.msrb.mxu1 %v813_v61 }
  0xb5   : > { %v699_v17 = vpop.xlane.xlu1 %698 }
  0xb6   : > { %v700_v19 = vmul.f32 %v699_v17, %v3251_v16 }
  0xb8   : > { %v3256_v21 = vsub.f32 %v3243_v0, %v700_v19 }
  0xba   : > { %v702_v23 = vmul.f32 %v3256_v21, %v3256_v21 }
  0xbb   : > { %v594_v18 = vpop.xlane.xlu0 %593  ;;  %v603_v25 = vpop.xlane.xlu2 %602 }
  0xbc   : > { %v611_v20 = vmul.f32 %v3251_v16, %v594_v18  ;;  %v703_v26 = vsel %vm591_vm0, %v702_v23, 0.0  ;;  %v614_v32 = vmul.f32 %v3251_v16, %v603_v25 }
  0xbd   : > { %704 = vadd.xlane.f32.xlu1 %v703_v26  ;;  %v600_v28 = vpop.xlane.xlu1 %599 }
  0xbe   : > { %v3258_v22 = vsub.f32 %v554_v1, %v611_v20  ;;  %v613_v30 = vmul.f32 %v3251_v16, %v600_v28  ;;  %v3273_v35 = vsub.f32 %v557_v4, %v614_v32  ;;  %v721_v32 = vperm.slane %v3313_v14, 3 }
  0xc0   : > { %v619_v24 = vmul.f32 %v3258_v22, %v3258_v22  ;;  %v3269_v33 = vsub.f32 %v556_v6, %v613_v30  ;;  %v622_v40 = vmul.f32 %v3273_v35, %v3273_v35 }
  0xc2   : > { %v623_v27 = vsel %vm591_vm0, %v619_v24, 0.0  ;;  %v621_v36 = vmul.f32 %v3269_v33, %v3269_v33  ;;  %v632_v41 = vsel %vm591_vm0, %v622_v40, 0.0 }
  0xc3   : > { %624 = vadd.xlane.f32.xlu2 %v623_v27  ;;  %v597_v29 = vpop.xlane.xlu0 %596  ;;  %v719_v27 = vperm.slane %v3313_v14, 2 }
  0xc4   : > { %v612_v31 = vmul.f32 %v3251_v16, %v597_v29  ;;  %v629_v38 = vsel %vm591_vm0, %v621_v36, 0.0 }
  0xc6   : > { %v3271_v34 = vsub.f32 %v555_v7, %v612_v31 }
  0xc8   : > { %v620_v37 = vmul.f32 %v3271_v34, %v3271_v34 }
  0xca   : > { %v626_v39 = vsel %vm591_vm0, %v620_v37, 0.0 }
  0xcb   : > { %630 = vadd.xlane.f32.xlu2 %v629_v38  ;;  %627 = vadd.xlane.f32.xlu0 %v626_v39 }
  0xd3   : > { %633 = vadd.xlane.f32.xlu0 %v632_v41  ;;  %v687_v41 = vperm.slane %v3313_v14, 0 }
 0x130   : > { %v705_v50 = vpop.xlane.xlu1 %704 }
 0x131   : > { %v706_v54 = vmul.f32 %v705_v50, %v3251_v16 }
 0x133   : > { %v707_v56 = vadd.f32 1e-05, %v706_v54 }
 0x135   : > { %2744 = vrsqrt.f32 %v707_v56  ;;  %vm714_vm2 = vweird.f32 %v707_v56 }
 0x136   : > { %v625_v51 = vpop.xlane.xlu2 %624 }
 0x137   : > { %v635_v55 = vmul.f32 %v625_v51, %v3251_v16 }
 0x139   : > { %v639_v57 = vadd.f32 1e-05, %v635_v55 }
 0x13b   : > { %2746 = vrsqrt.f32 %v639_v57  ;;  %v2745_v1 = vpop.eup %2744  ;;  %vm649_vm6 = vweird.f32 %v639_v57 }
 0x13c   : > { %v709_v5 = vmul.f32 %v2745_v1, %v707_v56  ;;  %vm715_vm3 = vweird.f32 %v2745_v1 }
 0x13d   : > { %vm3315_vm4 = vmor %vm714_vm2, %vm715_vm3 }
 0x13e   : > { %v631_v59 = vpop.xlane.xlu2 %630  ;;  %v628_v60 = vpop.xlane.xlu0 %627  ;;  %v710_v7 = vmul.f32 %v2745_v1, %v709_v5 }
 0x13f   : > { %v637_v62 = vmul.f32 %v631_v59, %v3251_v16  ;;  %v636_v63 = vmul.f32 %v628_v60, %v3251_v16 }
 0x140   : > { %v711_v9 = vmul.f32 0.5, %v710_v7 }
 0x141   : > { %v641_v2 = vadd.f32 1e-05, %v637_v62  ;;  %v640_v3 = vadd.f32 1e-05, %v636_v63  ;;  %v2747_v4 = vpop.eup %2746 }
 0x142   : > { %v644_v6 = vmul.f32 %v2747_v4, %v639_v57  ;;  %v712_v13 = vsub.f32 1.5, %v711_v9  ;;  %vm650_vm5 = vweird.f32 %v2747_v4 }
 0x143   : > { %2748 = vrsqrt.f32 %v641_v2  ;;  %vm651_vm7 = vmor %vm649_vm6, %vm650_vm5  ;;  %vm669_vm8 = vweird.f32 %v641_v2  ;;  %vm659_vm12 = vweird.f32 %v640_v3 }
 0x144   : > { %2750 = vrsqrt.f32 %v640_v3  ;;  %v645_v8 = vmul.f32 %v2747_v4, %v644_v6  ;;  %v713_v23 = vmul.f32 %v2745_v1, %v712_v13  ;;  %v837_v6 = vlaneseq }
 0x146   : > { %v634_v10 = vpop.xlane.xlu0 %633  ;;  %v646_v11 = vmul.f32 0.5, %v645_v8  ;;  %v717_v28 = vsel %vm3315_vm4, %v2745_v1, %v713_v23  ;;  %v838_v9 = vand.u32 127, %v837_v6 }
 0x147   : > { %v638_v12 = vmul.f32 %v634_v10, %v3251_v16  ;;  %v718_v31 = vmul.f32 %v717_v28, %v3256_v21  ;;  %v724_v10 = vperm.slane %v3313_v14, 4 }
 0x148   : > { %v647_v18 = vsub.f32 1.5, %v646_v11  ;;  %vm844_vm2 = vcmp.ge.s32.totalorder %v838_v9, 8  ;;  %vm845_vm3 = vcmp.lt.s32.totalorder %v838_v9, 16  ;;  %vm840_vm4 = vcmp.lt.s32.totalorder %v838_v9, 8 }
 0x149   : > { %v2749_v15 = vpop.eup %2748  ;;  %v642_v19 = vadd.f32 1e-05, %v638_v12  ;;  %v720_v39 = vmul.f32 %v719_v27, %v718_v31  ;;  %vm846_vm5 = vmand %vm844_vm2, %vm845_vm3  ;;  %vm849_vm6 = vcmp.ge.s32.totalorder %v838_v9, 16 }
 0x14a   : > { %v2751_v20 = vpop.eup %2750  ;;  %v664_v24 = vmul.f32 %v2749_v15, %v641_v2  ;;  %v648_v25 = vmul.f32 %v2747_v4, %v647_v18  ;;  %vm670_vm9 = vweird.f32 %v2749_v15  ;;  %v3033_v18 = vmov 0.0  }
 0x14b   : > { %v654_v26 = vmul.f32 %v2751_v20, %v640_v3  ;;  %2752 = vrsqrt.f32 %v642_v19  ;;  %vm660_vm10 = vweird.f32 %v2751_v20  ;;  %v722_v45 = vadd.f32 %v721_v32, %v720_v39  ;;  %vm3326_vm11 = vmor %vm669_vm8, %vm670_vm9 }
 0x14c   : > { %v665_v29 = vmul.f32 %v2749_v15, %v664_v24  ;;  %v652_v36 = vsel %vm651_vm7, %v2747_v4, %v648_v25  ;;  %vm661_vm13 = vmor %vm659_vm12, %vm660_vm10  ;;  %vm679_vm14 = vweird.f32 %v642_v19  ;;  %vm850_vm7 = vcmp.lt.s32.totalorder %v838_v9, 24 }
 0x14d   : > { %v655_v30 = vmul.f32 %v2751_v20, %v654_v26  ;;  %v683_v43 = vmul.f32 %v652_v36, %v3258_v22  ;;  %v723_v49 = vpack.c.bf16 %v722_v45, %v722_v45  ;;  %v692_v22 = vperm.slane %v3313_v14, 1  ;;  %vm851_vm10 = vmand %vm849_vm6, %vm850_vm7 }
 0x14e   : > { %v666_v37 = vmul.f32 0.5, %v665_v29  ;;  %vm854_vm8 = vcmp.ge.s32.totalorder %v838_v9, 24  ;;  %vm855_vm9 = vcmp.lt.s32.totalorder %v838_v9, 32  ;;  %vm903_vm12 = vcmask 130048  }
 0x14f   : > { %v656_v38 = vmul.f32 0.5, %v655_v30  ;;  %2367 = vmatmul.msk.bf16.vlgmr.msra.gmra.mxu0 %vm591_vm0, %v723_v49  ;;  %v688_v52 = vmul.f32 %v687_v41, %v683_v43  ;;  %v801_v30 = vperm.slane %v3313_v14, 6 }
 0x150   : > { %v667_v40 = vsub.f32 1.5, %v666_v37 }
 0x151   : > { %v2753_v42 = vpop.eup %2752  ;;  %v657_v44 = vsub.f32 1.5, %v656_v38  ;;  %v693_v60 = vadd.f32 %v692_v22, %v688_v52 }
 0x152   : > { %v668_v46 = vmul.f32 %v2749_v15, %v667_v40  ;;  %v674_v47 = vmul.f32 %v2753_v42, %v642_v19  ;;  %vm680_vm15 = vweird.f32 %v2753_v42  ;;  %v3343_v19 = vsel %vm840_vm4, 1.0, %v3033_v18 }
 0x153   : > { %v658_v48 = vmul.f32 %v2751_v20, %v657_v44  ;;  %vm681_vm1 = vmor %vm679_vm14, %vm680_vm15  ;;  %v3352_v40 = vsel %vm851_vm10, 1.0, %v3033_v18 }
 0x154   : > { %v675_v50 = vmul.f32 %v2753_v42, %v674_v47  ;;  %v672_v53 = vsel %vm3326_vm11, %v2749_v15, %v668_v46  ;;  %vm856_vm11 = vmand %vm854_vm8, %vm855_vm9 }
 0x155   : > { %v662_v51 = vsel %vm661_vm13, %v2751_v20, %v658_v48  ;;  %v685_v58 = vmul.f32 %v672_v53, %v3269_v33  ;;  %v3345_v20 = vsel %vm846_vm5, 1.0, %v3033_v18 }
 0x156   : > { %v684_v54 = vmul.f32 %v662_v51, %v3271_v34  ;;  %v676_v55 = vmul.f32 0.5, %v675_v50  ;;  %v558_v51 = vld [vmem:[%s3221_s24] sm:$0x3]  ;;  %s3763_s24 = sld [smem:[#allocation21_spill]] }
 0x157   : > { %v690_v2 = vmul.f32 %v687_v41, %v685_v58  ;;  %v898_v52 = vperm.slane %v558_v51, 0 }
 0x158   : > { %v677_v56 = vsub.f32 1.5, %v676_v55  ;;  %v689_v57 = vmul.f32 %v687_v41, %v684_v54 }
 0x159   : > { %v695_v4 = vadd.f32 %v692_v22, %v690_v2 }
 0x15a   : > { %v678_v59 = vmul.f32 %v2753_v42, %v677_v56  ;;  %v694_v61 = vadd.f32 %v692_v22, %v689_v57 }
 0x15c   : > { %v682_v62 = vsel %vm681_vm1, %v2753_v42, %v678_v59  ;;  %v757_v63 = vpack.c.bf16 %v694_v61, %v693_v60  ;;  %v1014_v59 = vperm.slane %v558_v51, 1 }
 0x15d   : > { %v686_v1 = vmul.f32 %v682_v62, %v3273_v35  ;;  %v759_v35 = vperm.slane %v3313_v14, 5 }
 0x15e   : > { %2376 = vmatmul.msk.bf16.vlgmr.msra.gmra.mxu1 %vm591_vm0, %v757_v63 }
 0x15f   : > { %v691_v3 = vmul.f32 %v687_v41, %v686_v1  ;;  %v3354_v41 = vsel %vm856_vm11, 1.0, %v3033_v18 }
 0x161   : > { %v696_v34 = vadd.f32 %v692_v22, %v691_v3 }
 0x163   : > { %v758_v5 = vpack.c.bf16 %v696_v34, %v695_v4 }
 0x165   : > { %2387 = vmatmul.msk.bf16.vlgmr.msra.gmra.mxu2 %vm591_vm0, %v758_v5 }
 0x16e   : > { %2377 = vmatmul.msk.bf16.gmra.mxu1 %vm591_vm0, %v758_v5 }
 0x17e   : > { %2386 = vmatmul.msk.bf16.vlgmr.msrb.gmra.mxu1 %vm591_vm0, %v757_v63 }
 0x1cc   : > { %v753_v33 = vpop.f32.mrf.mxu0 }
 0x1cd   : > { %v754_v15 = vadd.f32 %v753_v33, %v724_v10 }
 0x1cf   : > { %v859_v25 = vmul.f32 %v3343_v19, %v754_v15  ;;  %v860_v26 = vmul.f32 %v3345_v20, %v754_v15  ;;  %v861_v44 = vmul.f32 %v3352_v40, %v754_v15  ;;  %v862_v45 = vmul.f32 %v3354_v41, %v754_v15 }
 0x1d1   : > { %v863_v28 = vpack.c.bf16 %v860_v26, %v859_v25  ;;  %v864_v47 = vpack.c.bf16 %v862_v45, %v861_v44 }
 0x1d4   : > { %v755_v7 = vpop.f32.mrf.mxu0 }
 0x1db   : > { %v791_v8 = vpop.f32.mrf.mxu1 }
 0x1dc   : > { %v792_v12 = vadd.f32 %v791_v8, %v759_v35 }
 0x1e3   : > { %v793_v11 = vpop.f32.mrf.mxu1 }
 0x1e4   : > { %v794_v13 = vadd.f32 %v793_v11, %v759_v35 }
 0x1e6   : > { %v865_v17 = vpack.c.bf16 %v794_v13, %v792_v12 }
 0x1e8   : > { %v832_v23 = vpop.f32.mrf.mxu2  ;;  %v873_v24 = vsel %vm591_vm0, %v865_v17, 0 }
 0x1e9   : > { %882 = vmatpush.bf16.xpose.msra.mxu3 %v873_v24  ;;  %v833_v38 = vadd.f32 %v832_v23, %v801_v30 }
 0x1eb   : > { %v796_v27 = vpop.f32.mrf.mxu1 }
 0x1ec   : > { %v797_v32 = vadd.f32 %v796_v27, %v759_v35 }
 0x1f0   : > { %2392 = vmatmul.msk.bf16.vlgmr.msra.gmra.mxu3 %vm591_vm0, %v863_v28  ;;  %v834_v29 = vpop.f32.mrf.mxu2 }
 0x1f1   : > { %v835_v36 = vadd.f32 %v834_v29, %v801_v30 }
 0x1f3   : > { %v798_v31 = vpop.f32.mrf.mxu1  ;;  %v1069_v42 = vpack.c.bf16 %v835_v36, %v833_v38 }
 0x1f4   : > { %v799_v37 = vadd.f32 %v798_v31, %v759_v35 }
 0x1f6   : > { %v987_v39 = vpack.c.bf16 %v799_v37, %v797_v32 }
 0x1f8   : > { %v989_v43 = vsel %vm591_vm0, %v987_v39, 0 }
 0x1f9   : > { %998 = vmatpush.bf16.xpose.msrb.mxu3 %v989_v43 }
 0x1fb   : > { %v827_v46 = vpop.f32.mrf.mxu1 }
 0x1fc   : > { %v828_v48 = vadd.f32 %v827_v46, %v801_v30 }
 0x200   : > { %2393 = vmatmul.msk.bf16.gmra.mxu3 %vm591_vm0, %v864_v47 }
 0x201   : > { %1083 = vmatpush.bf16.msra.mxu3 %v1069_v42 }
 0x203   : > { %v829_v21 = vpop.f32.mrf.mxu1 }
 0x204   : > { %v830_v49 = vadd.f32 %v829_v21, %v801_v30 }
 0x206   : > { %v954_v50 = vpack.c.bf16 %v830_v49, %v828_v48 }
 0x208   : > { %968 = vmatpush.bf16.msrb.mxu0 %v954_v50 }
 0x210   : > { %2396 = vmatmul.msk.bf16.vlgmr.msrb.gmra.mxu3 %vm591_vm0, %v863_v28 }
 0x220   : > { %2397 = vmatmul.msk.bf16.gmra.mxu3 %vm591_vm0, %v864_v47 }
 0x273   : > { %v884_v22 = vpop.f32.mrf.mxu3 }
 0x274   : > { %v894_v53 = vmul.f32 0.35355338, %v884_v22 }
 0x276   : > { %v899_v54 = vadd.f32 %v898_v52, %v894_v53 }
 0x278   : > { %v904_v55 = vsel %vm903_vm12, %v899_v54, -inf }
 0x279   : > { %905 = vmax.xlane.f32.xlu0 %v904_v55 }
 0x27b   : > { %v886_v56 = vpop.f32.mrf.mxu3 }
 0x27c   : > { %v895_v63 = vmul.f32 0.35355338, %v886_v56 }
 0x27e   : > { %v900_v4 = vadd.f32 %v898_v52, %v895_v63 }
 0x280   : > { %v907_v33 = vsel %vm903_vm12, %v900_v4, -inf }
 0x283   : > { %v889_v57 = vpop.f32.mrf.mxu3 }
 0x284   : > { %v896_v5 = vmul.f32 0.35355338, %v889_v57 }
 0x286   : > { %v901_v9 = vadd.f32 %v898_v52, %v896_v5 }
 0x288   : > { %v910_v11 = vsel %vm903_vm12, %v901_v9, -inf }
 0x28b   : > { %v891_v58 = vpop.f32.mrf.mxu3 }
 0x28c   : > { %v897_v10 = vmul.f32 0.35355338, %v891_v58 }
 0x28e   : > { %v902_v17 = vadd.f32 %v898_v52, %v897_v10 }
 0x290   : > { %v913_v23 = vsel %vm903_vm12, %v902_v17, -inf }
 0x293   : > { %v1000_v60 = vpop.f32.mrf.mxu3 }
 0x294   : > { %v1010_v61 = vmul.f32 0.35355338, %v1000_v60 }
 0x296   : > { %v1015_v62 = vadd.f32 %v1014_v59, %v1010_v61 }
 0x298   : > { %v1019_v1 = vsel %vm903_vm12, %v1015_v62, -inf }
 0x299   : > { %1020 = vmax.xlane.f32.xlu1 %v1019_v1 }
 0x29b   : > { %v1002_v2 = vpop.f32.mrf.mxu3 }
 0x29c   : > { %v1011_v3 = vmul.f32 0.35355338, %v1002_v2 }
 0x29e   : > { %v1016_v34 = vadd.f32 %v1014_v59, %v1011_v3 }
 0x2a0   : > { %v1022_v6 = vsel %vm903_vm12, %v1016_v34, -inf }
 0x2a1   : > { %908 = vmax.xlane.f32.xlu1 %v907_v33  ;;  %1023 = vmax.xlane.f32.xlu2 %v1022_v6 }
 0x2a3   : > { %v1005_v7 = vpop.f32.mrf.mxu3 }
 0x2a4   : > { %v1012_v8 = vmul.f32 0.35355338, %v1005_v7 }
 0x2a6   : > { %v1017_v35 = vadd.f32 %v1014_v59, %v1012_v8 }
 0x2a8   : > { %v1025_v12 = vsel %vm903_vm12, %v1017_v35, -inf }
 0x2a9   : > { %911 = vmax.xlane.f32.xlu1 %v910_v11  ;;  %1026 = vmax.xlane.f32.xlu2 %v1025_v12 }
 0x2ab   : > { %v1007_v13 = vpop.f32.mrf.mxu3 }
 0x2ac   : > { %v1013_v15 = vmul.f32 0.35355338, %v1007_v13 }
 0x2ae   : > { %v1018_v18 = vadd.f32 %v1014_v59, %v1013_v15 }
 0x2b0   : > { %v1028_v24 = vsel %vm903_vm12, %v1018_v18, -inf }
 0x2b1   : > { %914 = vmax.xlane.f32.xlu2 %v913_v23  ;;  %1029 = vmax.xlane.f32.xlu0 %v1028_v24 }
 0x2ec   : > { %v906_v25 = vpop.xlane.xlu0 %905 }
 0x2ed   : > { %v916_v26 = vsub.f32 %v899_v54, %v906_v25 }
 0x2ef   : > { %v920_v27 = vmul.f32 1.442695, %v916_v26 }
 0x2f1   : > { %2754 = vpow2.f32 %v920_v27 }
 0x2f7   : > { %v3371_v28 = vpop.eup %2754 }
 0x2f8   : > { %v928_v29 = vsel %vm903_vm12, %v3371_v28, 0.0 }
 0x2f9   : > { %929 = vadd.xlane.f32.xlu2 %v928_v29 }
 0x30c   : > { %v1021_v30 = vpop.xlane.xlu1 %1020 }
 0x30d   : > { %v1031_v31 = vsub.f32 %v1015_v62, %v1021_v30 }
 0x30f   : > { %v1035_v32 = vmul.f32 1.442695, %v1031_v31 }
 0x311   : > { %2756 = vpow2.f32 %v1035_v32 }
 0x314   : > { %v909_v36 = vpop.xlane.xlu1 %908  ;;  %v1024_v37 = vpop.xlane.xlu2 %1023 }
 0x315   : > { %v917_v38 = vsub.f32 %v900_v4, %v909_v36  ;;  %v1032_v39 = vsub.f32 %v1016_v34, %v1024_v37 }
 0x317   : > { %v2757_v42 = vpop.eup %2756  ;;  %v922_v43 = vmul.f32 1.442695, %v917_v38  ;;  %v1037_v44 = vmul.f32 1.442695, %v1032_v39 }
 0x318   : > { %v1043_v45 = vsel %vm903_vm12, %v2757_v42, 0.0 }
 0x319   : > { %2758 = vpow2.f32 %v922_v43  ;;  %1044 = vadd.xlane.f32.xlu0 %v1043_v45 }
 0x31a   : > { %2760 = vpow2.f32 %v1037_v44 }
 0x31c   : > { %v912_v46 = vpop.xlane.xlu1 %911  ;;  %v1027_v47 = vpop.xlane.xlu2 %1026 }
 0x31d   : > { %v918_v21 = vsub.f32 %v901_v9, %v912_v46  ;;  %v1033_v48 = vsub.f32 %v1017_v35, %v1027_v47 }
 0x31f   : > { %v2759_v49 = vpop.eup %2758  ;;  %v924_v50 = vmul.f32 1.442695, %v918_v21  ;;  %v1039_v51 = vmul.f32 1.442695, %v1033_v48  ;;  %v2610_v48 = vld [vmem:[%s3727_s4 + $0x38] sm:$0xff] }
 0x320   : > { %v2761_v52 = vpop.eup %2760  ;;  %v931_v22 = vsel %vm903_vm12, %v2759_v49, 0.0 }
 0x321   : > { %2762 = vpow2.f32 %v924_v50  ;;  %v1046_v53 = vsel %vm903_vm12, %v2761_v52, 0.0  ;;  %932 = vadd.xlane.f32.xlu0 %v931_v22  ;;  %v2609_v50 = vld [vmem:[%s3727_s4 + $0x30] sm:$0xff] }
 0x322   : > { %2764 = vpow2.f32 %v1039_v51  ;;  %1047 = vadd.xlane.f32.xlu1 %v1046_v53  ;;  %v1118_v51 = vsel %vm591_vm0, %v2609_v50, 0  ;;  %v561_v50 = vld [vmem:[#allocation5 + $0x8] sm:$0x3f] }
 0x324   : > { %v915_v54 = vpop.xlane.xlu2 %914  ;;  %v1030_v55 = vpop.xlane.xlu0 %1029 }
 0x325   : > { %v919_v56 = vsub.f32 %v902_v17, %v915_v54  ;;  %v1034_v57 = vsub.f32 %v1018_v18, %v1030_v55 }
 0x327   : > { %v2763_v58 = vpop.eup %2762  ;;  %v926_v59 = vmul.f32 1.442695, %v919_v56  ;;  %v1041_v60 = vmul.f32 1.442695, %v1034_v57 }
 0x328   : > { %v2765_v61 = vpop.eup %2764  ;;  %v934_v62 = vsel %vm903_vm12, %v2763_v58, 0.0 }
 0x329   : > { %2766 = vpow2.f32 %v926_v59  ;;  %v1049_v63 = vsel %vm903_vm12, %v2765_v61, 0.0  ;;  %935 = vadd.xlane.f32.xlu0 %v934_v62 }
 0x32a   : > { %2768 = vpow2.f32 %v1041_v60  ;;  %1050 = vadd.xlane.f32.xlu1 %v1049_v63 }
 0x32f   : > { %v2767_v1 = vpop.eup %2766 }
 0x330   : > { %v2769_v2 = vpop.eup %2768  ;;  %v937_v3 = vsel %vm903_vm12, %v2767_v1, 0.0 }
 0x331   : > { %v1052_v4 = vsel %vm903_vm12, %v2769_v2, 0.0 }
 0x332   : > { %938 = vadd.xlane.f32.xlu1 %v937_v3  ;;  %1053 = vadd.xlane.f32.xlu2 %v1052_v4 }
 0x36c   : > { %v930_v5 = vpop.xlane.xlu2 %929 }
 0x36d   : > { %v940_v33 = vadd.f32 1e-30, %v930_v5 }
 0x36f   : > { %2770 = vrcp.f32 %v940_v33 }
 0x375   : > { %v2771_v10 = vpop.eup %2770 }
 0x376   : > { %v948_v17 = vmul.f32 %v2771_v10, %v3371_v28 }
 0x38c   : > { %v1045_v34 = vpop.xlane.xlu0 %1044 }
 0x38d   : > { %v1055_v6 = vadd.f32 1e-30, %v1045_v34 }
 0x38f   : > { %2772 = vrcp.f32 %v1055_v6 }
 0x394   : > { %v933_v7 = vpop.xlane.xlu0 %932 }
 0x395   : > { %v1048_v8 = vpop.xlane.xlu1 %1047  ;;  %v941_v9 = vadd.f32 1e-30, %v933_v7  ;;  %v2773_v11 = vpop.eup %2772 }
 0x396   : > { %v1056_v35 = vadd.f32 1e-30, %v1048_v8  ;;  %v1063_v23 = vmul.f32 %v2773_v11, %v2757_v42 }
 0x397   : > { %2774 = vrcp.f32 %v941_v9 }
 0x398   : > { %2776 = vrcp.f32 %v1056_v35 }
 0x39c   : > { %v936_v25 = vpop.xlane.xlu0 %935 }
 0x39d   : > { %v2775_v12 = vpop.eup %2774  ;;  %v1051_v13 = vpop.xlane.xlu1 %1050  ;;  %v942_v29 = vadd.f32 1e-30, %v936_v25 }
 0x39e   : > { %v2777_v15 = vpop.eup %2776  ;;  %v949_v18 = vmul.f32 %v2775_v12, %v2759_v49  ;;  %v1057_v30 = vadd.f32 1e-30, %v1051_v13  ;;  %v1121_v49 = vsel %vm591_vm0, %v2610_v48, 0 }
 0x39f   : > { %v1064_v24 = vmul.f32 %v2777_v15, %v2761_v52  ;;  %2778 = vrcp.f32 %v942_v29  ;;  %1129 = vmatpush.bf16.xpose.msrb.mxu2 %v1121_v49 }
 0x3a0   : > { %v952_v26 = vpack.c.bf16 %v949_v18, %v948_v17  ;;  %2780 = vrcp.f32 %v1057_v30  ;;  %v2611_v30 = vld [vmem:[%s3727_s4 + $0x40] sm:$0xff] }
 0x3a1   : > { %v1067_v27 = vpack.c.bf16 %v1064_v24, %v1063_v23 }
 0x3a2   : > { %2394 = vmatmul.msk.bf16.vlgmr.msrb.gmra.mxu0 %vm903_vm12, %v952_v26 }
 0x3a3   : > { %2398 = vmatmul.msk.bf16.vlgmr.msra.gmra.mxu3 %vm903_vm12, %v1067_v27  ;;  %v2612_v27 = vld [vmem:[%s3727_s4 + $0x48] sm:$0xff] }
 0x3a4   : > { %v1208_v29 = vsel %vm591_vm0, %v2612_v27, 0 }
 0x3a5   : > { %v939_v31 = vpop.xlane.xlu1 %938  ;;  %v1054_v32 = vpop.xlane.xlu2 %1053  ;;  %1216 = vmatpush.bf16.xpose.msra.mxu0 %v1208_v29  ;;  %v1243_v29 = vperm.slane %v561_v50, 3 }
 0x3a6   : > { %v943_v36 = vadd.f32 1e-30, %v939_v31  ;;  %v1058_v37 = vadd.f32 1e-30, %v1054_v32  ;;  %v2779_v28 = vpop.eup %2778  ;;  %v1205_v31 = vsel %vm591_vm0, %v2611_v30, 0 }
 0x3a7   : > { %v2781_v38 = vpop.eup %2780  ;;  %v950_v43 = vmul.f32 %v2779_v28, %v2763_v58  ;;  %1130 = vmatpush.bf16.xpose.msrb.mxu2 %v1118_v51 }
 0x3a8   : > { %2782 = vrcp.f32 %v943_v36  ;;  %v1065_v45 = vmul.f32 %v2781_v38, %v2765_v61 }
 0x3a9   : > { %2784 = vrcp.f32 %v1058_v37 }
 0x3ad   : > { %1217 = vmatpush.bf16.xpose.msra.mxu0 %v1205_v31 }
 0x3ae   : > { %v2783_v39 = vpop.eup %2782 }
 0x3af   : > { %v2785_v42 = vpop.eup %2784  ;;  %v951_v44 = vmul.f32 %v2783_v39, %v2767_v1 }
 0x3b0   : > { %v1066_v46 = vmul.f32 %v2785_v42, %v2769_v2 }
 0x3b1   : > { %v953_v47 = vpack.c.bf16 %v951_v44, %v950_v43 }
 0x3b2   : > { %v1068_v21 = vpack.c.bf16 %v1066_v46, %v1065_v45 }
 0x3b3   : > { %2395 = vmatmul.msk.bf16.gmra.mxu0 %vm903_vm12, %v953_v47 }
 0x3b4   : > { %2399 = vmatmul.msk.bf16.gmra.mxu3 %vm903_vm12, %v1068_v21 }
 0x41f   : > { %v970_v52 = vpop.f32.mrf.mxu0 }
 0x420   : > { %v980_v60 = vmul.f32 %v3343_v19, %v970_v52 }
 0x426   : > { %v1085_v22 = vpop.f32.mrf.mxu3 }
 0x427   : > { %v972_v53 = vpop.f32.mrf.mxu0  ;;  %v1095_v61 = vmul.f32 %v3343_v19, %v1085_v22  ;;  %v1103_v19 = vperm.slane %v3313_v14, 7 }
 0x428   : > { %v981_v57 = vmul.f32 %v3345_v20, %v972_v53  ;;  %v1183_v53 = vperm.slane %v561_v50, 0 }
 0x42a   : > { %v982_v1 = vadd.f32 %v981_v57, %v980_v60  ;;  %v1186_v57 = vperm.slane %v561_v50, 1 }
 0x42e   : > { %v1087_v54 = vpop.f32.mrf.mxu3 }
 0x42f   : > { %v1096_v58 = vmul.f32 %v3345_v20, %v1087_v54 }
 0x430   : > { %v975_v55 = vpop.f32.mrf.mxu0 }
 0x431   : > { %v983_v62 = vmul.f32 %v3352_v40, %v975_v55  ;;  %v1097_v2 = vadd.f32 %v1096_v58, %v1095_v61 }
 0x433   : > { %v984_v34 = vadd.f32 %v983_v62, %v982_v1  ;;  %v2614_v1 = vld [vmem:[%s3727_s4 + $0x58] sm:$0xff] }
 0x437   : > { %v1090_v56 = vpop.f32.mrf.mxu3 }
 0x438   : > { %v977_v59 = vpop.f32.mrf.mxu0  ;;  %v1098_v63 = vmul.f32 %v3352_v40, %v1090_v56 }
 0x439   : > { %v985_v3 = vmul.f32 %v3354_v41, %v977_v59 }
 0x43a   : > { %v1099_v5 = vadd.f32 %v1098_v63, %v1097_v2  ;;  %v1261_v2 = vsel %vm591_vm0, %v2614_v1, 0 }
 0x43b   : > { %v986_v6 = vadd.f32 %v985_v3, %v984_v34  ;;  %1269 = vmatpush.bf16.xpose.msra.mxu2 %v1261_v2  ;;  %v2613_v3 = vld [vmem:[%s3727_s4 + $0x50] sm:$0xff]  ;;  %v1190_v34 = vperm.slane %v561_v50, 2  ;;  %v2618_v50 = vld [vmem:[%s3729_s6 + $0x18] sm:$0xff] }
 0x43f   : > { %v1092_v4 = vpop.f32.mrf.mxu3 }
 0x440   : > { %v1100_v33 = vmul.f32 %v3354_v41, %v1092_v4  ;;  %v1258_v4 = vsel %vm591_vm0, %v2613_v3, 0 }
 0x442   : > { %v1101_v20 = vadd.f32 %v1100_v33, %v1099_v5 }
 0x443   : > { %1270 = vmatpush.bf16.xpose.msra.mxu2 %v1258_v4 }
 0x444   : > { %v1102_v7 = vpack.c.bf16 %v1101_v20, %v986_v6 }
 0x446   : > { %2408 = vmatmul.msk.bf16.vlgmr.msrb.gmra.mxu2 %vm591_vm0, %v1102_v7 }
 0x4c9   : > { %v1132_v8 = vpop.f32.mrf.mxu2 }
 0x4ca   : > { %v1133_v9 = vadd.f32 %v1132_v8, %v1103_v19 }
 0x4cc   : > { %v3406_v40 = vadd.f32 %v1133_v9, %v3243_v0 }
 0x4ce   : > { %v1139_v35 = vsel %vm591_vm0, %v3406_v40, 0.0 }
 0x4cf   : > { %1140 = vadd.xlane.f32.xlu2 %v1139_v35 }
 0x4d1   : > { %v1134_v10 = vpop.f32.mrf.mxu2 }
 0x4d2   : > { %v1135_v11 = vadd.f32 %v1134_v10, %v1103_v19 }
 0x4d4   : > { %v3411_v41 = vadd.f32 %v1135_v11, %v3243_v0 }
 0x4d6   : > { %v1142_v12 = vsel %vm591_vm0, %v3411_v41, 0.0 }
 0x4d7   : > { %1143 = vadd.xlane.f32.xlu0 %v1142_v12 }
 0x542   : > { %v1141_v13 = vpop.xlane.xlu2 %1140 }
 0x543   : > { %v1145_v14 = vmul.f32 %v1141_v13, %v3251_v16 }
 0x545   : > { %v1147_v15 = vsub.f32 %v3406_v40, %v1145_v14 }
 0x547   : > { %v1149_v17 = vmul.f32 %v1147_v15, %v1147_v15 }
 0x549   : > { %v1151_v18 = vsel %vm591_vm0, %v1149_v17, 0.0 }
 0x54a   : > { %v1144_v23 = vpop.xlane.xlu0 %1143  ;;  %1152 = vadd.xlane.f32.xlu1 %v1151_v18 }
 0x54b   : > { %v1146_v24 = vmul.f32 %v1144_v23, %v3251_v16 }
 0x54d   : > { %v1148_v25 = vsub.f32 %v3411_v41, %v1146_v24 }
 0x54f   : > { %v1150_v0 = vmul.f32 %v1148_v25, %v1148_v25 }
 0x551   : > { %v1154_v26 = vsel %vm591_vm0, %v1150_v0, 0.0 }
 0x552   : > { %1155 = vadd.xlane.f32.xlu2 %v1154_v26 }
 0x5bd   : > { %v1153_v32 = vpop.xlane.xlu1 %1152 }
 0x5be   : > { %v1157_v36 = vmul.f32 %v1153_v32, %v3251_v16 }
 0x5c0   : > { %v1159_v37 = vadd.f32 1e-05, %v1157_v36 }
 0x5c2   : > { %2786 = vrsqrt.f32 %v1159_v37  ;;  %vm1167_vm14 = vweird.f32 %v1159_v37 }
 0x5c5   : > { %v1156_v28 = vpop.xlane.xlu2 %1155 }
 0x5c6   : > { %v1158_v38 = vmul.f32 %v1156_v28, %v3251_v16 }
 0x5c8   : > { %v2787_v39 = vpop.eup %2786  ;;  %v1160_v42 = vadd.f32 1e-05, %v1158_v38 }
 0x5c9   : > { %v1162_v43 = vmul.f32 %v2787_v39, %v1159_v37  ;;  %vm1168_vm13 = vweird.f32 %v2787_v39 }
 0x5ca   : > { %2788 = vrsqrt.f32 %v1160_v42  ;;  %vm1169_vm15 = vmor %vm1167_vm14, %vm1168_vm13  ;;  %vm1177_vm2 = vweird.f32 %v1160_v42 }
 0x5cb   : > { %v1163_v44 = vmul.f32 %v2787_v39, %v1162_v43 }
 0x5cd   : > { %v1164_v45 = vmul.f32 0.5, %v1163_v44 }
 0x5cf   : > { %v1165_v46 = vsub.f32 1.5, %v1164_v45 }
 0x5d0   : > { %v2789_v47 = vpop.eup %2788 }
 0x5d1   : > { %v1166_v21 = vmul.f32 %v2787_v39, %v1165_v46  ;;  %v1172_v48 = vmul.f32 %v2789_v47, %v1160_v42  ;;  %vm1178_vm1 = vweird.f32 %v2789_v47 }
 0x5d2   : > { %vm1179_vm3 = vmor %vm1177_vm2, %vm1178_vm1 }
 0x5d3   : > { %v1173_v49 = vmul.f32 %v2789_v47, %v1172_v48  ;;  %v1170_v51 = vsel %vm1169_vm15, %v2787_v39, %v1166_v21 }
 0x5d4   : > { %v1181_v54 = vmul.f32 %v1170_v51, %v1147_v15 }
 0x5d5   : > { %v1174_v52 = vmul.f32 0.5, %v1173_v49  ;;  %v2616_v49 = vld [vmem:[%s3729_s6 + $0x8] sm:$0xff] }
 0x5d6   : > { %v1184_v58 = vmul.f32 %v1183_v53, %v1181_v54  ;;  %v1362_v51 = vsel %vm591_vm0, %v2616_v49, 0 }
 0x5d7   : > { %v1175_v22 = vsub.f32 1.5, %v1174_v52  ;;  %v1411_v52 = vsel %vm591_vm0, %v2618_v50, 0  ;;  %1370 = vmatpush.bf16.xpose.msrb.mxu3 %v1362_v51 }
 0x5d8   : > { %v1187_v61 = vadd.f32 %v1186_v57, %v1184_v58  ;;  %1419 = vmatpush.bf16.xpose.msrb.mxu0 %v1411_v52 }
 0x5d9   : > { %v1176_v55 = vmul.f32 %v2789_v47, %v1175_v22  ;;  %v2615_v22 = vld [vmem:[%s3729_s6] sm:$0xff] }
 0x5da   : > { %v1359_v54 = vsel %vm591_vm0, %v2615_v22, 0 }
 0x5db   : > { %v1180_v56 = vsel %vm1179_vm3, %v2789_v47, %v1176_v55 }
 0x5dc   : > { %v1182_v59 = vmul.f32 %v1180_v56, %v1148_v25 }
 0x5de   : > { %v1185_v60 = vmul.f32 %v1183_v53, %v1182_v59  ;;  %v2617_v53 = vld [vmem:[%s3729_s6 + $0x10] sm:$0xff] }
 0x5df   : > { %v1408_v55 = vsel %vm591_vm0, %v2617_v53, 0  ;;  %1371 = vmatpush.bf16.xpose.msrb.mxu3 %v1359_v54 }
 0x5e0   : > { %v1188_v62 = vadd.f32 %v1186_v57, %v1185_v60  ;;  %1420 = vmatpush.bf16.xpose.msrb.mxu0 %v1408_v55 }
 0x5e2   : > { %v1189_v63 = vpack.c.bf16 %v1188_v62, %v1187_v61 }
 0x5e4   : > { %2417 = vmatmul.msk.bf16.vlgmr.msra.gmra.mxu0 %vm591_vm0, %v1189_v63 }
 0x661   : > { %v1219_v5 = vpop.f32.mrf.mxu0 }
 0x662   : > { %v1220_v33 = vadd.f32 %v1219_v5, %v1190_v34 }
 0x664   : > { %v1226_v6 = vmul.f32 0.044715, %v1220_v33  ;;  %v1224_v23 = vmul.f32 0.5, %v1220_v33 }
 0x666   : > { %v1228_v20 = vmul.f32 %v1226_v6, %v1220_v33  ;;  %v3478_v6 = vld [vmem:[%s3728_s5] sm:$0x7f] }
 0x668   : > { %v1230_v7 = vmul.f32 %v1228_v20, %v1220_v33 }
 0x669   : > { %v1221_v19 = vpop.f32.mrf.mxu0 }
 0x66a   : > { %v1232_v8 = vadd.f32 %v1230_v7, %v1220_v33  ;;  %v1222_v9 = vadd.f32 %v1221_v19, %v1190_v34 }
 0x66c   : > { %v1227_v35 = vmul.f32 0.044715, %v1222_v9  ;;  %v1234_v10 = vmul.f32 0.7978846, %v1232_v8  ;;  %v1225_v24 = vmul.f32 0.5, %v1222_v9  ;;  %v1337_v8 = vperm.slane %v3478_v6, 0 }
 0x66e   : > { %v1229_v11 = vmul.f32 %v1227_v35, %v1222_v9  ;;  %2790 = vtanh.f32 %v1234_v10 }
 0x670   : > { %v1231_v12 = vmul.f32 %v1229_v11, %v1222_v9  ;;  %v1340_v11 = vperm.slane %v3478_v6, 1 }
 0x672   : > { %v1233_v13 = vadd.f32 %v1231_v12, %v1222_v9 }
 0x674   : > { %v1235_v14 = vmul.f32 0.7978846, %v1233_v13  ;;  %v2791_v15 = vpop.eup %2790 }
 0x675   : > { %v1238_v17 = vadd.f32 1.0, %v2791_v15 }
 0x676   : > { %2792 = vtanh.f32 %v1235_v14 }
 0x677   : > { %v1240_v0 = vmul.f32 %v1238_v17, %v1224_v23  ;;  %v1396_v23 = vperm.slane %v3478_v6, 3 }
 0x67c   : > { %v2793_v18 = vpop.eup %2792 }
 0x67d   : > { %v1239_v25 = vadd.f32 1.0, %v2793_v18 }
 0x67f   : > { %v1241_v26 = vmul.f32 %v1239_v25, %v1225_v24 }
 0x681   : > { %v1242_v27 = vpack.c.bf16 %v1241_v26, %v1240_v0 }
 0x683   : > { %2426 = vmatmul.msk.bf16.vlgmr.msra.gmra.mxu2 %vm591_vm0, %v1242_v27 }
 0x706   : > { %v1272_v30 = vpop.f32.mrf.mxu2 }
 0x707   : > { %v1273_v31 = vadd.f32 %v1272_v30, %v1243_v29 }
 0x709   : > { %v3442_v32 = vadd.f32 %v1273_v31, %v3406_v40 }
 0x70b   : > { %v1293_v36 = vsel %vm591_vm0, %v3442_v32, 0.0 }
 0x70c   : > { %1294 = vadd.xlane.f32.xlu0 %v1293_v36 }
 0x70e   : > { %v1274_v37 = vpop.f32.mrf.mxu2 }
 0x70f   : > { %v1275_v28 = vadd.f32 %v1274_v37, %v1243_v29 }
 0x711   : > { %v3447_v38 = vadd.f32 %v1275_v28, %v3411_v41 }
 0x713   : > { %v1296_v39 = vsel %vm591_vm0, %v3447_v38, 0.0 }
 0x714   : > { %1297 = vadd.xlane.f32.xlu1 %v1296_v39 }
 0x77f   : > { %v1295_v42 = vpop.xlane.xlu0 %1294 }
 0x780   : > { %v1299_v43 = vmul.f32 %v1295_v42, %v3251_v16 }
 0x782   : > { %v1301_v44 = vsub.f32 %v3442_v32, %v1299_v43 }
 0x784   : > { %v1303_v40 = vmul.f32 %v1301_v44, %v1301_v44 }
 0x786   : > { %v1305_v45 = vsel %vm591_vm0, %v1303_v40, 0.0 }
 0x787   : > { %v1298_v46 = vpop.xlane.xlu1 %1297  ;;  %1306 = vadd.xlane.f32.xlu2 %v1305_v45 }
 0x788   : > { %v1300_v47 = vmul.f32 %v1298_v46, %v3251_v16 }
 0x78a   : > { %v1302_v21 = vsub.f32 %v3447_v38, %v1300_v47 }
 0x78c   : > { %v1304_v41 = vmul.f32 %v1302_v21, %v1302_v21 }
 0x78e   : > { %v1308_v48 = vsel %vm591_vm0, %v1304_v41, 0.0 }
 0x78f   : > { %1309 = vadd.xlane.f32.xlu0 %v1308_v48 }
 0x7fa   : > { %v1307_v56 = vpop.xlane.xlu2 %1306 }
 0x7fb   : > { %v1311_v57 = vmul.f32 %v1307_v56, %v3251_v16 }
 0x7fd   : > { %v1313_v58 = vadd.f32 1e-05, %v1311_v57 }
 0x7ff   : > { %2794 = vrsqrt.f32 %v1313_v58  ;;  %vm1321_vm5 = vweird.f32 %v1313_v58 }
 0x802   : > { %v1310_v59 = vpop.xlane.xlu0 %1309 }
 0x803   : > { %v1312_v60 = vmul.f32 %v1310_v59, %v3251_v16 }
 0x805   : > { %v2795_v61 = vpop.eup %2794  ;;  %v1314_v62 = vadd.f32 1e-05, %v1312_v60 }
 0x806   : > { %v1316_v63 = vmul.f32 %v2795_v61, %v1313_v58  ;;  %vm1322_vm4 = vweird.f32 %v2795_v61 }
 0x807   : > { %2796 = vrsqrt.f32 %v1314_v62  ;;  %vm1323_vm6 = vmor %vm1321_vm5, %vm1322_vm4  ;;  %vm1331_vm8 = vweird.f32 %v1314_v62 }
 0x808   : > { %v1317_v1 = vmul.f32 %v2795_v61, %v1316_v63 }
 0x80a   : > { %v1318_v2 = vmul.f32 0.5, %v1317_v1 }
 0x80c   : > { %v1319_v3 = vsub.f32 1.5, %v1318_v2  ;;  %v1499_v2 = vld [vmem:[%s3731_s8 + $0x8] sm:$0xff] }
 0x80d   : > { %v2797_v4 = vpop.eup %2796 }
 0x80e   : > { %v1320_v34 = vmul.f32 %v2795_v61, %v1319_v3  ;;  %v1326_v5 = vmul.f32 %v2797_v4, %v1314_v62  ;;  %vm1332_vm7 = vweird.f32 %v2797_v4  ;;  %v1498_v3 = vld [vmem:[%s3731_s8] sm:$0xff] }
 0x80f   : > { %vm1333_vm9 = vmor %vm1331_vm8, %vm1332_vm7 }
 0x810   : > { %v1327_v33 = vmul.f32 %v2797_v4, %v1326_v5  ;;  %v1324_v20 = vsel %vm1323_vm6, %v2795_v61, %v1320_v34 }
 0x811   : > { %v1335_v9 = vmul.f32 %v1324_v20, %v1301_v44 }
 0x812   : > { %v1328_v7 = vmul.f32 0.5, %v1327_v33  ;;  %v3034_v33 = vmov 0  }
 0x813   : > { %v1338_v12 = vmul.f32 %v1337_v8, %v1335_v9  ;;  %2739 = vset.pattern.permute.xlu0 %v3034_v33  ;;  %2738 = vset.pattern.permute.xlu2 %v3034_v33 }
 0x814   : > { %v1329_v19 = vsub.f32 1.5, %v1328_v7  ;;  %2740 = vset.pattern.permute.xlu1 %v3034_v33 }
 0x815   : > { %v1341_v15 = vadd.f32 %v1340_v11, %v1338_v12 }
 0x816   : > { %v1330_v35 = vmul.f32 %v2797_v4, %v1329_v19 }
 0x818   : > { %v1334_v10 = vsel %vm1333_vm9, %v2797_v4, %v1330_v35  ;;  %v2620_v4 = vld [vmem:[%s3729_s6 + $0x28] sm:$0xff] }
 0x819   : > { %v1336_v13 = vmul.f32 %v1334_v10, %v1302_v21  ;;  %v1553_v7 = vsel %vm591_vm0, %v2620_v4, 0 }
 0x81a   : > { %1561 = vmatpush.bf16.xpose.msrb.mxu2 %v1553_v7 }
 0x81b   : > { %v1339_v14 = vmul.f32 %v1337_v8, %v1336_v13 }
 0x81d   : > { %v1342_v17 = vadd.f32 %v1340_v11, %v1339_v14 }
 0x81f   : > { %v1343_v18 = vpack.c.bf16 %v1342_v17, %v1341_v15 }
 0x821   : > { %2435 = vmatmul.msk.bf16.vlgmr.msrb.gmra.mxu3 %vm591_vm0, %v1343_v18  ;;  %2444 = vmatmul.msk.bf16.vlgmr.msrb.gmra.mxu0 %vm591_vm0, %v1343_v18  ;;  %v1489_v18 = vperm.slane %v3478_v6, 4 }
 0x89e   : > { %v1422_v24 = vpop.f32.mrf.mxu0 }
 0x89f   : > { %v1423_v25 = vadd.f32 %v1422_v24, %v1396_v23 }
 0x8a1   : > { %v1429_v0 = vmul.f32 0.044715, %v1423_v25  ;;  %v1427_v40 = vmul.f32 0.5, %v1423_v25 }
 0x8a3   : > { %v1431_v26 = vmul.f32 %v1429_v0, %v1423_v25 }
 0x8a5   : > { %v1433_v27 = vmul.f32 %v1431_v26, %v1423_v25  ;;  %v1492_v26 = vperm.slane %v3478_v6, 5 }
 0x8a6   : > { %v1424_v29 = vpop.f32.mrf.mxu0 }
 0x8a7   : > { %v1425_v30 = vadd.f32 %v1424_v29, %v1396_v23  ;;  %v1435_v31 = vadd.f32 %v1433_v27, %v1423_v25 }
 0x8a9   : > { %v1430_v36 = vmul.f32 0.044715, %v1425_v30  ;;  %v1437_v37 = vmul.f32 0.7978846, %v1435_v31  ;;  %v1428_v41 = vmul.f32 0.5, %v1425_v30 }
 0x8ab   : > { %2798 = vtanh.f32 %v1437_v37  ;;  %v1432_v28 = vmul.f32 %v1430_v36, %v1425_v30  ;;  %v2621_v36 = vld [vmem:[#allocation7] sm:$0xff]  ;;  %v1373_v37 = vpop.f32.mrf.mxu3 }
 0x8ad   : > { %v1434_v39 = vmul.f32 %v1432_v28, %v1425_v30  ;;  %v1344_v28 = vperm.slane %v3478_v6, 2 }
 0x8af   : > { %v1436_v42 = vadd.f32 %v1434_v39, %v1425_v30 }
 0x8b1   : > { %v2799_v43 = vpop.eup %2798  ;;  %v1438_v44 = vmul.f32 0.7978846, %v1436_v42  ;;  %v1374_v42 = vadd.f32 %v1373_v37, %v1344_v28 }
 0x8b2   : > { %v1441_v45 = vadd.f32 1.0, %v2799_v43  ;;  %v2619_v43 = vld [vmem:[%s3729_s6 + $0x20] sm:$0xff] }
 0x8b3   : > { %2800 = vtanh.f32 %v1438_v44  ;;  %v1375_v39 = vpop.f32.mrf.mxu3 }
 0x8b4   : > { %v1443_v46 = vmul.f32 %v1441_v45, %v1427_v40  ;;  %v1376_v44 = vadd.f32 %v1375_v39, %v1344_v28  ;;  %v1550_v40 = vsel %vm591_vm0, %v2619_v43, 0  ;;  %v1380_v45 = vmul.f32 0.044715, %v1374_v42 }
 0x8b5   : > { %1562 = vmatpush.bf16.xpose.msrb.mxu2 %v1550_v40 }
 0x8b6   : > { %v1445_v47 = vsel %vm591_vm0, %v1443_v46, 0.0 }
 0x8b7   : > { %1446 = vadd.xlane.f32.xlu1 %v1445_v47  ;;  %v1382_v47 = vmul.f32 %v1380_v45, %v1374_v42 }
 0x8b9   : > { %v2801_v21 = vpop.eup %2800 }
 0x8ba   : > { %v1442_v48 = vadd.f32 1.0, %v2801_v21 }
 0x8bc   : > { %v1444_v49 = vmul.f32 %v1442_v48, %v1428_v41  ;;  %v1384_v41 = vmul.f32 %v1382_v47, %v1374_v42 }
 0x8be   : > { %v1448_v50 = vsel %vm591_vm0, %v1444_v49, 0.0 }
 0x8bf   : > { %1449 = vadd.xlane.f32.xlu2 %v1448_v50 }
 0x8d7   : > { %1502 = vperm.xlu2 %2738, %v1498_v3  }
 0x92a   : > { %v1447_v51 = vpop.xlane.xlu1 %1446 }
 0x92b   : > { %v1451_v52 = vmul.f32 %v1447_v51, %v3251_v16 }
 0x92d   : > { %v1453_v22 = vsub.f32 %v1443_v46, %v1451_v52  ;;  %v1381_v46 = vmul.f32 0.044715, %v1376_v44 }
 0x92f   : > { %v1455_v53 = vmul.f32 %v1453_v22, %v1453_v22  ;;  %v1383_v21 = vmul.f32 %v1381_v46, %v1376_v44 }
 0x931   : > { %v1457_v54 = vsel %vm591_vm0, %v1455_v53, 0.0  ;;  %v1385_v48 = vmul.f32 %v1383_v21, %v1376_v44 }
 0x932   : > { %v1450_v55 = vpop.xlane.xlu2 %1449  ;;  %1458 = vadd.xlane.f32.xlu0 %v1457_v54 }
 0x933   : > { %v1452_v56 = vmul.f32 %v1450_v55, %v3251_v16  ;;  %v1387_v50 = vadd.f32 %v1385_v48, %v1376_v44 }
 0x935   : > { %v1454_v57 = vsub.f32 %v1444_v49, %v1452_v56  ;;  %v1386_v49 = vadd.f32 %v1384_v41, %v1374_v42  ;;  %v1389_v52 = vmul.f32 0.7978846, %v1387_v50  ;;  %v3553_v50 = vld [vmem:[%s3728_s5 + $0x8] sm:$0x7f] }
 0x937   : > { %v1456_v58 = vmul.f32 %v1454_v57, %v1454_v57  ;;  %v1388_v51 = vmul.f32 0.7978846, %v1386_v49 }
 0x939   : > { %v1460_v59 = vsel %vm591_vm0, %v1456_v58, 0.0 }
 0x93a   : > { %1461 = vadd.xlane.f32.xlu1 %v1460_v59  ;;  %v1503_v55 = vpop.permute.xlu2 %1502  ;;  %v1378_v59 = vmul.f32 0.5, %v1374_v42 }
 0x946   : > { %1507 = vperm.xlu0 %2739, %v1499_v2  }
 0x9a5   : > { %v1459_v60 = vpop.xlane.xlu0 %1458 }
 0x9a6   : > { %v1463_v61 = vmul.f32 %v1459_v60, %v3251_v16 }
 0x9a8   : > { %v1465_v62 = vadd.f32 1e-05, %v1463_v61  ;;  %v1379_v61 = vmul.f32 0.5, %v1376_v44 }
 0x9aa   : > { %2802 = vrsqrt.f32 %v1465_v62  ;;  %vm1473_vm11 = vweird.f32 %v1465_v62 }
 0x9ad   : > { %v1462_v63 = vpop.xlane.xlu1 %1461 }
 0x9ae   : > { %v1464_v1 = vmul.f32 %v1462_v63, %v3251_v16 }
 0x9b0   : > { %v2803_v34 = vpop.eup %2802  ;;  %v1466_v5 = vadd.f32 1e-05, %v1464_v1 }
 0x9b1   : > { %v1468_v20 = vmul.f32 %v2803_v34, %v1465_v62  ;;  %vm1474_vm10 = vweird.f32 %v2803_v34 }
 0x9b2   : > { %2804 = vrsqrt.f32 %v1466_v5  ;;  %vm1475_vm13 = vmor %vm1473_vm11, %vm1474_vm10  ;;  %vm1483_vm15 = vweird.f32 %v1466_v5 }
 0x9b3   : > { %v1469_v19 = vmul.f32 %v2803_v34, %v1468_v20  ;;  %2806 = vtanh.f32 %v1388_v51 }
 0x9b4   : > { %2808 = vtanh.f32 %v1389_v52 }
 0x9b5   : > { %v1470_v8 = vmul.f32 0.5, %v1469_v19 }
 0x9b7   : > { %v1471_v9 = vsub.f32 1.5, %v1470_v8 }
 0x9b8   : > { %v2805_v35 = vpop.eup %2804  ;;  %v1508_v58 = vpop.permute.xlu0 %1507 }
 0x9b9   : > { %v1472_v10 = vmul.f32 %v2803_v34, %v1471_v9  ;;  %v1478_v11 = vmul.f32 %v2805_v35, %v1466_v5  ;;  %vm1484_vm14 = vweird.f32 %v2805_v35  ;;  %v2807_v53 = vpop.eup %2806  ;;  %v1535_v5 = vperm.slane %v3478_v6, 6 }
 0x9ba   : > { %vm1485_vm1 = vmor %vm1483_vm15, %vm1484_vm14  ;;  %v2809_v54 = vpop.eup %2808  ;;  %v1392_v56 = vadd.f32 1.0, %v2807_v53  ;;  %v1628_v53 = vperm.slane %v3553_v50, 0  ;;  %vm1882_vm15 = vcmask 254976  }
 0x9bb   : > { %v1479_v12 = vmul.f32 %v2805_v35, %v1478_v11  ;;  %v1476_v13 = vsel %vm1475_vm13, %v2803_v34, %v1472_v10 }
 0x9bc   : > { %v1487_v17 = vmul.f32 %v1476_v13, %v1453_v22  ;;  %v1394_v63 = vmul.f32 %v1392_v56, %v1378_v59 }
 0x9bd   : > { %v1480_v14 = vmul.f32 0.5, %v1479_v12 }
 0x9be   : > { %v1490_v0 = vmul.f32 %v1489_v18, %v1487_v17 }
 0x9bf   : > { %v1481_v15 = vsub.f32 1.5, %v1480_v14 }
 0x9c0   : > { %v1493_v29 = vadd.f32 %v1492_v26, %v1490_v0 }
 0x9c1   : > { %v1482_v23 = vmul.f32 %v2805_v35, %v1481_v15 }
 0x9c3   : > { %v1486_v24 = vsel %vm1485_vm1, %v2805_v35, %v1482_v23  ;;  %v2490_v23 = vld [vmem:[%s3731_s8 + $0x18] sm:$0xff] }
 0x9c4   : > { %v1488_v25 = vmul.f32 %v1486_v24, %v1454_v57  ;;  %v1393_v57 = vadd.f32 1.0, %v2809_v54  ;;  %v2623_v24 = vld [vmem:[%s3729_s6 + $0x38] sm:$0xff] }
 0x9c5   : > { %v1653_v0 = vsel %vm591_vm0, %v2623_v24, 0 }
 0x9c6   : > { %v1491_v27 = vmul.f32 %v1489_v18, %v1488_v25  ;;  %v1395_v1 = vmul.f32 %v1393_v57, %v1379_v61  ;;  %v2625_v25 = vld [vmem:[%s3729_s6 + $0x48] sm:$0xff]  ;;  %1661 = vmatpush.bf16.xpose.msra.mxu3 %v1653_v0  ;;  %v1631_v57 = vperm.slane %v3553_v50, 1 }
 0x9c8   : > { %v1494_v30 = vadd.f32 %v1492_v26, %v1491_v27  ;;  %v1702_v26 = vsel %vm591_vm0, %v2625_v25, 0  ;;  %v2622_v27 = vld [vmem:[%s3729_s6 + $0x30] sm:$0xff] }
 0x9c9   : > { %1710 = vmatpush.bf16.xpose.msra.mxu0 %v1702_v26 }
 0x9ca   : > { %v1497_v31 = vpack.c.bf16 %v1494_v30, %v1493_v29  ;;  %v2624_v29 = vld [vmem:[%s3729_s6 + $0x40] sm:$0xff]  ;;  %v1650_v30 = vsel %vm591_vm0, %v2622_v27, 0 }
 0x9cc   : > { %1525 = vmatpush.bf16.msra.mxu1 %v1497_v31  ;;  %v1699_v31 = vsel %vm591_vm0, %v2624_v29, 0 }
 0x9ce   : > { %1662 = vmatpush.bf16.xpose.msra.mxu3 %v1650_v30 }
 0x9cf   : > { %2449 = vmatmul.msk.bf16.vlgmr.msra.gmra.mxu1 %vm903_vm12, %v2621_v36 }
 0x9d1   : > { %1711 = vmatpush.bf16.xpose.msra.mxu0 %v1699_v31 }
 0xa4c   : > { %v1527_v22 = vpop.f32.mrf.mxu1 }
 0xa4d   : > { %v1528_v60 = vadd.f32 %v1527_v22, %v1503_v55 }
 0xa4f   : > { %v1532_v3 = vmul.f32 %v1528_v60, %v1394_v63 }
 0xa54   : > { %v1529_v62 = vpop.f32.mrf.mxu1 }
 0xa55   : > { %v1530_v2 = vadd.f32 %v1529_v62, %v1508_v58 }
 0xa57   : > { %v1533_v4 = vmul.f32 %v1530_v2, %v1395_v1  ;;  %v1687_v1 = vperm.slane %v3553_v50, 3 }
 0xa59   : > { %v1534_v34 = vpack.c.bf16 %v1533_v4, %v1532_v3 }
 0xa5b   : > { %2458 = vmatmul.msk.bf16.vlgmr.msrb.gmra.mxu2 %vm591_vm0, %v1534_v34 }
 0xade   : > { %v1564_v33 = vpop.f32.mrf.mxu2 }
 0xadf   : > { %v1565_v20 = vadd.f32 %v1564_v33, %v1535_v5 }
 0xae1   : > { %v3514_v7 = vadd.f32 %v1565_v20, %v3442_v32 }
 0xae3   : > { %v1584_v19 = vsel %vm591_vm0, %v3514_v7, 0.0 }
 0xae4   : > { %1585 = vadd.xlane.f32.xlu1 %v1584_v19 }
 0xae6   : > { %v1566_v8 = vpop.f32.mrf.mxu2 }
 0xae7   : > { %v1567_v9 = vadd.f32 %v1566_v8, %v1535_v5 }
 0xae9   : > { %v3519_v35 = vadd.f32 %v1567_v9, %v3447_v38 }
 0xaeb   : > { %v1587_v10 = vsel %vm591_vm0, %v3519_v35, 0.0 }
 0xaec   : > { %1588 = vadd.xlane.f32.xlu1 %v1587_v10 }
 0xb57   : > { %v1586_v11 = vpop.xlane.xlu1 %1585 }
 0xb58   : > { %v1590_v6 = vmul.f32 %v1586_v11, %v3251_v16 }
 0xb5a   : > { %v1592_v12 = vsub.f32 %v3514_v7, %v1590_v6 }
 0xb5c   : > { %v1594_v32 = vmul.f32 %v1592_v12, %v1592_v12 }
 0xb5e   : > { %v1596_v13 = vsel %vm591_vm0, %v1594_v32, 0.0 }
 0xb5f   : > { %1597 = vadd.xlane.f32.xlu1 %v1596_v13  ;;  %v1589_v14 = vpop.xlane.xlu1 %1588 }
 0xb60   : > { %v1591_v15 = vmul.f32 %v1589_v14, %v3251_v16 }
 0xb62   : > { %v1593_v17 = vsub.f32 %v3519_v35, %v1591_v15 }
 0xb64   : > { %v1595_v38 = vmul.f32 %v1593_v17, %v1593_v17 }
 0xb66   : > { %v1599_v18 = vsel %vm591_vm0, %v1595_v38, 0.0 }
 0xb67   : > { %1600 = vadd.xlane.f32.xlu2 %v1599_v18 }
 0xb7f   : > { %1800 = vperm.xlu2 %2738, %v2490_v23  }
 0xbd2   : > { %v1598_v36 = vpop.xlane.xlu1 %1597 }
 0xbd3   : > { %v1602_v37 = vmul.f32 %v1598_v36, %v3251_v16 }
 0xbd5   : > { %v1604_v28 = vadd.f32 1e-05, %v1602_v37 }
 0xbd7   : > { %2810 = vrsqrt.f32 %v1604_v28  ;;  %vm1612_vm3 = vweird.f32 %v1604_v28 }
 0xbda   : > { %v1601_v39 = vpop.xlane.xlu2 %1600 }
 0xbdb   : > { %v1603_v42 = vmul.f32 %v1601_v39, %v3251_v16 }
 0xbdd   : > { %v2811_v43 = vpop.eup %2810  ;;  %v1605_v44 = vadd.f32 1e-05, %v1603_v42 }
 0xbde   : > { %v1607_v40 = vmul.f32 %v2811_v43, %v1604_v28  ;;  %vm1613_vm2 = vweird.f32 %v2811_v43 }
 0xbdf   : > { %2812 = vrsqrt.f32 %v1605_v44  ;;  %vm1614_vm4 = vmor %vm1612_vm3, %vm1613_vm2  ;;  %vm1622_vm6 = vweird.f32 %v1605_v44 }
 0xbe0   : > { %v1608_v45 = vmul.f32 %v2811_v43, %v1607_v40 }
 0xbe2   : > { %v1609_v46 = vmul.f32 0.5, %v1608_v45 }
 0xbe4   : > { %v1610_v47 = vsub.f32 1.5, %v1609_v46  ;;  %v2489_v46 = vld [vmem:[%s3731_s8 + $0x10] sm:$0xff] }
 0xbe5   : > { %v2813_v21 = vpop.eup %2812 }
 0xbe6   : > { %v1611_v41 = vmul.f32 %v2811_v43, %v1610_v47  ;;  %v1617_v48 = vmul.f32 %v2813_v21, %v1605_v44  ;;  %vm1623_vm5 = vweird.f32 %v2813_v21 }
 0xbe7   : > { %vm1624_vm7 = vmor %vm1622_vm6, %vm1623_vm5 }
 0xbe8   : > { %v1618_v49 = vmul.f32 %v2813_v21, %v1617_v48  ;;  %v1615_v51 = vsel %vm1614_vm4, %v2811_v43, %v1611_v41 }
 0xbe9   : > { %v1626_v54 = vmul.f32 %v1615_v51, %v1592_v12 }
 0xbea   : > { %v1619_v52 = vmul.f32 0.5, %v1618_v49 }
 0xbeb   : > { %v1629_v58 = vmul.f32 %v1628_v53, %v1626_v54 }
 0xbec   : > { %v1620_v22 = vsub.f32 1.5, %v1619_v52 }
 0xbed   : > { %v1632_v61 = vadd.f32 %v1631_v57, %v1629_v58 }
 0xbee   : > { %v1621_v55 = vmul.f32 %v2813_v21, %v1620_v22 }
 0xbf0   : > { %v1625_v56 = vsel %vm1624_vm7, %v2813_v21, %v1621_v55 }
 0xbf1   : > { %v1627_v59 = vmul.f32 %v1625_v56, %v1593_v17 }
 0xbf3   : > { %v1630_v60 = vmul.f32 %v1628_v53, %v1627_v59  ;;  %v1780_v59 = vperm.slane %v3553_v50, 4 }
 0xbf5   : > { %v1633_v62 = vadd.f32 %v1631_v57, %v1630_v60 }
 0xbf7   : > { %v1634_v63 = vpack.c.bf16 %v1633_v62, %v1632_v61 }
 0xbf9   : > { %2479 = vmatmul.msk.bf16.vlgmr.msra.gmra.mxu3 %vm591_vm0, %v1634_v63  ;;  %2488 = vmatmul.msk.bf16.vlgmr.msra.gmra.mxu0 %vm591_vm0, %v1634_v63 }
 0xc76   : > { %v1713_v2 = vpop.f32.mrf.mxu0 }
 0xc77   : > { %v1714_v3 = vadd.f32 %v1713_v2, %v1687_v1 }
 0xc79   : > { %v1720_v4 = vmul.f32 0.044715, %v1714_v3  ;;  %v1718_v13 = vmul.f32 0.5, %v1714_v3 }
 0xc7b   : > { %v1722_v34 = vmul.f32 %v1720_v4, %v1714_v3 }
 0xc7d   : > { %v1724_v5 = vmul.f32 %v1722_v34, %v1714_v3 }
 0xc7e   : > { %v1715_v33 = vpop.f32.mrf.mxu0 }
 0xc7f   : > { %v1716_v20 = vadd.f32 %v1715_v33, %v1687_v1  ;;  %v1726_v19 = vadd.f32 %v1724_v5, %v1714_v3  ;;  %v1783_v1 = vperm.slane %v3553_v50, 5  ;;  %v2628_v5 = vld [vmem:[#allocation7 + $0x8] sm:$0xff]  ;;  %v1664_v33 = vpop.f32.mrf.mxu3 }
 0xc81   : > { %v1721_v8 = vmul.f32 0.044715, %v1716_v20  ;;  %v1728_v9 = vmul.f32 0.7978846, %v1726_v19  ;;  %v1719_v18 = vmul.f32 0.5, %v1716_v20  ;;  %v1635_v19 = vperm.slane %v3553_v50, 2 }
 0xc83   : > { %2814 = vtanh.f32 %v1728_v9  ;;  %v1723_v10 = vmul.f32 %v1721_v8, %v1716_v20 }
 0xc85   : > { %v1725_v11 = vmul.f32 %v1723_v10, %v1716_v20  ;;  %v1665_v10 = vadd.f32 %v1664_v33, %v1635_v19  ;;  %v2629_v33 = vld [vmem:[%s3733_s10] sm:$0xff] }
 0xc87   : > { %v1727_v6 = vadd.f32 %v1725_v11, %v1716_v20  ;;  %v2627_v20 = vld [vmem:[%s3729_s6 + $0x58] sm:$0xff]  ;;  %v1666_v9 = vpop.f32.mrf.mxu3 }
 0xc88   : > { %v1846_v8 = vsel %vm591_vm0, %v2627_v20, 0  ;;  %v1667_v11 = vadd.f32 %v1666_v9, %v1635_v19  ;;  %v1960_v20 = vsel %vm591_vm0, %v2629_v33, 0  ;;  %v2642_v19 = vld [vmem:[%s3735_s12 + $0x38] sm:$0xff] }
 0xc89   : > { %v2815_v12 = vpop.eup %2814  ;;  %v1729_v32 = vmul.f32 0.7978846, %v1727_v6  ;;  %1854 = vmatpush.bf16.xpose.msra.mxu2 %v1846_v8  ;;  %v2626_v6 = vld [vmem:[%s3729_s6 + $0x50] sm:$0xff]  ;;  %v2650_v8 = vld [vmem:[%s3735_s12 + $0x78] sm:$0xff] }
 0xc8a   : > { %v1732_v14 = vadd.f32 1.0, %v2815_v12  ;;  %v1671_v12 = vmul.f32 0.044715, %v1665_v10 }
 0xc8b   : > { %2816 = vtanh.f32 %v1729_v32  ;;  %v1843_v32 = vsel %vm591_vm0, %v2626_v6, 0 }
 0xc8c   : > { %v1734_v15 = vmul.f32 %v1732_v14, %v1718_v13  ;;  %v1672_v13 = vmul.f32 0.044715, %v1667_v11  ;;  %v1673_v14 = vmul.f32 %v1671_v12, %v1665_v10 }
 0xc8e   : > { %v1736_v17 = vsel %vm591_vm0, %v1734_v15, 0.0 }
 0xc8f   : > { %1737 = vadd.xlane.f32.xlu1 %v1736_v17  ;;  %v1675_v17 = vmul.f32 %v1673_v14, %v1665_v10 }
 0xc91   : > { %v2817_v38 = vpop.eup %2816  ;;  %1855 = vmatpush.bf16.xpose.msra.mxu2 %v1843_v32  ;;  %v2641_v32 = vld [vmem:[%s3735_s12 + $0x30] sm:$0xff] }
 0xc92   : > { %v1733_v23 = vadd.f32 1.0, %v2817_v38 }
 0xc94   : > { %v1735_v24 = vmul.f32 %v1733_v23, %v1719_v18  ;;  %v1677_v18 = vadd.f32 %v1675_v17, %v1665_v10  ;;  %v2640_v17 = vld [vmem:[%s3735_s12 + $0x28] sm:$0xff] }
 0xc96   : > { %v1739_v25 = vsel %vm591_vm0, %v1735_v24, 0.0 }
 0xc97   : > { %1740 = vadd.xlane.f32.xlu1 %v1739_v25 }
 0xd02   : > { %v1738_v0 = vpop.xlane.xlu1 %1737 }
 0xd03   : > { %v1742_v26 = vmul.f32 %v1738_v0, %v3251_v16 }
 0xd05   : > { %v1744_v27 = vsub.f32 %v1734_v15, %v1742_v26  ;;  %v1674_v15 = vmul.f32 %v1672_v13, %v1667_v11  ;;  %v2649_v13 = vld [vmem:[%s3735_s12 + $0x70] sm:$0xff] }
 0xd07   : > { %v1746_v29 = vmul.f32 %v1744_v27, %v1744_v27  ;;  %v1676_v38 = vmul.f32 %v1674_v15, %v1667_v11 }
 0xd09   : > { %v1748_v30 = vsel %vm591_vm0, %v1746_v29, 0.0  ;;  %v1678_v23 = vadd.f32 %v1676_v38, %v1667_v11  ;;  %v2648_v38 = vld [vmem:[%s3735_s12 + $0x68] sm:$0xff] }
 0xd0a   : > { %1749 = vadd.xlane.f32.xlu0 %v1748_v30  ;;  %v1741_v31 = vpop.xlane.xlu1 %1740 }
 0xd0b   : > { %v1743_v36 = vmul.f32 %v1741_v31, %v3251_v16  ;;  %v1680_v25 = vmul.f32 0.7978846, %v1678_v23 }
 0xd0d   : > { %v1745_v37 = vsub.f32 %v1735_v24, %v1743_v36  ;;  %v1679_v24 = vmul.f32 0.7978846, %v1677_v18  ;;  %v1669_v36 = vmul.f32 0.5, %v1665_v10 }
 0xd0f   : > { %v1747_v28 = vmul.f32 %v1745_v37, %v1745_v37 }
 0xd11   : > { %v1751_v39 = vsel %vm591_vm0, %v1747_v28, 0.0  ;;  %v1670_v28 = vmul.f32 0.5, %v1667_v11 }
 0xd12   : > { %1752 = vadd.xlane.f32.xlu1 %v1751_v39  ;;  %v1801_v39 = vpop.permute.xlu2 %1800 }
 0xd2b   : > { %1795 = vperm.xlu1 %2740, %v2489_v46  }
 0xd7d   : > { %v1750_v42 = vpop.xlane.xlu0 %1749 }
 0xd7e   : > { %v1754_v43 = vmul.f32 %v1750_v42, %v3251_v16 }
 0xd80   : > { %v1756_v44 = vadd.f32 1e-05, %v1754_v43 }
 0xd82   : > { %2818 = vrsqrt.f32 %v1756_v44  ;;  %vm1764_vm9 = vweird.f32 %v1756_v44 }
 0xd85   : > { %v1753_v40 = vpop.xlane.xlu1 %1752 }
 0xd86   : > { %v1755_v45 = vmul.f32 %v1753_v40, %v3251_v16 }
 0xd88   : > { %v2819_v47 = vpop.eup %2818  ;;  %v1757_v21 = vadd.f32 1e-05, %v1755_v45 }
 0xd89   : > { %v1759_v41 = vmul.f32 %v2819_v47, %v1756_v44  ;;  %vm1765_vm8 = vweird.f32 %v2819_v47 }
 0xd8a   : > { %2820 = vrsqrt.f32 %v1757_v21  ;;  %vm1766_vm10 = vmor %vm1764_vm9, %vm1765_vm8  ;;  %vm1774_vm13 = vweird.f32 %v1757_v21 }
 0xd8b   : > { %v1760_v48 = vmul.f32 %v2819_v47, %v1759_v41  ;;  %2822 = vtanh.f32 %v1679_v24  ;;  %v1828_v41 = vperm.slane %v3553_v50, 6 }
 0xd8c   : > { %2824 = vtanh.f32 %v1680_v25 }
 0xd8d   : > { %v1761_v49 = vmul.f32 0.5, %v1760_v48 }
 0xd8f   : > { %v1762_v51 = vsub.f32 1.5, %v1761_v49 }
 0xd90   : > { %v2821_v52 = vpop.eup %2820 }
 0xd91   : > { %v1763_v22 = vmul.f32 %v2819_v47, %v1762_v51  ;;  %v1769_v53 = vmul.f32 %v2821_v52, %v1757_v21  ;;  %vm1775_vm11 = vweird.f32 %v2821_v52  ;;  %v2823_v26 = vpop.eup %2822 }
 0xd92   : > { %vm1776_vm14 = vmor %vm1774_vm13, %vm1775_vm11  ;;  %v1683_v30 = vadd.f32 1.0, %v2823_v26 }
 0xd93   : > { %v1770_v54 = vmul.f32 %v2821_v52, %v1769_v53  ;;  %v1767_v55 = vsel %vm1766_vm10, %v2819_v47, %v1763_v22 }
 0xd94   : > { %v1778_v58 = vmul.f32 %v1767_v55, %v1744_v27  ;;  %v2825_v27 = vpop.eup %2824  ;;  %v1685_v43 = vmul.f32 %v1683_v30, %v1669_v36 }
 0xd95   : > { %v1771_v56 = vmul.f32 0.5, %v1770_v54  ;;  %v1684_v31 = vadd.f32 1.0, %v2825_v27  ;;  %v1864_v54 = vld [vmem:[%s3732_s9] sm:$0x1] }
 0xd96   : > { %v1781_v63 = vmul.f32 %v1780_v59, %v1778_v58  ;;  %v2639_v27 = vld [vmem:[%s3735_s12 + $0x20] sm:$0xff] }
 0xd97   : > { %v1772_v57 = vsub.f32 1.5, %v1771_v56  ;;  %v1686_v44 = vmul.f32 %v1684_v31, %v1670_v28  ;;  %v2828_v31 = vld [vmem:[#allocation5 + $0x8] sm:$0x3f] }
 0xd98   : > { %v1784_v3 = vadd.f32 %v1783_v1, %v1781_v63  ;;  %v1905_v36 = vperm.slane %v2828_v31, 4 }
 0xd99   : > { %v1773_v60 = vmul.f32 %v2821_v52, %v1772_v57  ;;  %v2633_v57 = vld [vmem:[%s3733_s10 + $0x20] sm:$0xff] }
 0xd9a   : > { %v1972_v58 = vsel %vm591_vm0, %v2633_v57, 0  ;;  %v2741_v57 = vld [vmem:[#allocation8] ss:$0 sm:$0xff] }
 0xd9b   : > { %v1777_v61 = vsel %vm1776_vm14, %v2821_v52, %v1773_v60 }
 0xd9c   : > { %v1779_v62 = vmul.f32 %v1777_v61, %v1745_v37 }
 0xd9d   : > { %v1796_v29 = vpop.permute.xlu1 %1795 }
 0xd9e   : > { %v1782_v2 = vmul.f32 %v1780_v59, %v1779_v62  ;;  %v2632_v59 = vld [vmem:[%s3733_s10 + $0x18] sm:$0xff] }
 0xd9f   : > { %v1969_v60 = vsel %vm591_vm0, %v2632_v59, 0 }
 0xda0   : > { %v1785_v4 = vadd.f32 %v1783_v1, %v1782_v2 }
 0xda2   : > { %v1789_v34 = vpack.c.bf16 %v1785_v4, %v1784_v3  ;;  %v2631_v3 = vld [vmem:[%s3733_s10 + $0x10] sm:$0xff] }
 0xda3   : > { %v1966_v4 = vsel %vm591_vm0, %v2631_v3, 0 }
 0xda4   : > { %1818 = vmatpush.bf16.msrb.mxu1 %v1789_v34  ;;  %v2630_v34 = vld [vmem:[%s3733_s10 + $0x8] sm:$0xff] }
 0xda7   : > { %2495 = vmatmul.msk.bf16.vlgmr.msrb.gmra.mxu1 %vm903_vm12, %v2628_v5  ;;  %v1963_v5 = vsel %vm591_vm0, %v2630_v34, 0 }
 0xe24   : > { %v1820_v0 = vpop.f32.mrf.mxu1 }
 0xe25   : > { %v1821_v37 = vadd.f32 %v1820_v0, %v1796_v29  ;;  %v2647_v29 = vld [vmem:[%s3735_s12 + $0x60] sm:$0xff] }
 0xe27   : > { %v1825_v45 = vmul.f32 %v1821_v37, %v1685_v43 }
 0xe2c   : > { %v1822_v42 = vpop.f32.mrf.mxu1 }
 0xe2d   : > { %v1823_v40 = vadd.f32 %v1822_v42, %v1801_v39  ;;  %v1907_v39 = vperm.slane %v2828_v31, 5 }
 0xe2f   : > { %v1826_v46 = vmul.f32 %v1823_v40, %v1686_v44 }
 0xe31   : > { %v1827_v47 = vpack.c.bf16 %v1826_v46, %v1825_v45  ;;  %v2638_v45 = vld [vmem:[%s3735_s12 + $0x18] sm:$0xff] }
 0xe32   : > { %v2646_v46 = vld [vmem:[%s3735_s12 + $0x58] sm:$0xff] }
 0xe33   : > { %2504 = vmatmul.msk.bf16.vlgmr.msra.gmra.mxu2 %vm591_vm0, %v1827_v47 }
 0xeb6   : > { %v1857_v21 = vpop.f32.mrf.mxu2 }
 0xeb7   : > { %v1858_v48 = vadd.f32 %v1857_v21, %v1828_v41 }
 0xeb9   : > { %v1862_v52 = vadd.f32 %v1858_v48, %v3514_v7  ;;  %v2634_v7 = vld [vmem:[%s3733_s10 + $0x28] sm:$0xff]  ;;  %v2637_v48 = vld [vmem:[%s3735_s12 + $0x10] sm:$0xff] }
 0xebe   : > { %v1859_v49 = vpop.f32.mrf.mxu2 }
 0xebf   : > { %v1860_v51 = vadd.f32 %v1859_v49, %v1828_v41  ;;  %v2645_v49 = vld [vmem:[%s3735_s12 + $0x50] sm:$0xff] }
 0xec1   : > { %v1863_v22 = vadd.f32 %v1860_v51, %v3519_v35  ;;  %v1975_v35 = vsel %vm591_vm0, %v2634_v7, 0 }
 0xec2   : > { %1979 = vmatpush.bf16.xpose.msrb.mxu0 %v1975_v35 }
 0xec3   : > { %v1865_v53 = vpack.c.bf16 %v1863_v22, %v1862_v52  ;;  %v2636_v22 = vld [vmem:[%s3735_s12 + $0x8] sm:$0xff] }
 0xec5   : > { %1876 = vmatpush.bf16.msrb.mxu3 %v1865_v53  ;;  %v2644_v53 = vld [vmem:[%s3735_s12 + $0x48] sm:$0xff] }
 0xec8   : > { %2505 = vmatmul.msk.bf16.vlgmr.msrb.gmra.mxu3 %vm903_vm12, %v1864_v54  ;;  %vm2110_vm12 = vcmask 785408  }
 0xec9   : > { %v2136_v11 = vsel %vm2110_vm12, %v2642_v19, 0  ;;  %v2160_v6 = vsel %vm2110_vm12, %v2650_v8, 0  ;;  %v2133_v14 = vsel %vm2110_vm12, %v2641_v32, 0  ;;  %v2130_v24 = vsel %vm2110_vm12, %v2640_v17, 0 }
 0xeca   : > { %1980 = vmatpush.bf16.xpose.msrb.mxu0 %v1972_v58  ;;  %2162 = vmatpush.bf16.xpose.msra.mxu1 %v2136_v11  ;;  %v2154_v25 = vsel %vm2110_vm12, %v2648_v38, 0  ;;  %v2127_v42 = vsel %vm2110_vm12, %v2639_v27, 0  ;;  %v2151_v43 = vsel %vm2110_vm12, %v2647_v29, 0  ;;  %v2124_v21 = vsel %vm2110_vm12, %v2638_v45, 0 }
 0xecb   : > { %2175 = vmatpush.bf16.xpose.msrb.mxu2 %v2160_v6  ;;  %v2148_v41 = vsel %vm2110_vm12, %v2646_v46, 0  ;;  %v2121_v51 = vsel %vm2110_vm12, %v2637_v48, 0  ;;  %v2145_v52 = vsel %vm2110_vm12, %v2645_v49, 0  ;;  %v2118_v54 = vsel %vm2110_vm12, %v2636_v22, 0 }
 0xed2   : > { %1981 = vmatpush.bf16.xpose.msrb.mxu0 %v1969_v60  ;;  %2163 = vmatpush.bf16.xpose.msra.mxu1 %v2133_v14 }
 0xeda   : > { %1982 = vmatpush.bf16.xpose.msrb.mxu0 %v1966_v4  ;;  %2164 = vmatpush.bf16.xpose.msra.mxu1 %v2130_v24 }
 0xee2   : > { %1983 = vmatpush.bf16.xpose.msrb.mxu0 %v1963_v5  ;;  %2165 = vmatpush.bf16.xpose.msra.mxu1 %v2127_v42 }
 0xeea   : > { %1984 = vmatpush.bf16.xpose.msrb.mxu0 %v1960_v20  ;;  %2166 = vmatpush.bf16.xpose.msra.mxu1 %v2124_v21 }
 0xef2   : > { %2167 = vmatpush.bf16.xpose.msra.mxu1 %v2121_v51 }
 0xefa   : > { %2168 = vmatpush.bf16.xpose.msra.mxu1 %v2118_v54 }
 0xf4b   : > { %v1878_v55 = vpop.f32.mrf.mxu3 }
 0xf4c   : > { %v1883_v56 = vsel %vm1882_vm15, %v1878_v55, 0.0 }
 0xf4d   : > { %1884 = vadd.xlane.f32.xlu1 %v1883_v56  ;;  %v2635_v56 = vld [vmem:[%s3735_s12] sm:$0xff] }
 0xf4e   : > { %v2115_v7 = vsel %vm2110_vm12, %v2635_v56, 0 }
 0xf4f   : > { %2169 = vmatpush.bf16.xpose.msra.mxu1 %v2115_v7 }
 0xf53   : > { %v1880_v50 = vpop.f32.mrf.mxu3 }
 0xf54   : > { %v2643_v50 = vld [vmem:[%s3735_s12 + $0x40] sm:$0xff] }
 0xf55   : > { %v2139_v35 = vsel %vm2110_vm12, %v2643_v50, 0 }
 0xfc0   : > { %v1885_v61 = vpop.xlane.xlu1 %1884 }
 0xfc1   : > { %v1886_v62 = vmul.f32 %v1885_v61, %v3251_v16 }
 0xfc3   : > { %v1887_v63 = vsub.f32 %v1878_v55, %v1886_v62  ;;  %v2142_v55 = vsel %vm2110_vm12, %v2644_v53, 0 }
 0xfc5   : > { %v1888_v1 = vmul.f32 %v1887_v63, %v1887_v63 }
 0xfc7   : > { %v1889_v2 = vsel %vm1882_vm15, %v1888_v1, 0.0  ;;  %v2023_v1 = vld [vmem:[%s3763_s24] sm:$0x3] }
 0xfc8   : > { %1890 = vadd.xlane.f32.xlu2 %v1889_v2  ;;  %v2027_v2 = vperm.slane %v2023_v1, 1  ;;  %v2026_v3 = vperm.slane %v2023_v1, 0 }
0x103b   : > { %v1891_v9 = vpop.xlane.xlu2 %1890 }
0x103c   : > { %v1892_v10 = vmul.f32 %v1891_v9, %v3251_v16  ;;  %v2157_v16 = vsel %vm2110_vm12, %v2649_v13, 0 }
0x103d   : > { %2176 = vmatpush.bf16.xpose.msrb.mxu2 %v2157_v16 }
0x103e   : > { %v1893_v12 = vadd.f32 1e-05, %v1892_v10 }
0x1040   : > { %2826 = vrsqrt.f32 %v1893_v12  ;;  %vm1900_vm2 = vweird.f32 %v1893_v12 }
0x1045   : > { %2177 = vmatpush.bf16.xpose.msrb.mxu2 %v2154_v25 }
0x1046   : > { %v2827_v15 = vpop.eup %2826 }
0x1047   : > { %v1895_v18 = vmul.f32 %v2827_v15, %v1893_v12  ;;  %vm1901_vm1 = vweird.f32 %v2827_v15 }
0x1048   : > { %vm1902_vm3 = vmor %vm1900_vm2, %vm1901_vm1 }
0x1049   : > { %v1896_v23 = vmul.f32 %v2827_v15, %v1895_v18 }
0x104b   : > { %v1897_v0 = vmul.f32 0.5, %v1896_v23 }
0x104d   : > { %v1898_v26 = vsub.f32 1.5, %v1897_v0  ;;  %2178 = vmatpush.bf16.xpose.msrb.mxu2 %v2151_v43 }
0x104f   : > { %v1899_v30 = vmul.f32 %v2827_v15, %v1898_v26 }
0x1051   : > { %v1903_v37 = vsel %vm1902_vm3, %v2827_v15, %v1899_v30 }
0x1052   : > { %v1904_v28 = vmul.f32 %v1903_v37, %v1887_v63 }
0x1054   : > { %v1906_v44 = vmul.f32 %v1905_v36, %v1904_v28 }
0x1055   : > { %2179 = vmatpush.bf16.xpose.msrb.mxu2 %v2148_v41 }
0x1056   : > { %v1908_v40 = vadd.f32 %v1907_v39, %v1906_v44 }
0x1058   : > { %v1922_v47 = vpack.c.bf16 %v1908_v40, %v1908_v40 }
0x105a   : > { %2530 = vmatmul.msk.bf16.vlgmr.msrb.gmra.mxu0 %vm591_vm0, %v1922_v47  ;;  %vm2191_vm0 = vcmask 1041408  }
0x105d   : > { %2180 = vmatpush.bf16.xpose.msrb.mxu2 %v2145_v52 }
0x1065   : > { %2181 = vmatpush.bf16.xpose.msrb.mxu2 %v2142_v55 }
0x106d   : > { %2182 = vmatpush.bf16.xpose.msrb.mxu2 %v2139_v35 }
0x10d7   : > { %v1986_v58 = vpop.f32.mrf.mxu0 }
0x10d8   : > { %v1987_v59 = vadd.f32 %v2741_v57, %v1986_v58 }
0x10da   : > { %v1990_v60 = vmax.f32 %v1987_v59, 0.0 }
0x10dc   : > { %v2024_v61 = vpack.c.bf16 %v1990_v60, %v1990_v60 }
0x10de   : > { %2595 = vmatmul.msk.bf16.vlgmr.msra.gmra.mxu1 %vm2110_vm12, %v2024_v61  ;;  %2596 = vmatmul.msk.bf16.vlgmr.msrb.gmra.mxu2 %vm2110_vm12, %v2024_v61 }
0x10df   : > { %v1988_v62 = vpop.f32.mrf.mxu0 }
0x115b   : > { %v2171_v63 = vpop.f32.mrf.mxu1 }
0x115c   : > { %v2172_v33 = vadd.f32 %v2171_v63, %v2026_v3 }
0x1161   : > { %v2184_v4 = vpop.f32.mrf.mxu2 }
0x1162   : > { %v2185_v34 = vadd.f32 %v2184_v4, %v2027_v2 }
0x1163   : > { %v2173_v5 = vpop.f32.mrf.mxu1 }
0x1164   : > { %v2190_v20 = vrot.slane %v2185_v34, 6 }
0x1166   : > { %v2192_v19 = vsel %vm2191_vm0, %v2172_v33, %v2190_v20 }
0x1167   : > { %2194 = vst [vmem:[%s547_s28] sm:$0xf] %v2192_v19 }
0x1168   : > { %2976 = shalt.err (!%p2973_p10)
}
0x1169   : > { %2668 = dma.vmem_to_hbm [thread:$0]  (%p3186_p13), %s2210_s26, 64, %s2212_s22, %s2196_s20   ;;  %v2186_v8 = vpop.f32.mrf.mxu2 }
0x116a PF: > { %s2223_s14 = sand.u32 1, %s3011_s29   ;;  %p3765_p11 = scmp.ge.s32.totalorder %s3023_s16, 2 }
0x116b   : > { %s2224_s18 = scalar_lea.sflag [#allocation4], %s2223_s14 }
0x116c   : > { %p2685_p0 = pnand %p3765_p11, %p3191_p4 }
0x116e   : > { %p2686_p2 = pneg %p2685_p0 }
0x1170   : > { %3006 = dma.done.wait (%p2686_p2), %s2224_s18, 64  }
0x1171   : > { %3008 = vsyncadd (%p2686_p2), %s2224_s18, 4294967232  ;;  %s3766_s16 = sld [smem:[#allocation16_spill]]  ;;  %s3769_s29 = smov %s3015_s30 }
0x1172   : > { %s3767_s19 = sld [smem:[#allocation15_spill]] }
0x1173   : > { %s3768_s15 = sld [smem:[#allocation17_spill]] }
0x1177   : > { %p29_p6 = scmp.ge.s32.totalorder %s3766_s16, 4  }
0x1178   : > { %s3770_s30 = smov %s3767_s19 }
0x1179   :  { %31 = sbr.rel (!%p29_p6) target bundleno = 13 (0xd), region = 144 }
0x117e   :  { %2230 = vsyncpa [#allocation3], 1 }
0x117f   :  { %2232 = vsyncpa [#allocation3 + $0x1], 1 }
0x1180   :  { %2233 = vsyncpa [#allocation6], 1 }
0x1181   :  { %2234 = vsyncpa [#allocation9], 1 }
0x1182   :  { %2235 = vsyncpa [#allocation4], 1 }
0x1183   :  { %2237 = vsyncpa [#allocation4 + $0x1], 1 }

</bundles_post_ra>
